<compile_context>
chip_gen: v7x
topology: tpu7x:2x2x1
jax: 0.10.0
libtpu: 0.0.40
codegen_flags: <defaults>
</compile_context>

<pallas_src>
import functools

import numpy as np
import jax
import jax.numpy as jnp
from jax.experimental import pallas as pl
from jax.experimental.pallas import tpu as pltpu

# ----------------------------- model config ---------------------------------
NUM_STAGE = 4
STAGE_SPLITS = [8, 8, 4, 4]          # depth hypotheses per stage
GROUP_COR_DIM = [8, 8, 4, 4]         # group-correlation groups per stage
DEPTH_ITV_RATIO = [0.5, 0.5, 0.5, 0.5]
REG_CHANNEL = 8
FPN_OUT_CH = [32, 16, 8, 8]          # stage1(/8) .. stage4(/1) feature channels

_ROW_CAP = 1024                      # max rows per plain matmul tile
_LANE_CAP = 2048                     # max pixel columns per costvol/softmax tile
_CHUNK_PIX = 512                     # target rows*W per conv row-chunk


# ------------------------------ tiling helpers -------------------------------
def _pick_chunk_rows(h, w, cap=_CHUNK_PIX):
    """Rows per conv output chunk: a divisor of h (multiple of 8 or h itself)
    chosen so rows*w stays near the pixel cap."""
    if h * w <= cap:
        return h
    best = None
    r = 8
    while r <= h:
        if h % r == 0 and r * w <= cap:
            best = r
        r += 8
    if best is None:
        best = 8 if h % 8 == 0 else h
    return best


def _largest_divisor(n, cap, align):
    """Largest divisor of n that is <= cap and a multiple of `align`
    (returns n itself when n <= cap or no such divisor exists)."""
    if n <= cap:
        return n
    best = None
    d = align
    while d <= cap:
        if n % d == 0:
            best = d
        d += align
    return best if best is not None else n


# ----------------------------- Pallas kernels --------------------------------
def _mm_bias_act_kernel(x_ref, w_ref, b_ref, o_ref, *, relu):
    acc = jnp.dot(x_ref[...], w_ref[...], preferred_element_type=jnp.float32)
    acc = acc + b_ref[...]
    if relu:
        acc = jnp.maximum(acc, 0.0)
    o_ref[...] = acc.astype(o_ref.dtype)


def _conv3x3_kernel(x_ref, w_ref, b_ref, o_ref, *, relu):
    """3x3 stride-1 conv on one row-chunk.
    x_ref: (1, H+2, W+2, Cin) bf16 (full padded image, revisited across chunks)
    w_ref: (3, 3, Cin, Cout) bf16;  b_ref: (1, Cout) f32
    o_ref: (1, rh, W, Cout) bf16/f32 (rows of this chunk)."""
    rh, wo, cout = o_ref.shape[1], o_ref.shape[2], o_ref.shape[3]
    cin = x_ref.shape[3]
    row0 = pl.program_id(1) * rh
    acc = None
    for dy in range(3):
        for dx in range(3):
            tap = x_ref[0, pl.ds(row0 + dy, rh), pl.ds(dx, wo), :]
            d = jnp.dot(tap.reshape(rh * wo, cin), w_ref[dy, dx],
                        preferred_element_type=jnp.float32)
            acc = d if acc is None else acc + d
    acc = acc + b_ref[...]
    if relu:
        acc = jnp.maximum(acc, 0.0)
    o_ref[0] = acc.reshape(rh, wo, cout).astype(o_ref.dtype)


def _reg2d_fused_kernel(x_ref, w0_ref, b0_ref, w1_ref, b1_ref, o_ref, inter_ref):
    """Fused (G -> REG_CHANNEL, ReLU) -> (REG_CHANNEL -> 1) 3x3 conv stack.
    x_ref: (1, H+4, Wi8+2, G) bf16 (full padded slice, revisited)
    inter_ref: VMEM scratch (rh+2, Wi8, mid) f32 (intermediate never hits HBM)
    o_ref: (1, rh, W) f32 -- lane-dense store (no trailing size-1 channel)."""
    rh, wo = o_ref.shape[1], o_ref.shape[2]
    wi8, mid = inter_ref.shape[1], inter_ref.shape[2]
    g = x_ref.shape[3]
    row0 = pl.program_id(1) * rh

    # conv1: G -> mid over (rh+2, Wi8) halo'd positions, batched matmuls.
    first = True
    for dy in range(3):
        for dx in range(3):
            tap = x_ref[0, pl.ds(row0 + dy, rh + 2), pl.ds(dx, wi8), :]
            d = jnp.dot(tap.reshape((rh + 2) * wi8, g), w0_ref[dy, dx],
                        preferred_element_type=jnp.float32)
            d = d.reshape(rh + 2, wi8, mid)
            if first:
                inter_ref[...] = d
                first = False
            else:
                inter_ref[...] += d
    inter_ref[...] = jnp.maximum(inter_ref[...] + b0_ref[...], 0.0)

    # conv2: mid -> 1 as a VPU weighted channel sum (N=1 matmul avoided).
    acc = None
    for dy in range(3):
        for dx in range(3):
            tap = inter_ref[dy:dy + rh, dx:dx + wo, :]
            contrib = tap * w1_ref[dy, dx]
            acc = contrib if acc is None else acc + contrib
    o_ref[0] = jnp.sum(acc, axis=-1) + b1_ref[...]


def _costvol_kernel(r_ref, s_ref, sel_ref, o_ref, *, scale):
    """Group correlation for one pixel tile.  Depth hypotheses and source views
    are folded into the kernel body: reference tile reused from VMEM.
    r_ref: (1, T, C) bf16;  s_ref: (Vs, 1, D, T, C) bf16;  sel_ref: (C, G) bf16
    o_ref: (1, D, T, G) bf16."""
    n_src, depth = s_ref.shape[0], s_ref.shape[2]
    r = r_ref[0]
    for d in range(depth):
        acc = None
        for v in range(n_src):
            prod = r * s_ref[v, 0, d]                 # bf16 VPU product
            corr = jnp.dot(prod, sel_ref[...],
                           preferred_element_type=jnp.float32)
            acc = corr if acc is None else acc + corr
        o_ref[0, d] = (acc * scale).astype(o_ref.dtype)


def _softmax_regress_kernel(c_ref, h_ref, d_ref, p_ref):
    """c_ref/h_ref: (1, D, T) f32, depth on sublanes, pixels on lanes.
    d_ref/p_ref: (1, 1, T) f32 lane-dense outputs."""
    c = c_ref[0]
    h = h_ref[0]
    m = jnp.max(c, axis=0, keepdims=True)
    e = jnp.exp(c - m)
    denom = jnp.sum(e, axis=0, keepdims=True)
    prob = e * pl.reciprocal(denom, approx=True)
    d_ref[0] = jnp.sum(prob * h, axis=0, keepdims=True)
    # TODO(synk): MVSNet-style 4-neighbourhood probability sum around argmax is
    # simplified to max-probability confidence.
    p_ref[0] = jnp.max(prob, axis=0, keepdims=True)


# --------------------------- Pallas call wrappers -----------------------------
def pallas_matmul_bias(x, w, b, relu, out_dtype=jnp.bfloat16):
    """x: (M, K), w: (K, N), b: (N,) -> (M, N).  bf16 MXU, f32 accumulation."""
    M, K = x.shape
    N = w.shape[1]
    tm = M if M <= _ROW_CAP else _ROW_CAP
    pad = (-M) % tm
    xb = x.astype(jnp.bfloat16)
    if pad:
        xb = jnp.pad(xb, ((0, pad), (0, 0)))
    Mp = M + pad
    out = pl.pallas_call(
        functools.partial(_mm_bias_act_kernel, relu=relu),
        out_shape=jax.ShapeDtypeStruct((Mp, N), out_dtype),
        grid=(Mp // tm,),
        in_specs=[pl.BlockSpec((tm, K), lambda i: (i, 0)),
                  pl.BlockSpec((K, N), lambda i: (0, 0)),
                  pl.BlockSpec((1, N), lambda i: (0, 0))],
        out_specs=pl.BlockSpec((tm, N), lambda i: (i, 0)),
        compiler_params=pltpu.CompilerParams(
            dimension_semantics=("parallel",)),
    )(xb, w.astype(jnp.bfloat16), b.reshape(1, N).astype(jnp.float32))
    return out[:M] if pad else out


def conv3x3_s1(x, w, b, relu=True, out_dtype=jnp.bfloat16):
    """NHWC 3x3 stride-1 'same' conv.  Full padded image is the (revisited)
    input block; the grid selects output row-chunks (no HBM halo duplication)."""
    B, H, W, Cin = x.shape
    Cout = w.shape[-1]
    assert W % 8 == 0, "lane-friendly in-kernel reshape requires W % 8 == 0"
    xp = jnp.pad(x.astype(jnp.bfloat16), ((0, 0), (1, 1), (1, 1), (0, 0)))
    rh = _pick_chunk_rows(H, W)
    nr = H // rh
    out = pl.pallas_call(
        functools.partial(_conv3x3_kernel, relu=relu),
        out_shape=jax.ShapeDtypeStruct((B, H, W, Cout), out_dtype),
        grid=(B, nr),
        in_specs=[pl.BlockSpec((1, H + 2, W + 2, Cin), lambda bi, r: (bi, 0, 0, 0)),
                  pl.BlockSpec((3, 3, Cin, Cout), lambda bi, r: (0, 0, 0, 0)),
                  pl.BlockSpec((1, Cout), lambda bi, r: (0, 0))],
        out_specs=pl.BlockSpec((1, rh, W, Cout), lambda bi, r: (bi, r, 0, 0)),
        compiler_params=pltpu.CompilerParams(
            dimension_semantics=("parallel", "parallel")),
    )(xp, w.astype(jnp.bfloat16), b.reshape(1, Cout).astype(jnp.float32))
    return out


def conv3x3_s2(x, w, b, relu=True):
    """NHWC 3x3 stride-2 conv: bf16 strided taps at output resolution + a
    row-tiled matmul+bias(+ReLU) kernel.
    TODO(synk): in-kernel strided tap extraction would avoid the bf16 im2col
    round trip entirely; kept in XLA for simplicity."""
    B, H, W, Cin = x.shape
    Cout = w.shape[-1]
    Ho, Wo = (H + 1) // 2, (W + 1) // 2
    xp = jnp.pad(x.astype(jnp.bfloat16), ((0, 0), (1, 1), (1, 1), (0, 0)))
    patches = jnp.concatenate(
        [xp[:, dy:dy + 2 * Ho:2, dx:dx + 2 * Wo:2, :]
         for dy in range(3) for dx in range(3)], axis=-1)
    out = pallas_matmul_bias(patches.reshape(-1, 9 * Cin),
                             w.reshape(9 * Cin, Cout), b, relu)
    return out.reshape(B, Ho, Wo, Cout)


def conv1x1(x, w, b, relu=False):
    B, H, W, Cin = x.shape
    Cout = w.shape[-1]
    out = pallas_matmul_bias(x.reshape(-1, Cin), w.reshape(Cin, Cout), b, relu)
    return out.reshape(B, H, W, Cout)


def cost_volume(ref_feat, warped, G):
    """ref_feat: (B, HW, C) bf16; warped: (Vs, B, D, HW, C) bf16
    -> group-correlation cost volume (B, D, HW, G) bf16 averaged over views."""
    B, HW, C = ref_feat.shape
    Vs, D = warped.shape[0], warped.shape[2]
    assert C % G == 0, "feature channels must be divisible by correlation groups"
    gs = C // G
    sel = (jnp.arange(C)[:, None] // gs ==
           jnp.arange(G)[None, :]).astype(jnp.bfloat16)
    t = _largest_divisor(HW, _LANE_CAP, 8)
    nt = HW // t
    out = pl.pallas_call(
        functools.partial(_costvol_kernel, scale=1.0 / (gs * Vs)),
        out_shape=jax.ShapeDtypeStruct((B, D, HW, G), jnp.bfloat16),
        grid=(B, nt),
        in_specs=[
            pl.BlockSpec((1, t, C), lambda b, i: (b, i, 0)),
            pl.BlockSpec((Vs, 1, D, t, C), lambda b, i: (0, b, 0, i, 0)),
            pl.BlockSpec((C, G), lambda b, i: (0, 0)),
        ],
        out_specs=pl.BlockSpec((1, D, t, G), lambda b, i: (b, 0, i, 0)),
        compiler_params=pltpu.CompilerParams(
            dimension_semantics=("parallel", "parallel")),
    )(ref_feat.astype(jnp.bfloat16), warped.astype(jnp.bfloat16), sel)
    return out


def reg2d_fused(cor, H, W, p):
    """cor: (B, D, HW, G) bf16 -> (B, D, HW) f32 regularized matching cost.
    TODO(synk): reg2d_hybrid swin-transformer aggregation replaced by a fused
    per-depth-slice 2-conv stack (source of reg2d_hybrid not provided)."""
    B, D, HW, G = cor.shape
    mid = p['c0_w'].shape[-1]
    x = cor.reshape(B * D, H, W, G)
    wi8 = ((W + 2 + 7) // 8) * 8                   # intermediate width, 8-aligned
    xp = jnp.pad(x, ((0, 0), (2, 2), (2, wi8 - W), (0, 0)))
    rh = _pick_chunk_rows(H, W)
    nr = H // rh
    out = pl.pallas_call(
        _reg2d_fused_kernel,
        out_shape=jax.ShapeDtypeStruct((B * D, H, W), jnp.float32),
        grid=(B * D, nr),
        in_specs=[pl.BlockSpec((1, H + 4, wi8 + 2, G), lambda n, r: (n, 0, 0, 0)),
                  pl.BlockSpec((3, 3, G, mid), lambda n, r: (0, 0, 0, 0)),
                  pl.BlockSpec((1, mid), lambda n, r: (0, 0)),
                  pl.BlockSpec((3, 3, mid), lambda n, r: (0, 0, 0)),
                  pl.BlockSpec((1, 1), lambda n, r: (0, 0))],
        out_specs=pl.BlockSpec((1, rh, W), lambda n, r: (n, r, 0)),
        scratch_shapes=[pltpu.VMEM((rh + 2, wi8, mid), jnp.float32)],
        compiler_params=pltpu.CompilerParams(
            dimension_semantics=("parallel", "parallel")),
    )(xp, p['c0_w'].astype(jnp.bfloat16),
      p['c0_b'].reshape(1, mid).astype(jnp.float32),
      p['c1_w'].reshape(3, 3, mid).astype(jnp.float32),
      p['c1_b'].reshape(1, 1).astype(jnp.float32))
    return out.reshape(B, D, HW)


def softmax_depth_regression(cost, hypo, H, W):
    """cost, hypo: (B, D, HW) f32 -> depth (B,H,W), confidence (B,H,W)."""
    B, D, HW = cost.shape
    t = _largest_divisor(HW, _LANE_CAP, 128)
    nt = HW // t
    depth, conf = pl.pallas_call(
        _softmax_regress_kernel,
        out_shape=(jax.ShapeDtypeStruct((B, 1, HW), jnp.float32),
                   jax.ShapeDtypeStruct((B, 1, HW), jnp.float32)),
        grid=(B, nt),
        in_specs=[pl.BlockSpec((1, D, t), lambda b, i: (b, 0, i)),
                  pl.BlockSpec((1, D, t), lambda b, i: (b, 0, i))],
        out_specs=(pl.BlockSpec((1, 1, t), lambda b, i: (b, 0, i)),
                   pl.BlockSpec((1, 1, t), lambda b, i: (b, 0, i))),
        compiler_params=pltpu.CompilerParams(
            dimension_semantics=("parallel", "parallel")),
    )(cost, hypo)
    return depth.reshape(B, H, W), conf.reshape(B, H, W)


# ------------------------------- JAX glue ------------------------------------
def upsample2(x):
    B, H, W, C = x.shape
    return jax.image.resize(x, (B, 2 * H, 2 * W, C), method="nearest")


@jax.jit
def homo_warp(src_feat, src_proj, ref_proj, depth_hypo):
    """src_feat: (B,H,W,C) NHWC bf16; projs: (B,4,4); depth_hypo: (B,D,H,W)
    -> warped source features (B, D, H*W, C) bf16.  Bilinear gather kept in XLA."""
    B, H, W, C = src_feat.shape
    D = depth_hypo.shape[1]
    proj = jnp.einsum('bij,bjk->bik', src_proj, jnp.linalg.inv(ref_proj))
    rot = proj[:, :3, :3]
    trans = proj[:, :3, 3]
    ys, xs = jnp.meshgrid(jnp.arange(H, dtype=jnp.float32),
                          jnp.arange(W, dtype=jnp.float32), indexing='ij')
    grid = jnp.stack([xs.ravel(), ys.ravel(),
                      jnp.ones(H * W, jnp.float32)], axis=0)         # (3, HW)
    rot_grid = jnp.einsum('bij,jn->bin', rot, grid)                   # (B,3,HW)
    d = depth_hypo.reshape(B, D, 1, H * W)
    pts = rot_grid[:, None] * d + trans[:, None, :, None]             # (B,D,3,HW)
    z = jnp.maximum(pts[:, :, 2], 1e-6)
    px = pts[:, :, 0] / z
    py = pts[:, :, 1] / z

    x0 = jnp.floor(px)
    y0 = jnp.floor(py)
    x1 = x0 + 1.0
    y1 = y0 + 1.0
    wx = px - x0
    wy = py - y0

    def gather(feat, yy, xx):
        valid = ((xx >= 0) & (xx <= W - 1) &
                 (yy >= 0) & (yy <= H - 1)).astype(jnp.float32)
        xi = jnp.clip(xx, 0, W - 1).astype(jnp.int32)
        yi = jnp.clip(yy, 0, H - 1).astype(jnp.int32)
        return feat[yi, xi].astype(jnp.float32) * valid[..., None]

    def per_batch(feat, x0b, x1b, y0b, y1b, wxb, wyb):
        v00 = gather(feat, y0b, x0b)
        v01 = gather(feat, y0b, x1b)
        v10 = gather(feat, y1b, x0b)
        v11 = gather(feat, y1b, x1b)
        return (v00 * ((1 - wxb) * (1 - wyb))[..., None]
                + v01 * (wxb * (1 - wyb))[..., None]
                + v10 * ((1 - wxb) * wyb)[..., None]
                + v11 * (wxb * wyb)[..., None])

    out = jax.vmap(per_batch)(src_feat, x0, x1, y0, y1, wx, wy)       # (B,D,HW,C)
    return out.astype(jnp.bfloat16)


def init_range(depth_values, ndepth, B, H, W):
    dmin = depth_values[:, 0]
    dmax = depth_values[:, -1]
    itv = (dmax - dmin) / (ndepth - 1)
    hypo = dmin[:, None] + jnp.arange(ndepth, dtype=jnp.float32)[None] * itv[:, None]
    return jnp.broadcast_to(hypo[:, :, None, None], (B, ndepth, H, W))


def schedule_range(cur_depth, ndepth, depth_interval, H, W):
    B = cur_depth.shape[0]
    cur_up = jax.image.resize(cur_depth, (B, H, W), method="bilinear")
    offs = (jnp.arange(ndepth, dtype=jnp.float32) - ndepth / 2.0)
    return (cur_up[:, None] +
            offs[None, :, None, None] * depth_interval[:, None, None, None])


def make_proj(stage_proj_view):
    """stage_proj_view: (B, 2, 4, 4) -> intrinsics @ extrinsics (B,4,4)."""
    return jnp.einsum('bij,bjk->bik', stage_proj_view[:, 1], stage_proj_view[:, 0])


# ------------------------------- sub-nets ------------------------------------
def fpn_forward(p, img):
    """img: (B,H,W,3) NHWC -> dict stage1(/8)..stage4(/1), channels FPN_OUT_CH.
    All feature maps stored as bf16."""
    c0 = conv3x3_s1(img, p['conv0_w'], p['conv0_b'], relu=True)
    c1 = conv3x3_s2(c0, p['conv1_w'], p['conv1_b'], relu=True)
    c2 = conv3x3_s2(c1, p['conv2_w'], p['conv2_b'], relu=True)
    c3 = conv3x3_s2(c2, p['conv3_w'], p['conv3_b'], relu=True)
    inner3 = c3
    inner2 = conv1x1(c2, p['lat2_w'], p['lat2_b']) + upsample2(inner3)
    inner1 = conv1x1(c1, p['lat1_w'], p['lat1_b']) + upsample2(inner2)
    inner0 = conv1x1(c0, p['lat0_w'], p['lat0_b']) + upsample2(inner1)
    return {
        'stage1': conv3x3_s1(inner3, p['sm1_w'], p['sm1_b'], relu=False),
        'stage2': conv3x3_s1(inner2, p['sm2_w'], p['sm2_b'], relu=False),
        'stage3': conv3x3_s1(inner1, p['sm3_w'], p['sm3_b'], relu=False),
        'stage4': conv3x3_s1(inner0, p['sm4_w'], p['sm4_b'], relu=False),
    }


def stagenet_forward(feats_stage, projs, depth_hypo, reg_params, group_dim):
    B, H, W, C = feats_stage[0].shape
    D = depth_hypo.shape[1]
    ref_flat = feats_stage[0].reshape(B, H * W, C)
    warped = jnp.stack(
        [homo_warp(src, projs[vi + 1], projs[0], depth_hypo)
         for vi, src in enumerate(feats_stage[1:])], axis=0)       # (Vs,B,D,HW,C)
    # TODO(synk): attn_fuse_d pixel-wise view-weight attention omitted; views
    # are mean-aggregated inside the fused cost-volume kernel.
    cor = cost_volume(ref_flat, warped, group_dim)                  # (B,D,HW,G)
    cost = reg2d_fused(cor, H, W, reg_params)                       # (B,D,HW)
    depth, conf = softmax_depth_regression(
        cost, depth_hypo.reshape(B, D, H * W), H, W)
    return {'depth': depth,
            'photometric_confidence': conf,
            'depth_hypo': depth_hypo}


# ------------------------------ parameters -----------------------------------
def _conv_param(key, kh, kw, cin, cout):
    w = jax.random.normal(key, (kh, kw, cin, cout), jnp.float32) * \
        np.sqrt(2.0 / (kh * kw * cin))
    b = jnp.zeros((cout,), jnp.float32)
    return w, b


def init_params(key):
    keys = iter(jax.random.split(key, 64))
    fpn = {}

    def add(name, kh, kw, ci, co):
        w, b = _conv_param(next(keys), kh, kw, ci, co)
        fpn[name + '_w'] = w
        fpn[name + '_b'] = b

    add('conv0', 3, 3, 3, 8)
    add('conv1', 3, 3, 8, 8)
    add('conv2', 3, 3, 8, 16)
    add('conv3', 3, 3, 16, 32)
    add('lat2', 1, 1, 16, 32)
    add('lat1', 1, 1, 8, 32)
    add('lat0', 1, 1, 8, 32)
    add('sm1', 3, 3, 32, FPN_OUT_CH[0])
    add('sm2', 3, 3, 32, FPN_OUT_CH[1])
    add('sm3', 3, 3, 32, FPN_OUT_CH[2])
    add('sm4', 3, 3, 32, FPN_OUT_CH[3])

    reg = []
    for G in GROUP_COR_DIM:
        w0, b0 = _conv_param(next(keys), 3, 3, G, REG_CHANNEL)
        w1, b1 = _conv_param(next(keys), 3, 3, REG_CHANNEL, 1)
        reg.append({'c0_w': w0, 'c0_b': b0, 'c1_w': w1, 'c1_b': b1})
    return {'fpn': fpn, 'reg': reg}


# --------------------------------- forward -----------------------------------
def mvs4net_forward(params, imgs, proj_matrices, depth_values):
    """imgs: list of (B,3,H,W) NCHW; proj_matrices: dict stageX -> (B,V,2,4,4);
    depth_values: (B, Ndepth_total)."""
    nviews = len(imgs)
    feats = [fpn_forward(params['fpn'], jnp.transpose(img, (0, 2, 3, 1)))
             for img in imgs]

    depth_min = depth_values[:, 0]
    depth_max = depth_values[:, -1]

    outputs = {}
    prev_stage = None
    for s in range(NUM_STAGE):
        stage = 'stage{}'.format(s + 1)
        feats_stage = [f[stage] for f in feats]
        B, H, W, _ = feats_stage[0].shape
        D = STAGE_SPLITS[s]

        if s == 0:
            depth_hypo = init_range(depth_values, D, B, H, W)
        else:
            depth_itv = (depth_max - depth_min) / 192.0 * DEPTH_ITV_RATIO[s]
            depth_hypo = schedule_range(prev_stage['depth'], D, depth_itv, H, W)

        # TODO(synk): pe=True branch (get_position_3d positional encoding for
        # the hybrid transformer reg net) omitted; its source is not provided.
        projs = [make_proj(proj_matrices[stage][:, v]) for v in range(nviews)]
        out_stage = stagenet_forward(feats_stage, projs, depth_hypo,
                                     params['reg'][s], GROUP_COR_DIM[s])
        outputs[stage] = out_stage
        outputs.update(out_stage)
        prev_stage = out_stage
    return outputs


def build_proj_matrices(B, H, W):
    f = 40.0
    E_ref = jnp.eye(4, dtype=jnp.float32)
    E_src = jnp.eye(4, dtype=jnp.float32).at[0, 3].set(0.5)
    pm = {}
    for s in range(NUM_STAGE):
        scale = 1.0 / (2 ** (3 - s))
        K = jnp.eye(4, dtype=jnp.float32)
        K = K.at[0, 0].set(f * scale).at[1, 1].set(f * scale)
        K = K.at[0, 2].set(W * scale / 2.0).at[1, 2].set(H * scale / 2.0)
        view = jnp.stack([jnp.stack([E_ref, K]), jnp.stack([E_src, K])])  # (2,2,4,4)
        pm['stage{}'.format(s + 1)] = jnp.broadcast_to(view, (B, 2, 2, 4, 4))
    return pm


# ----------------------------------- main -------------------------------------
if __name__ == "__main__":
    key = jax.random.PRNGKey(0)
    pkey, ik1, ik2 = jax.random.split(key, 3)

    params = init_params(pkey)

    B, H, W = 1, 64, 64
    imgs = [jax.random.uniform(ik1, (B, 3, H, W), jnp.float32),
            jax.random.uniform(ik2, (B, 3, H, W), jnp.float32)]
    depth_values = jnp.broadcast_to(
        jnp.linspace(4.0, 8.0, 192, dtype=jnp.float32), (B, 192))
    proj_matrices = build_proj_matrices(B, H, W)

    outputs = mvs4net_forward(params, imgs, proj_matrices, depth_values)

    jax.block_until_ready(outputs['depth'])
    jax.block_until_ready(outputs['photometric_confidence'])
    assert outputs['depth'].shape == (B, H, W)
    assert outputs['stage1']['depth'].shape == (B, H // 8, W // 8)
    assert bool(jnp.all(jnp.isfinite(outputs['depth'])))
    assert bool(jnp.all(jnp.isfinite(outputs['photometric_confidence'])))
    print("KERNEL_OK")
</pallas_src>

<mosaic_0001>
module attributes {stable_mosaic.version = 11 : i64} {
  func.func @_conv3x3_kernel(%arg0: i32, %arg1: i32, %arg2: memref<1x66x66x3xbf16, #tpu.memory_space<vmem>>, %arg3: memref<3x3x3x8xbf16, #tpu.memory_space<vmem>>, %arg4: memref<1x8xf32, #tpu.memory_space<vmem>>, %arg5: memref<1x8x64x8xbf16, #tpu.memory_space<vmem>>) attributes {dimension_semantics = [#tpu.dimension_semantics<parallel>, #tpu.dimension_semantics<parallel>], iteration_bounds = array<i64: 1, 8>, scalar_prefetch = 0 : i64, scratch_operands = 0 : i64, tpu.core_type = #tpu.core_type<tc>, window_params = [{transform_indices = @transform_0, window_bounds = array<i64: 1, 66, 66, 3>}, {pipeline_mode = #tpu.pipeline_mode<synchronous>, transform_indices = @transform_1, window_bounds = array<i64: 3, 3, 3, 8>}, {pipeline_mode = #tpu.pipeline_mode<synchronous>, transform_indices = @transform_2, window_bounds = array<i64: 1, 8>}, {transform_indices = @transform_3, window_bounds = array<i64: 1, 8, 64, 8>}]} {
    %c8_i32 = arith.constant 8 : i32
    %0 = arith.muli %arg1, %c8_i32 : i32
    %c0_i32 = arith.constant 0 : i32
    %1 = arith.addi %0, %c0_i32 : i32
    %c0 = arith.constant 0 : index
    %2 = arith.index_cast %1 : i32 to index
    %c0_0 = arith.constant 0 : index
    %c0_1 = arith.constant 0 : index
    %3 = vector.load %arg2[%c0, %2, %c0_0, %c0_1] : memref<1x66x66x3xbf16, #tpu.memory_space<vmem>>, vector<1x8x64x3xbf16>
    %4 = vector.shape_cast %3 : vector<1x8x64x3xbf16> to vector<8x64x3xbf16>
    %5 = vector.shape_cast %4 : vector<8x64x3xbf16> to vector<512x3xbf16>
    %c0_2 = arith.constant 0 : index
    %c0_3 = arith.constant 0 : index
    %c0_4 = arith.constant 0 : index
    %c0_5 = arith.constant 0 : index
    %6 = vector.load %arg3[%c0_2, %c0_3, %c0_4, %c0_5] : memref<3x3x3x8xbf16, #tpu.memory_space<vmem>>, vector<1x1x3x8xbf16>
    %7 = vector.shape_cast %6 : vector<1x1x3x8xbf16> to vector<3x8xbf16>
    %cst = arith.constant dense<0.000000e+00> : vector<512x8xf32>
    %8 = tpu.matmul %5, %7, %cst {dimension_numbers = #tpu.dot_dimension_numbers<[1], [0], [0], [1], [0, 0, 1, 1], [], []>} : vector<512x3xbf16>, vector<3x8xbf16>, vector<512x8xf32> -> vector<512x8xf32>
    %c0_i32_6 = arith.constant 0 : i32
    %9 = arith.addi %0, %c0_i32_6 : i32
    %c0_7 = arith.constant 0 : index
    %10 = arith.index_cast %9 : i32 to index
    %c1 = arith.constant 1 : index
    %c0_8 = arith.constant 0 : index
    %11 = vector.load %arg2[%c0_7, %10, %c1, %c0_8] : memref<1x66x66x3xbf16, #tpu.memory_space<vmem>>, vector<1x8x64x3xbf16>
    %12 = vector.shape_cast %11 : vector<1x8x64x3xbf16> to vector<8x64x3xbf16>
    %13 = vector.shape_cast %12 : vector<8x64x3xbf16> to vector<512x3xbf16>
    %c0_9 = arith.constant 0 : index
    %c1_10 = arith.constant 1 : index
    %c0_11 = arith.constant 0 : index
    %c0_12 = arith.constant 0 : index
    %14 = vector.load %arg3[%c0_9, %c1_10, %c0_11, %c0_12] : memref<3x3x3x8xbf16, #tpu.memory_space<vmem>>, vector<1x1x3x8xbf16>
    %15 = vector.shape_cast %14 : vector<1x1x3x8xbf16> to vector<3x8xbf16>
    %cst_13 = arith.constant dense<0.000000e+00> : vector<512x8xf32>
    %16 = tpu.matmul %13, %15, %cst_13 {dimension_numbers = #tpu.dot_dimension_numbers<[1], [0], [0], [1], [0, 0, 1, 1], [], []>} : vector<512x3xbf16>, vector<3x8xbf16>, vector<512x8xf32> -> vector<512x8xf32>
    %17 = arith.addf %8, %16 : vector<512x8xf32>
    %c0_i32_14 = arith.constant 0 : i32
    %18 = arith.addi %0, %c0_i32_14 : i32
    %c0_15 = arith.constant 0 : index
    %19 = arith.index_cast %18 : i32 to index
    %c2 = arith.constant 2 : index
    %c0_16 = arith.constant 0 : index
    %20 = vector.load %arg2[%c0_15, %19, %c2, %c0_16] : memref<1x66x66x3xbf16, #tpu.memory_space<vmem>>, vector<1x8x64x3xbf16>
    %21 = vector.shape_cast %20 : vector<1x8x64x3xbf16> to vector<8x64x3xbf16>
    %22 = vector.shape_cast %21 : vector<8x64x3xbf16> to vector<512x3xbf16>
    %c0_17 = arith.constant 0 : index
    %c2_18 = arith.constant 2 : index
    %c0_19 = arith.constant 0 : index
    %c0_20 = arith.constant 0 : index
    %23 = vector.load %arg3[%c0_17, %c2_18, %c0_19, %c0_20] : memref<3x3x3x8xbf16, #tpu.memory_space<vmem>>, vector<1x1x3x8xbf16>
    %24 = vector.shape_cast %23 : vector<1x1x3x8xbf16> to vector<3x8xbf16>
    %cst_21 = arith.constant dense<0.000000e+00> : vector<512x8xf32>
    %25 = tpu.matmul %22, %24, %cst_21 {dimension_numbers = #tpu.dot_dimension_numbers<[1], [0], [0], [1], [0, 0, 1, 1], [], []>} : vector<512x3xbf16>, vector<3x8xbf16>, vector<512x8xf32> -> vector<512x8xf32>
    %26 = arith.addf %17, %25 : vector<512x8xf32>
    %c1_i32 = arith.constant 1 : i32
    %27 = arith.addi %0, %c1_i32 : i32
    %c0_22 = arith.constant 0 : index
    %28 = arith.index_cast %27 : i32 to index
    %c0_23 = arith.constant 0 : index
    %c0_24 = arith.constant 0 : index
    %29 = vector.load %arg2[%c0_22, %28, %c0_23, %c0_24] : memref<1x66x66x3xbf16, #tpu.memory_space<vmem>>, vector<1x8x64x3xbf16>
    %30 = vector.shape_cast %29 : vector<1x8x64x3xbf16> to vector<8x64x3xbf16>
    %31 = vector.shape_cast %30 : vector<8x64x3xbf16> to vector<512x3xbf16>
    %c1_25 = arith.constant 1 : index
    %c0_26 = arith.constant 0 : index
    %c0_27 = arith.constant 0 : index
    %c0_28 = arith.constant 0 : index
    %32 = vector.load %arg3[%c1_25, %c0_26, %c0_27, %c0_28] : memref<3x3x3x8xbf16, #tpu.memory_space<vmem>>, vector<1x1x3x8xbf16>
    %33 = vector.shape_cast %32 : vector<1x1x3x8xbf16> to vector<3x8xbf16>
    %cst_29 = arith.constant dense<0.000000e+00> : vector<512x8xf32>
    %34 = tpu.matmul %31, %33, %cst_29 {dimension_numbers = #tpu.dot_dimension_numbers<[1], [0], [0], [1], [0, 0, 1, 1], [], []>} : vector<512x3xbf16>, vector<3x8xbf16>, vector<512x8xf32> -> vector<512x8xf32>
    %35 = arith.addf %26, %34 : vector<512x8xf32>
    %c1_i32_30 = arith.constant 1 : i32
    %36 = arith.addi %0, %c1_i32_30 : i32
    %c0_31 = arith.constant 0 : index
    %37 = arith.index_cast %36 : i32 to index
    %c1_32 = arith.constant 1 : index
    %c0_33 = arith.constant 0 : index
    %38 = vector.load %arg2[%c0_31, %37, %c1_32, %c0_33] : memref<1x66x66x3xbf16, #tpu.memory_space<vmem>>, vector<1x8x64x3xbf16>
    %39 = vector.shape_cast %38 : vector<1x8x64x3xbf16> to vector<8x64x3xbf16>
    %40 = vector.shape_cast %39 : vector<8x64x3xbf16> to vector<512x3xbf16>
    %c1_34 = arith.constant 1 : index
    %c1_35 = arith.constant 1 : index
    %c0_36 = arith.constant 0 : index
    %c0_37 = arith.constant 0 : index
    %41 = vector.load %arg3[%c1_34, %c1_35, %c0_36, %c0_37] : memref<3x3x3x8xbf16, #tpu.memory_space<vmem>>, vector<1x1x3x8xbf16>
    %42 = vector.shape_cast %41 : vector<1x1x3x8xbf16> to vector<3x8xbf16>
    %cst_38 = arith.constant dense<0.000000e+00> : vector<512x8xf32>
    %43 = tpu.matmul %40, %42, %cst_38 {dimension_numbers = #tpu.dot_dimension_numbers<[1], [0], [0], [1], [0, 0, 1, 1], [], []>} : vector<512x3xbf16>, vector<3x8xbf16>, vector<512x8xf32> -> vector<512x8xf32>
    %44 = arith.addf %35, %43 : vector<512x8xf32>
    %c1_i32_39 = arith.constant 1 : i32
    %45 = arith.addi %0, %c1_i32_39 : i32
    %c0_40 = arith.constant 0 : index
    %46 = arith.index_cast %45 : i32 to index
    %c2_41 = arith.constant 2 : index
    %c0_42 = arith.constant 0 : index
    %47 = vector.load %arg2[%c0_40, %46, %c2_41, %c0_42] : memref<1x66x66x3xbf16, #tpu.memory_space<vmem>>, vector<1x8x64x3xbf16>
    %48 = vector.shape_cast %47 : vector<1x8x64x3xbf16> to vector<8x64x3xbf16>
    %49 = vector.shape_cast %48 : vector<8x64x3xbf16> to vector<512x3xbf16>
    %c1_43 = arith.constant 1 : index
    %c2_44 = arith.constant 2 : index
    %c0_45 = arith.constant 0 : index
    %c0_46 = arith.constant 0 : index
    %50 = vector.load %arg3[%c1_43, %c2_44, %c0_45, %c0_46] : memref<3x3x3x8xbf16, #tpu.memory_space<vmem>>, vector<1x1x3x8xbf16>
    %51 = vector.shape_cast %50 : vector<1x1x3x8xbf16> to vector<3x8xbf16>
    %cst_47 = arith.constant dense<0.000000e+00> : vector<512x8xf32>
    %52 = tpu.matmul %49, %51, %cst_47 {dimension_numbers = #tpu.dot_dimension_numbers<[1], [0], [0], [1], [0, 0, 1, 1], [], []>} : vector<512x3xbf16>, vector<3x8xbf16>, vector<512x8xf32> -> vector<512x8xf32>
    %53 = arith.addf %44, %52 : vector<512x8xf32>
    %c2_i32 = arith.constant 2 : i32
    %54 = arith.addi %0, %c2_i32 : i32
    %c0_48 = arith.constant 0 : index
    %55 = arith.index_cast %54 : i32 to index
    %c0_49 = arith.constant 0 : index
    %c0_50 = arith.constant 0 : index
    %56 = vector.load %arg2[%c0_48, %55, %c0_49, %c0_50] : memref<1x66x66x3xbf16, #tpu.memory_space<vmem>>, vector<1x8x64x3xbf16>
    %57 = vector.shape_cast %56 : vector<1x8x64x3xbf16> to vector<8x64x3xbf16>
    %58 = vector.shape_cast %57 : vector<8x64x3xbf16> to vector<512x3xbf16>
    %c2_51 = arith.constant 2 : index
    %c0_52 = arith.constant 0 : index
    %c0_53 = arith.constant 0 : index
    %c0_54 = arith.constant 0 : index
    %59 = vector.load %arg3[%c2_51, %c0_52, %c0_53, %c0_54] : memref<3x3x3x8xbf16, #tpu.memory_space<vmem>>, vector<1x1x3x8xbf16>
    %60 = vector.shape_cast %59 : vector<1x1x3x8xbf16> to vector<3x8xbf16>
    %cst_55 = arith.constant dense<0.000000e+00> : vector<512x8xf32>
    %61 = tpu.matmul %58, %60, %cst_55 {dimension_numbers = #tpu.dot_dimension_numbers<[1], [0], [0], [1], [0, 0, 1, 1], [], []>} : vector<512x3xbf16>, vector<3x8xbf16>, vector<512x8xf32> -> vector<512x8xf32>
    %62 = arith.addf %53, %61 : vector<512x8xf32>
    %c2_i32_56 = arith.constant 2 : i32
    %63 = arith.addi %0, %c2_i32_56 : i32
    %c0_57 = arith.constant 0 : index
    %64 = arith.index_cast %63 : i32 to index
    %c1_58 = arith.constant 1 : index
    %c0_59 = arith.constant 0 : index
    %65 = vector.load %arg2[%c0_57, %64, %c1_58, %c0_59] : memref<1x66x66x3xbf16, #tpu.memory_space<vmem>>, vector<1x8x64x3xbf16>
    %66 = vector.shape_cast %65 : vector<1x8x64x3xbf16> to vector<8x64x3xbf16>
    %67 = vector.shape_cast %66 : vector<8x64x3xbf16> to vector<512x3xbf16>
    %c2_60 = arith.constant 2 : index
    %c1_61 = arith.constant 1 : index
    %c0_62 = arith.constant 0 : index
    %c0_63 = arith.constant 0 : index
    %68 = vector.load %arg3[%c2_60, %c1_61, %c0_62, %c0_63] : memref<3x3x3x8xbf16, #tpu.memory_space<vmem>>, vector<1x1x3x8xbf16>
    %69 = vector.shape_cast %68 : vector<1x1x3x8xbf16> to vector<3x8xbf16>
    %cst_64 = arith.constant dense<0.000000e+00> : vector<512x8xf32>
    %70 = tpu.matmul %67, %69, %cst_64 {dimension_numbers = #tpu.dot_dimension_numbers<[1], [0], [0], [1], [0, 0, 1, 1], [], []>} : vector<512x3xbf16>, vector<3x8xbf16>, vector<512x8xf32> -> vector<512x8xf32>
    %71 = arith.addf %62, %70 : vector<512x8xf32>
    %c2_i32_65 = arith.constant 2 : i32
    %72 = arith.addi %0, %c2_i32_65 : i32
    %c0_66 = arith.constant 0 : index
    %73 = arith.index_cast %72 : i32 to index
    %c2_67 = arith.constant 2 : index
    %c0_68 = arith.constant 0 : index
    %74 = vector.load %arg2[%c0_66, %73, %c2_67, %c0_68] : memref<1x66x66x3xbf16, #tpu.memory_space<vmem>>, vector<1x8x64x3xbf16>
    %75 = vector.shape_cast %74 : vector<1x8x64x3xbf16> to vector<8x64x3xbf16>
    %76 = vector.shape_cast %75 : vector<8x64x3xbf16> to vector<512x3xbf16>
    %c2_69 = arith.constant 2 : index
    %c2_70 = arith.constant 2 : index
    %c0_71 = arith.constant 0 : index
    %c0_72 = arith.constant 0 : index
    %77 = vector.load %arg3[%c2_69, %c2_70, %c0_71, %c0_72] : memref<3x3x3x8xbf16, #tpu.memory_space<vmem>>, vector<1x1x3x8xbf16>
    %78 = vector.shape_cast %77 : vector<1x1x3x8xbf16> to vector<3x8xbf16>
    %cst_73 = arith.constant dense<0.000000e+00> : vector<512x8xf32>
    %79 = tpu.matmul %76, %78, %cst_73 {dimension_numbers = #tpu.dot_dimension_numbers<[1], [0], [0], [1], [0, 0, 1, 1], [], []>} : vector<512x3xbf16>, vector<3x8xbf16>, vector<512x8xf32> -> vector<512x8xf32>
    %80 = arith.addf %71, %79 : vector<512x8xf32>
    %c0_74 = arith.constant 0 : index
    %c0_75 = arith.constant 0 : index
    %81 = vector.load %arg4[%c0_74, %c0_75] : memref<1x8xf32, #tpu.memory_space<vmem>>, vector<1x8xf32>
    %82 = vector.broadcast %81 : vector<1x8xf32> to vector<512x8xf32>
    %83 = arith.addf %80, %82 : vector<512x8xf32>
    %cst_76 = arith.constant 0.000000e+00 : f32
    %84 = vector.broadcast %cst_76 : f32 to vector<512x8xf32>
    %85 = arith.maximumf %83, %84 : vector<512x8xf32>
    %86 = vector.shape_cast %85 : vector<512x8xf32> to vector<8x64x8xf32>
    %87 = arith.truncf %86 : vector<8x64x8xf32> to vector<8x64x8xbf16>
    %c0_77 = arith.constant 0 : index
    %c0_78 = arith.constant 0 : index
    %c0_79 = arith.constant 0 : index
    %c0_80 = arith.constant 0 : index
    %88 = vector.load %arg5[%c0_77, %c0_78, %c0_79, %c0_80] : memref<1x8x64x8xbf16, #tpu.memory_space<vmem>>, vector<1x8x64x8xbf16>
    %89 = vector.shape_cast %88 : vector<1x8x64x8xbf16> to vector<8x64x8xbf16>
    %90 = vector.shape_cast %87 : vector<8x64x8xbf16> to vector<1x8x64x8xbf16>
    tpu.vector_store %arg5[%c0_77, %c0_78, %c0_79, %c0_80], %90 {strides = array<i32>} : memref<1x8x64x8xbf16, #tpu.memory_space<vmem>>, vector<1x8x64x8xbf16>,
    return
  }
  func.func @transform_0(%arg0: i32, %arg1: i32) -> (i32, i32, i32, i32) {
    %c0_i32 = arith.constant 0 : i32
    %c0_i32_0 = arith.constant 0 : i32
    %c0_i32_1 = arith.constant 0 : i32
    %c0_i32_2 = arith.constant 0 : i32
    return %arg0, %c0_i32, %c0_i32_0, %c0_i32_1 : i32, i32, i32, i32
  }
  func.func @transform_1(%arg0: i32, %arg1: i32) -> (i32, i32, i32, i32) {
    %c0_i32 = arith.constant 0 : i32
    %c0_i32_0 = arith.constant 0 : i32
    %c0_i32_1 = arith.constant 0 : i32
    %c0_i32_2 = arith.constant 0 : i32
    %c0_i32_3 = arith.constant 0 : i32
    return %c0_i32, %c0_i32_0, %c0_i32_1, %c0_i32_2 : i32, i32, i32, i32
  }
  func.func @transform_2(%arg0: i32, %arg1: i32) -> (i32, i32) {
    %c0_i32 = arith.constant 0 : i32
    %c0_i32_0 = arith.constant 0 : i32
    %c0_i32_1 = arith.constant 0 : i32
    return %c0_i32, %c0_i32_0 : i32, i32
  }
  func.func @transform_3(%arg0: i32, %arg1: i32) -> (i32, i32, i32, i32) {
    %c0_i32 = arith.constant 0 : i32
    %c0_i32_0 = arith.constant 0 : i32
    %c0_i32_1 = arith.constant 0 : i32
    return %arg0, %arg1, %c0_i32, %c0_i32_0 : i32, i32, i32, i32
  }
}

</mosaic_0001>

<bundles_post_ra>
// kernel: tpu_custom_call.1
= control target key start
LH: loop header
LB: loop body
LE: loop exit
PB: predicated region body
PF: predicated region fallthrough
CT: control target
= control target key end

     0   :  { %s11742_s12 = smov 0   ;;  %s11744_s13 = smov 0   ;;  %s14728_s0 = inlined_call_operand.vmem [shape: bf16[1,66,66,3], index: 0, kind: input, shape index: {}]   ;;  %s14729_s1 = inlined_call_operand.vmem [shape: bf16[3,3,3,8], index: 1, kind: input, shape index: {}]   ;;  %s14730_s2 = inlined_call_operand.vmem [shape: f32[1,8], index: 2, kind: input, shape index: {}]   ;;  %s14731_s3 = inlined_call_operand.vmem [shape: bf16[1,64,64,8], index: 3, kind: output, shape index: {}]  }
   0x1   :  { %s11746_s14 = smov 0  }
   0x2 LB: > { %s22_s15 = sadd.s32 1, %s11715_s13  ;;  %p8937_p0 = scmp.ge.s32.totalorder %s11719_s14, 1  ;;  %s11719_s14 = sphi %s11746_s14, %s13_s14   ;;  %s11715_s13 = sphi %s11744_s13, %s14758_s13   ;;  %s11711_s12 = sphi %s11742_s12, %s14757_s12  }
   0x3   : > { %p23_p1 = scmp.ge.s32.totalorder %s22_s15, 8  ;;  %p151_p2 = scmp.lt.s32.totalorder %s11719_s14, 9 }
   0x5   : > { %s14760_s15 = smov (%p23_p1, %s22_s15), 0  ;;  %p152_p3 = pnand %p8937_p0, %p151_p2 }
   0x7   : > { %155 = sbr.rel (%p152_p3) target bundleno = 909 (0x38d), region = 32 }
   0xe   : > { %v8944_v0 = vld [vmem:[%s14729_s1 + $0x2] sm:$0x3]  ;;  %vm1144_vm0 = vcmask 1040384   ;;  %vm1145_vm1 = vcmask 1041408   ;;  %s9912_s18 = smul.u32 288, %s11711_s12  ;;  %v11721_v1 = vmov 65535  }
   0xf   : > { %v1146_v2 = vsel %vm1144_vm0, 4294967295, %v11721_v1  ;;  %v9349_v3 = vld [vmem:[%s14729_s1 + $0x8] sm:$0x3]  ;;  %vm274_vm2 = vsmask.f32 3328  ;;  %vm1047_vm4 = vcmask 23552  }
  0x10   : > { %v11769_v4 = vsel %vm1145_vm1, %v1146_v2, 0  ;;  %s11774_s23 = scalar_lea.vmem %s14728_s0, %s9912_s18  ;;  %vm275_vm3 = vsmask.f32 7440  ;;  %v265_v5 = vld [vmem:[%s14729_s1] sm:$0x3]  ;;  %vm2012_vm6 = vcmask 1042432  }
  0x11   : > { %v1149_v6 = vand.u32 %v8944_v0, %v11769_v4  ;;  %v11781_v7 = vand.u32 %v9349_v3, %v11769_v4  ;;  %v201_v8 = vld [vmem:[%s11774_s23] sm:$0xf]  ;;  %v202_v9 = vld [vmem:[%s11774_s23 + $0x4] sm:$0xf]  ;;  %v203_v10 = vld [vmem:[%s11774_s23 + $0x8] sm:$0xf]  ;;  %v11787_v11 = vand.u32 %v11769_v4, %v265_v5 }
  0x12   : > { %v278_v12 = vshrl.u32 %v201_v8, 16  ;;  %v281_v13 = vshll.u32 %v201_v8, 16  ;;  %v287_v14 = vshll.u32 %v202_v9, 16  ;;  %v291_v15 = vshrl.u32 %v202_v9, 16  ;;  %v9277_v18 = vld [vmem:[%s11774_s23 + $0x24] sm:$0xf]  ;;  %vm11803_vm5 = vmor %vm274_vm2, %vm275_vm3 }
  0x13   : > { %10274 = vmatprep.subr.bf16.mxu1 %v1149_v6  ;;  %10538 = vmatprep.subr.bf16.mxu0 %v11781_v7  ;;  %v297_v16 = vshll.u32 %v203_v10, 16  ;;  %v301_v17 = vshrl.u32 %v203_v10, 16  ;;  %v11792_v19 = vld [vmem:[%s11774_s23 + $0x28] sm:$0xf]  ;;  %v11796_v24 = vld [vmem:[%s11774_s23 + $0x2c] sm:$0xf] }
  0x14   : > { %10275 = vmatpush3.bf16.msra.mxu1 %v1149_v6  ;;  %10539 = vmatpush3.bf16.msra.mxu0 %v11781_v7  ;;  %v280_v20 = vrot.slane %v278_v12, 4  ;;  %v283_v21 = vrot.slane %v281_v13, 5  ;;  %v289_v22 = vrot.slane %v287_v14, 5  ;;  %v293_v23 = vrot.slane %v291_v15, 4  ;;  %v204_v42 = vld [vmem:[%s11774_s23 + $0xc] sm:$0xf] }
  0x15   : > { %v299_v25 = vrot.slane %v297_v16, 5  ;;  %v303_v26 = vrot.slane %v301_v17, 4  ;;  %10340 = vmatprep.subr.bf16.mxu1 %v11787_v11  ;;  %v3520_v27 = vshrl.u32 %v9277_v18, 16  ;;  %v3523_v28 = vshll.u32 %v9277_v18, 16  ;;  %v9430_v46 = vld [vmem:[%s14729_s1 + $0xa] sm:$0x3] }
  0x16   : > { %v284_v29 = vor.u32 %v283_v21, %v280_v20  ;;  %v294_v30 = vor.u32 %v293_v23, %v289_v22  ;;  %v3529_v31 = vshll.u32 %v11792_v19, 16  ;;  %v3533_v32 = vshrl.u32 %v11792_v19, 16  ;;  %v205_v51 = vld [vmem:[%s11774_s23 + $0x10] sm:$0xf]  ;;  %v11830_v1 = vld [vmem:[%s11774_s23 + $0x34] sm:$0xf] }
  0x17   : > { %v304_v34 = vor.u32 %v303_v26, %v299_v25  ;;  %v3522_v35 = vrot.slane %v3520_v27, 4  ;;  %v3525_v36 = vrot.slane %v3523_v28, 5  ;;  %v3539_v37 = vshll.u32 %v11796_v24, 16  ;;  %v11823_v60 = vld [vmem:[%s11774_s23 + $0x30] sm:$0xf]  ;;  %s8938_s11 = sshll.u32 %s11711_s12, 3 }
  0x18   : > { %v285_v38 = vrot.slane %v284_v29, 4  ;;  %v295_v39 = vrot.slane %v294_v30, 4  ;;  %v3531_v40 = vrot.slane %v3529_v31, 5  ;;  %v3535_v41 = vrot.slane %v3533_v32, 4  ;;  %v206_v13 = vld [vmem:[%s11774_s23 + $0x14] sm:$0xf] }
  0x19   : > { %v3526_v43 = vor.u32 %v3525_v36, %v3522_v35  ;;  %v3541_v44 = vrot.slane %v3539_v37, 5  ;;  %v3543_v45 = vshrl.u32 %v11796_v24, 16  ;;  %v305_v49 = vrot.slane %v304_v34, 4  ;;  %v9282_v34 = vld [vmem:[%s11774_s23 + $0x38] sm:$0xf]  ;;  %p188_p4 = scmp.lt.s32.totalorder %s8938_s11, 63 }
  0x1a   : > { %v290_v47 = vsel %vm11803_vm5, %v285_v38, %v289_v22  ;;  %v300_v48 = vsel %vm11803_vm5, %v295_v39, %v299_v25  ;;  %v3536_v50 = vor.u32 %v3535_v41, %v3531_v40  ;;  %v4826_v55 = vrot.slane %v11796_v24, 5  ;;  %v207_v22 = vld [vmem:[%s11774_s23 + $0x18] sm:$0xf]  ;;  %v9283_v39 = vld [vmem:[%s11774_s23 + $0x3c] sm:$0xf] }
  0x1b   : > { %v8945_v52 = vcombine.low %v290_v47, %v300_v48  ;;  %v3527_v53 = vrot.slane %v3526_v43, 4  ;;  %v3545_v54 = vrot.slane %v3543_v45, 4  ;;  %v11820_v57 = vand.u32 %v9430_v46, %v11769_v4  ;;  %s14762_s11 = smov (!%p188_p4, %s8938_s11), 63 }
  0x1c   : > { %v3537_v56 = vrot.slane %v3536_v50, 4  ;;  %v307_v58 = vshll.u32 %v204_v42, 16  ;;  %v311_v59 = vshrl.u32 %v204_v42, 16  ;;  %v4823_v63 = vrot.slane %v11792_v19, 5  ;;  %s9911_s18 = sshll.u32 %s14762_s11, 5 }
  0x1d   : > { %10276 = vmatprep.mubr.msk.bf16.mxu1 %vm1047_vm4, %v8945_v52  ;;  %v3532_v61 = vsel %vm11803_vm5, %v3527_v53, %v3531_v40  ;;  %v3546_v62 = vor.u32 %v3545_v54, %v3541_v44  ;;  %v317_v0 = vshll.u32 %v205_v51, 16  ;;  %v11836_v3 = vrot.slane %v4826_v55, 4  ;;  %10604 = vmatprep.subr.bf16.mxu0 %v11820_v57  ;;  %v208_v52 = vld [vmem:[%s11774_s23 + $0x1c] sm:$0xf]  ;;  %s14503_s20 = scalar_lea.vmem %s14731_s3, %s9911_s18 }
  0x1e   : > { %v3542_v2 = vsel %vm11803_vm5, %v3537_v56, %v3541_v44  ;;  %v309_v5 = vrot.slane %v307_v58, 5  ;;  %v313_v6 = vrot.slane %v311_v59, 4  ;;  %v3549_v12 = vshll.u32 %v11823_v60, 16  ;;  %v266_v58 = vld [vmem:[%s11774_s23 + $0x20] sm:$0x1] }
  0x1f   : > { %v3547_v8 = vrot.slane %v3546_v62, 4  ;;  %v9350_v9 = vcombine.low %v3532_v61, %v3542_v2  ;;  %v319_v10 = vrot.slane %v317_v0, 5  ;;  %v3553_v16 = vshrl.u32 %v11823_v60, 16 }
  0x20   : > { %v310_v14 = vsel %vm11803_vm5, %v305_v49, %v309_v5  ;;  %v314_v15 = vor.u32 %v313_v6, %v309_v5  ;;  %v3559_v17 = vshll.u32 %v11830_v1, 16  ;;  %v3551_v18 = vrot.slane %v3549_v12, 5 }
  0x21   : > { %10540 = vmatprep.mubr.msk.bf16.mxu0 %vm1047_vm4, %v9350_v9  ;;  %v4829_v20 = vrot.slane %v11823_v60, 5  ;;  %v4832_v21 = vrot.slane %v11830_v1, 5  ;;  %v321_v23 = vshrl.u32 %v205_v51, 16  ;;  %v3555_v26 = vrot.slane %v3553_v16, 4 }
  0x22   : > { %v315_v25 = vrot.slane %v314_v15, 4  ;;  %v3561_v27 = vrot.slane %v3559_v17, 5  ;;  %v327_v28 = vshll.u32 %v206_v13, 16  ;;  %v3552_v29 = vsel %vm11803_vm5, %v3547_v8, %v3551_v18 }
  0x23   : > { %v11853_v30 = vrot.slane %v4829_v20, 4  ;;  %v323_v31 = vrot.slane %v321_v23, 4  ;;  %v331_v32 = vshrl.u32 %v206_v13, 16  ;;  %v3556_v36 = vor.u32 %v3555_v26, %v3551_v18 }
  0x24   : > { %v320_v35 = vsel %vm11803_vm5, %v315_v25, %v319_v10  ;;  %v329_v37 = vrot.slane %v327_v28, 5  ;;  %v337_v38 = vshll.u32 %v207_v22, 16  ;;  %v3563_v43 = vshrl.u32 %v11830_v1, 16  ;;  %v209_v28 = vld [vmem:[%s11774_s23 + $0x24] sm:$0xf] }
  0x25   : > { %v8946_v40 = vcombine.low %v310_v14, %v320_v35  ;;  %v324_v41 = vor.u32 %v323_v31, %v319_v10  ;;  %v333_v42 = vrot.slane %v331_v32, 4  ;;  %v3557_v44 = vrot.slane %v3556_v36, 4  ;;  %v9284_v14 = vld [vmem:[%s11774_s23 + $0x40] sm:$0xf] }
  0x26   : > { %v339_v45 = vrot.slane %v337_v38, 5  ;;  %v3569_v46 = vshll.u32 %v9282_v34, 16  ;;  %v3573_v47 = vshrl.u32 %v9282_v34, 16  ;;  %v3565_v50 = vrot.slane %v3563_v43, 4  ;;  %v210_v38 = vld [vmem:[%s11774_s23 + $0x28] sm:$0xf] }
  0x27   : > { %10277 = vmatmul.mubr.msk.bf16.vlgmr.msra.gmra.mrb[0].mxu1 %vm1047_vm4, %v8946_v40  ;;  %v325_v48 = vrot.slane %v324_v41, 4  ;;  %v334_v49 = vor.u32 %v333_v42, %v329_v37  ;;  %v3579_v51 = vshll.u32 %v9283_v39, 16  ;;  %v3562_v53 = vsel %vm11803_vm5, %v3557_v44, %v3561_v27  ;;  %v211_v42 = vld [vmem:[%s11774_s23 + $0x2c] sm:$0xf] }
  0x28   : > { %10341 = vmatpush3.bf16.msra.mxu1 %v11787_v11  ;;  %v3571_v54 = vrot.slane %v3569_v46, 5  ;;  %v3575_v56 = vrot.slane %v3573_v47, 4  ;;  %v341_v59 = vshrl.u32 %v207_v22, 16  ;;  %v9351_v61 = vcombine.low %v3552_v29, %v3562_v53  ;;  %v9285_v22 = vld [vmem:[%s11774_s23 + $0x44] sm:$0x1] }
  0x29   : > { %v330_v62 = vsel %vm11803_vm5, %v325_v48, %v329_v37  ;;  %v335_v0 = vrot.slane %v334_v49, 4  ;;  %v3566_v2 = vor.u32 %v3565_v50, %v3561_v27  ;;  %v3581_v6 = vrot.slane %v3579_v51, 5 }
  0x2a   : > { %v3576_v5 = vor.u32 %v3575_v56, %v3571_v54  ;;  %v343_v8 = vrot.slane %v341_v59, 4  ;;  %v347_v9 = vshll.u32 %v208_v52, 16  ;;  %10541 = vmatmul.mubr.msk.bf16.vlgmr.msra.gmra.mrb[0].mxu0 %vm1047_vm4, %v9351_v61  ;;  %v351_v12 = vshrl.u32 %v208_v52, 16  ;;  %v9286_v52 = vld [vmem:[%s11774_s23 + $0x48] sm:$0xf] }
  0x2b   : > { %v340_v11 = vsel %vm11803_vm5, %v335_v0, %v339_v45  ;;  %v3567_v10 = vrot.slane %v3566_v2, 4  ;;  %v357_v13 = vshll.u32 %v266_v58, 16  ;;  %10605 = vmatpush3.bf16.msra.mxu0 %v11820_v57  ;;  %v3583_v27 = vshrl.u32 %v9283_v39, 16  ;;  %v9287_v59 = vld [vmem:[%s11774_s23 + $0x4c] sm:$0xf] }
  0x2c   : > { %v8947_v15 = vcombine.low %v330_v62, %v340_v11  ;;  %v3577_v16 = vrot.slane %v3576_v5, 4  ;;  %v344_v17 = vor.u32 %v343_v8, %v339_v45  ;;  %v349_v18 = vrot.slane %v347_v9, 5  ;;  %v9288_v9 = vld [vmem:[%s11774_s23 + $0x50] sm:$0xf] }
  0x2d   : > { %v3572_v23 = vsel %vm11803_vm5, %v3567_v10, %v3571_v54  ;;  %v353_v25 = vrot.slane %v351_v12, 4  ;;  %v359_v26 = vrot.slane %v357_v13, 5  ;;  %v3589_v31 = vshll.u32 %v9284_v14, 16 }
  0x2e   : > { %10280 = vmatprep.mubr.msk.bf16.mxu1 %vm1047_vm4, %v8947_v15  ;;  %v3582_v29 = vsel %vm11803_vm5, %v3577_v16, %v3581_v6  ;;  %v345_v57 = vrot.slane %v344_v17, 4  ;;  %v3593_v32 = vshrl.u32 %v9284_v14, 16  ;;  %v3585_v36 = vrot.slane %v3583_v27, 4  ;;  %v212_v15 = vld [vmem:[%s11774_s23 + $0x30] sm:$0xf] }
  0x2f   : > { %v9352_v34 = vcombine.low %v3572_v23, %v3582_v29  ;;  %v354_v35 = vor.u32 %v353_v25, %v349_v18  ;;  %v3599_v37 = vshll.u32 %v9285_v22, 16  ;;  %v3591_v41 = vrot.slane %v3589_v31, 5 }
  0x30   : > { %v350_v40 = vsel %vm11803_vm5, %v345_v57, %v349_v18  ;;  %v3595_v39 = vrot.slane %v3593_v32, 4  ;;  %v362_v43 = vshrl.u32 %v209_v28, 16  ;;  %v3586_v45 = vor.u32 %v3585_v36, %v3581_v6  ;;  %v213_v57 = vld [vmem:[%s11774_s23 + $0x34] sm:$0xf] }
  0x31   : > { %10544 = vmatprep.mubr.msk.bf16.mxu0 %vm1047_vm4, %v9352_v34  ;;  %v355_v44 = vrot.slane %v354_v35, 4  ;;  %v3601_v46 = vrot.slane %v3599_v37, 5  ;;  %v365_v47 = vshll.u32 %v209_v28, 16  ;;  %v371_v50 = vshll.u32 %v210_v38, 16 }
  0x32   : > { %v3596_v48 = vor.u32 %v3595_v39, %v3591_v41  ;;  %v364_v49 = vrot.slane %v362_v43, 4  ;;  %v375_v51 = vshrl.u32 %v210_v38, 16  ;;  %v3587_v54 = vrot.slane %v3586_v45, 4  ;;  %v9289_v38 = vld [vmem:[%s11774_s23 + $0x54] sm:$0xf] }
  0x33   : > { %v360_v53 = vsel %vm11803_vm5, %v355_v44, %v359_v26  ;;  %v367_v56 = vrot.slane %v365_v47, 5  ;;  %v381_v58 = vshll.u32 %v211_v42, 16  ;;  %v373_v0 = vrot.slane %v371_v50, 5 }
  0x34   : > { %v8948_v61 = vcombine.low %v350_v40, %v360_v53  ;;  %v3597_v62 = vrot.slane %v3596_v48, 4  ;;  %v377_v2 = vrot.slane %v375_v51, 4  ;;  %v3592_v5 = vsel %vm11803_vm5, %v3587_v54, %v3591_v41 }
  0x35   : > { %v368_v6 = vor.u32 %v367_v56, %v364_v49  ;;  %v383_v8 = vrot.slane %v381_v58, 5  ;;  %v3604_v11 = vshrl.u32 %v9286_v52, 16  ;;  %v3607_v13 = vshll.u32 %v9286_v52, 16  ;;  %v9290_v49 = vld [vmem:[%s11774_s23 + $0x58] sm:$0xf] }
  0x36   : > { %10281 = vmatmul.mubr.msk.bf16.gmra.mrb[4].mxu1 %vm1047_vm4, %v8948_v61  ;;  %v3602_v10 = vsel %vm11803_vm5, %v3597_v62, %v3601_v46  ;;  %v378_v12 = vor.u32 %v377_v2, %v373_v0  ;;  %v3613_v14 = vshll.u32 %v9287_v59, 16  ;;  %v3617_v22 = vshrl.u32 %v9287_v59, 16  ;;  %v214_v58 = vld [vmem:[%s11774_s23 + $0x38] sm:$0xf] }
  0x37   : > { %v9353_v16 = vcombine.low %v3592_v5, %v3602_v10  ;;  %v369_v17 = vrot.slane %v368_v6, 4  ;;  %v3606_v18 = vrot.slane %v3604_v11, 4  ;;  %v3609_v25 = vrot.slane %v3607_v13, 5  ;;  %v215_v10 = vld [vmem:[%s11774_s23 + $0x3c] sm:$0xf] }
  0x38   : > { %v379_v23 = vrot.slane %v378_v12, 4  ;;  %v3615_v26 = vrot.slane %v3613_v14, 5  ;;  %v3623_v27 = vshll.u32 %v9288_v9, 16  ;;  %v3619_v29 = vrot.slane %v3617_v22, 4 }
  0x39   : > { %10545 = vmatmul.mubr.msk.bf16.gmra.mrb[4].mxu0 %vm1047_vm4, %v9353_v16  ;;  %v374_v28 = vsel %vm11803_vm5, %v369_v17, %v373_v0  ;;  %v385_v31 = vshrl.u32 %v211_v42, 16  ;;  %v391_v32 = vshll.u32 %v212_v15, 16  ;;  %v3610_v35 = vor.u32 %v3609_v25, %v3606_v18  ;;  %v9291_v18 = vld [vmem:[%s11774_s23 + $0x5c] sm:$0xf] }
  0x3a   : > { %v384_v34 = vsel %vm11803_vm5, %v379_v23, %v383_v8  ;;  %v3625_v36 = vrot.slane %v3623_v27, 5  ;;  %v395_v37 = vshrl.u32 %v212_v15, 16  ;;  %v3620_v41 = vor.u32 %v3619_v29, %v3615_v26 }
  0x3b   : > { %v8949_v40 = vcombine.low %v374_v28, %v384_v34  ;;  %v387_v39 = vrot.slane %v385_v31, 4  ;;  %v393_v43 = vrot.slane %v391_v32, 5  ;;  %v3611_v44 = vrot.slane %v3610_v35, 4 }
  0x3c   : > { %v397_v45 = vrot.slane %v395_v37, 4  ;;  %v401_v46 = vshll.u32 %v213_v57, 16  ;;  %v3627_v47 = vshrl.u32 %v9288_v9, 16  ;;  %v3621_v42 = vrot.slane %v3620_v41, 4  ;;  %v216_v37 = vld [vmem:[%s11774_s23 + $0x40] sm:$0xf] }
  0x3d   : > { %10284 = vmatprep.mubr.msk.bf16.mxu1 %vm1047_vm4, %v8949_v40  ;;  %v388_v48 = vor.u32 %v387_v39, %v383_v8  ;;  %v3633_v50 = vshll.u32 %v9289_v38, 16  ;;  %v3637_v51 = vshrl.u32 %v9289_v38, 16  ;;  %v3616_v52 = vsel %vm11803_vm5, %v3611_v44, %v3615_v26 }
  0x3e   : > { %v398_v53 = vor.u32 %v397_v45, %v393_v43  ;;  %v403_v54 = vrot.slane %v401_v46, 5  ;;  %v3629_v56 = vrot.slane %v3627_v47, 4  ;;  %v3626_v59 = vsel %vm11803_vm5, %v3621_v42, %v3625_v36 }
  0x3f   : > { %v389_v61 = vrot.slane %v388_v48, 4  ;;  %v3635_v62 = vrot.slane %v3633_v50, 5  ;;  %v3639_v0 = vrot.slane %v3637_v51, 4  ;;  %v9354_v2 = vcombine.low %v3616_v52, %v3626_v59  ;;  %v267_v48 = vld [vmem:[%s11774_s23 + $0x44] sm:$0x1] }
  0x40   : > { %v399_v5 = vrot.slane %v398_v53, 4  ;;  %v3630_v6 = vor.u32 %v3629_v56, %v3625_v36  ;;  %v3643_v8 = vshll.u32 %v9290_v49, 16  ;;  %v405_v12 = vshrl.u32 %v213_v57, 16  ;;  %v9292_v57 = vld [vmem:[%s11774_s23 + $0x60] sm:$0xf] }
  0x41   : > { %v394_v9 = vsel %vm11803_vm5, %v389_v61, %v393_v43  ;;  %v3640_v11 = vor.u32 %v3639_v0, %v3635_v62  ;;  %v411_v13 = vshll.u32 %v214_v58, 16  ;;  %10548 = vmatprep.mubr.msk.bf16.mxu0 %vm1047_vm4, %v9354_v2  ;;  %v415_v17 = vshrl.u32 %v214_v58, 16  ;;  %v9293_v56 = vld [vmem:[%s11774_s23 + $0x64] sm:$0xf] }
  0x42   : > { %v404_v14 = vsel %vm11803_vm5, %v399_v5, %v403_v54  ;;  %v3631_v15 = vrot.slane %v3630_v6, 4  ;;  %v3645_v16 = vrot.slane %v3643_v8, 5  ;;  %v407_v25 = vrot.slane %v405_v12, 4 }
  0x43   : > { %v8950_v22 = vcombine.low %v394_v9, %v404_v14  ;;  %v3641_v23 = vrot.slane %v3640_v11, 4  ;;  %v413_v26 = vrot.slane %v411_v13, 5  ;;  %v417_v28 = vrot.slane %v415_v17, 4  ;;  %v9294_v11 = vld [vmem:[%s11774_s23 + $0x68] sm:$0x1] }
  0x44   : > { %v3636_v27 = vsel %vm11803_vm5, %v3631_v15, %v3635_v62  ;;  %v421_v29 = vshll.u32 %v215_v10, 16  ;;  %v3647_v31 = vshrl.u32 %v9290_v49, 16  ;;  %v408_v34 = vor.u32 %v407_v25, %v403_v54  ;;  %v217_v13 = vld [vmem:[%s11774_s23 + $0x48] sm:$0xf] }
  0x45   : > { %10285 = vmatmul.mubr.msk.bf16.gmra.mrb[8].mxu1 %vm1047_vm4, %v8950_v22  ;;  %v3646_v32 = vsel %vm11803_vm5, %v3641_v23, %v3645_v16  ;;  %v3653_v35 = vshll.u32 %v9291_v18, 16  ;;  %v3657_v36 = vshrl.u32 %v9291_v18, 16  ;;  %v418_v40 = vor.u32 %v417_v28, %v413_v26  ;;  %v218_v18 = vld [vmem:[%s11774_s23 + $0x4c] sm:$0xf] }
  0x46   : > { %v9355_v38 = vcombine.low %v3636_v27, %v3646_v32  ;;  %v423_v41 = vrot.slane %v421_v29, 5  ;;  %v3649_v39 = vrot.slane %v3647_v31, 4  ;;  %v409_v43 = vrot.slane %v408_v34, 4  ;;  %v219_v34 = vld [vmem:[%s11774_s23 + $0x50] sm:$0xf] }
  0x47   : > { %v3655_v44 = vrot.slane %v3653_v35, 5  ;;  %v3659_v45 = vrot.slane %v3657_v36, 4  ;;  %v3663_v46 = vshll.u32 %v9292_v57, 16  ;;  %v419_v47 = vrot.slane %v418_v40, 4 }
  0x48   : > { %10549 = vmatmul.mubr.msk.bf16.gmra.mrb[8].mxu0 %vm1047_vm4, %v9355_v38  ;;  %v3650_v42 = vor.u32 %v3649_v39, %v3645_v16  ;;  %v425_v49 = vshrl.u32 %v215_v10, 16  ;;  %v431_v50 = vshll.u32 %v216_v37, 16  ;;  %v414_v51 = vsel %vm11803_vm5, %v409_v43, %v413_v26  ;;  %v9296_v43 = vld [vmem:[%s11774_s23 + $0x70] sm:$0xf] }
  0x49   : > { %v3660_v52 = vor.u32 %v3659_v45, %v3655_v44  ;;  %v3665_v53 = vrot.slane %v3663_v46, 5  ;;  %v435_v54 = vshrl.u32 %v216_v37, 16  ;;  %v424_v58 = vsel %vm11803_vm5, %v419_v47, %v423_v41  ;;  %v9295_v37 = vld [vmem:[%s11774_s23 + $0x6c] sm:$0xf] }
  0x4a   : > { %v3651_v59 = vrot.slane %v3650_v42, 4  ;;  %v427_v61 = vrot.slane %v425_v49, 4  ;;  %v433_v62 = vrot.slane %v431_v50, 5  ;;  %v8951_v0 = vcombine.low %v414_v51, %v424_v58 }
  0x4b   : > { %v3661_v2 = vrot.slane %v3660_v52, 4  ;;  %v437_v5 = vrot.slane %v435_v54, 4  ;;  %v441_v6 = vshll.u32 %v267_v48, 16  ;;  %v3667_v10 = vshrl.u32 %v9292_v57, 16 }
  0x4c   : > { %v3656_v8 = vsel %vm11803_vm5, %v3651_v59, %v3655_v44  ;;  %v428_v9 = vor.u32 %v427_v61, %v423_v41  ;;  %v3673_v12 = vshll.u32 %v9293_v56, 16  ;;  %10288 = vmatprep.mubr.msk.bf16.mxu1 %vm1047_vm4, %v8951_v0  ;;  %v3677_v17 = vshrl.u32 %v9293_v56, 16  ;;  %v220_v0 = vld [vmem:[%s11774_s23 + $0x54] sm:$0xf] }
  0x4d   : > { %v3666_v14 = vsel %vm11803_vm5, %v3661_v2, %v3665_v53  ;;  %v438_v15 = vor.u32 %v437_v5, %v433_v62  ;;  %v443_v16 = vrot.slane %v441_v6, 5  ;;  %v3669_v25 = vrot.slane %v3667_v10, 4 }
  0x4e   : > { %v9356_v22 = vcombine.low %v3656_v8, %v3666_v14  ;;  %v429_v23 = vrot.slane %v428_v9, 4  ;;  %v3675_v26 = vrot.slane %v3673_v12, 5  ;;  %v3679_v28 = vrot.slane %v3677_v17, 4  ;;  %v221_v12 = vld [vmem:[%s11774_s23 + $0x58] sm:$0xf] }
  0x4f   : > { %v439_v27 = vrot.slane %v438_v15, 4  ;;  %v3683_v29 = vshll.u32 %v9294_v11, 16  ;;  %v446_v57 = vshrl.u32 %v217_v13, 16  ;;  %v3670_v32 = vor.u32 %v3669_v25, %v3665_v53  ;;  %v9297_v53 = vld [vmem:[%s11774_s23 + $0x74] sm:$0xf] }
  0x50   : > { %10552 = vmatprep.mubr.msk.bf16.mxu0 %vm1047_vm4, %v9356_v22  ;;  %v434_v31 = vsel %vm11803_vm5, %v429_v23, %v433_v62  ;;  %v449_v35 = vshll.u32 %v217_v13, 16  ;;  %v455_v36 = vshll.u32 %v218_v18, 16  ;;  %v3680_v40 = vor.u32 %v3679_v28, %v3675_v26 }
  0x51   : > { %v444_v38 = vsel %vm11803_vm5, %v439_v27, %v443_v16  ;;  %v3685_v41 = vrot.slane %v3683_v29, 5  ;;  %v448_v39 = vrot.slane %v446_v57, 4  ;;  %v3671_v45 = vrot.slane %v3670_v32, 4  ;;  %v9298_v57 = vld [vmem:[%s11774_s23 + $0x78] sm:$0xf] }
  0x52   : > { %v8952_v44 = vcombine.low %v434_v31, %v444_v38  ;;  %v451_v46 = vrot.slane %v449_v35, 5  ;;  %v457_v47 = vrot.slane %v455_v36, 5  ;;  %v3681_v42 = vrot.slane %v3680_v40, 4  ;;  %v9299_v35 = vld [vmem:[%s11774_s23 + $0x7c] sm:$0xf] }
  0x53   : > { %v459_v48 = vshrl.u32 %v218_v18, 16  ;;  %v465_v49 = vshll.u32 %v219_v34, 16  ;;  %v3688_v50 = vshrl.u32 %v9295_v37, 16  ;;  %v3676_v51 = vsel %vm11803_vm5, %v3671_v45, %v3675_v26 }
  0x54   : > { %10289 = vmatmul.mubr.msk.bf16.gmra.mrb[12].mxu1 %vm1047_vm4, %v8952_v44  ;;  %v452_v52 = vor.u32 %v451_v46, %v448_v39  ;;  %v3691_v54 = vshll.u32 %v9295_v37, 16  ;;  %v3697_v56 = vshll.u32 %v9296_v43, 16  ;;  %v3686_v58 = vsel %vm11803_vm5, %v3681_v42, %v3685_v41 }
  0x55   : > { %v461_v59 = vrot.slane %v459_v48, 4  ;;  %v467_v61 = vrot.slane %v465_v49, 5  ;;  %v3690_v62 = vrot.slane %v3688_v50, 4  ;;  %v9357_v2 = vcombine.low %v3676_v51, %v3686_v58  ;;  %v222_v48 = vld [vmem:[%s11774_s23 + $0x5c] sm:$0xf] }
  0x56   : > { %v453_v5 = vrot.slane %v452_v52, 4  ;;  %v3693_v6 = vrot.slane %v3691_v54, 5  ;;  %v3699_v8 = vrot.slane %v3697_v56, 5  ;;  %v3701_v11 = vshrl.u32 %v9296_v43, 16  ;;  %v223_v54 = vld [vmem:[%s11774_s23 + $0x60] sm:$0xf] }
  0x57   : > { %v462_v9 = vor.u32 %v461_v59, %v457_v47  ;;  %v3707_v10 = vshll.u32 %v9297_v53, 16  ;;  %v469_v13 = vshrl.u32 %v219_v34, 16  ;;  %10553 = vmatmul.mubr.msk.bf16.gmra.mrb[12].mxu0 %vm1047_vm4, %v9357_v2  ;;  %v475_v16 = vshll.u32 %v220_v0, 16 }
  0x58   : > { %v458_v14 = vsel %vm11803_vm5, %v453_v5, %v457_v47  ;;  %v3694_v15 = vor.u32 %v3693_v6, %v3690_v62  ;;  %v479_v17 = vshrl.u32 %v220_v0, 16  ;;  %v3703_v22 = vrot.slane %v3701_v11, 4  ;;  %v9300_v62 = vld [vmem:[%s11774_s23 + $0x80] sm:$0xf] }
  0x59   : > { %v463_v18 = vrot.slane %v462_v9, 4  ;;  %v3709_v23 = vrot.slane %v3707_v10, 5  ;;  %v471_v25 = vrot.slane %v469_v13, 4  ;;  %v477_v27 = vrot.slane %v475_v16, 5 }
  0x5a   : > { %v3695_v26 = vrot.slane %v3694_v15, 4  ;;  %v481_v28 = vrot.slane %v479_v17, 4  ;;  %v485_v29 = vshll.u32 %v221_v12, 16  ;;  %v3704_v32 = vor.u32 %v3703_v22, %v3699_v8  ;;  %v224_v17 = vld [vmem:[%s11774_s23 + $0x64] sm:$0xf] }
  0x5b   : > { %v468_v31 = vsel %vm11803_vm5, %v463_v18, %v467_v61  ;;  %v472_v34 = vor.u32 %v471_v25, %v467_v61  ;;  %v3711_v36 = vshrl.u32 %v9297_v53, 16  ;;  %v3717_v45 = vshll.u32 %v9298_v57, 16 }
  0x5c   : > { %v8953_v37 = vcombine.low %v458_v14, %v468_v31  ;;  %v3700_v38 = vsel %vm11803_vm5, %v3695_v26, %v3699_v8  ;;  %v482_v40 = vor.u32 %v481_v28, %v477_v27  ;;  %v487_v41 = vrot.slane %v485_v29, 5  ;;  %v9301_v8 = vld [vmem:[%s11774_s23 + $0x84] sm:$0xf]  ;;  %v268_v26 = vld [vmem:[%s11774_s23 + $0x68] sm:$0x1] }
  0x5d   : > { %v3705_v39 = vrot.slane %v3704_v32, 4  ;;  %v473_v43 = vrot.slane %v472_v34, 4  ;;  %v3713_v44 = vrot.slane %v3711_v36, 4  ;;  %v3721_v47 = vshrl.u32 %v9298_v57, 16 }
  0x5e   : > { %10292 = vmatprep.mubr.msk.bf16.mxu1 %vm1047_vm4, %v8953_v37  ;;  %v483_v46 = vrot.slane %v482_v40, 4  ;;  %v3727_v42 = vshll.u32 %v9299_v35, 16  ;;  %v489_v49 = vshrl.u32 %v221_v12, 16  ;;  %v3719_v53 = vrot.slane %v3717_v45, 5 }
  0x5f   : > { %v3710_v50 = vsel %vm11803_vm5, %v3705_v39, %v3709_v23  ;;  %v478_v51 = vsel %vm11803_vm5, %v473_v43, %v477_v27  ;;  %v3714_v52 = vor.u32 %v3713_v44, %v3709_v23  ;;  %v3723_v59 = vrot.slane %v3721_v47, 4  ;;  %v225_v47 = vld [vmem:[%s11774_s23 + $0x6c] sm:$0xf] }
  0x60   : > { %v9358_v56 = vcombine.low %v3700_v38, %v3710_v50  ;;  %v488_v58 = vsel %vm11803_vm5, %v483_v46, %v487_v41  ;;  %v3729_v61 = vrot.slane %v3727_v42, 5  ;;  %v491_v5 = vrot.slane %v489_v49, 4  ;;  %v9303_v46 = vld [vmem:[%s11774_s23 + $0x8c] sm:$0x1] }
  0x61   : > { %v8954_v0 = vcombine.low %v478_v51, %v488_v58  ;;  %v3715_v2 = vrot.slane %v3714_v52, 4  ;;  %v495_v6 = vshll.u32 %v222_v48, 16  ;;  %v3724_v9 = vor.u32 %v3723_v59, %v3719_v53 }
  0x62   : > { %10556 = vmatprep.mubr.msk.bf16.mxu0 %vm1047_vm4, %v9358_v56  ;;  %v499_v11 = vshrl.u32 %v222_v48, 16  ;;  %v505_v10 = vshll.u32 %v223_v54, 16  ;;  %v3731_v12 = vshrl.u32 %v9299_v35, 16  ;;  %v492_v14 = vor.u32 %v491_v5, %v487_v41  ;;  %v9302_v41 = vld [vmem:[%s11774_s23 + $0x88] sm:$0xf] }
  0x63   : > { %10293 = vmatmul.mubr.msk.bf16.gmra.mrb[16].mxu1 %vm1047_vm4, %v8954_v0  ;;  %v3720_v13 = vsel %vm11803_vm5, %v3715_v2, %v3719_v53  ;;  %v497_v15 = vrot.slane %v495_v6, 5  ;;  %v3737_v16 = vshll.u32 %v9300_v62, 16  ;;  %v3725_v18 = vrot.slane %v3724_v9, 4 }
  0x64   : > { %v501_v22 = vrot.slane %v499_v11, 4  ;;  %v507_v23 = vrot.slane %v505_v10, 5  ;;  %v3733_v25 = vrot.slane %v3731_v12, 4  ;;  %v493_v27 = vrot.slane %v492_v14, 4  ;;  %v226_v11 = vld [vmem:[%s11774_s23 + $0x70] sm:$0xf] }
  0x65   : > { %v3739_v28 = vrot.slane %v3737_v16, 5  ;;  %v3741_v29 = vshrl.u32 %v9300_v62, 16  ;;  %v3747_v57 = vshll.u32 %v9301_v8, 16  ;;  %v3730_v31 = vsel %vm11803_vm5, %v3725_v18, %v3729_v61  ;;  %v227_v16 = vld [vmem:[%s11774_s23 + $0x74] sm:$0xf] }
  0x66   : > { %v502_v32 = vor.u32 %v501_v22, %v497_v15  ;;  %v3734_v34 = vor.u32 %v3733_v25, %v3729_v61  ;;  %v509_v35 = vshrl.u32 %v223_v54, 16  ;;  %v9359_v36 = vcombine.low %v3720_v13, %v3730_v31 }
  0x67   : > { %v498_v37 = vsel %vm11803_vm5, %v493_v27, %v497_v15  ;;  %v3743_v38 = vrot.slane %v3741_v29, 4  ;;  %v3749_v40 = vrot.slane %v3747_v57, 5  ;;  %v515_v45 = vshll.u32 %v224_v17, 16  ;;  %v9305_v57 = vld [vmem:[%s11774_s23 + $0x94] sm:$0xf] }
  0x68   : > { %v503_v39 = vrot.slane %v502_v32, 4  ;;  %v3735_v43 = vrot.slane %v3734_v34, 4  ;;  %v511_v44 = vrot.slane %v509_v35, 4  ;;  %10557 = vmatmul.mubr.msk.bf16.gmra.mrb[16].mxu0 %vm1047_vm4, %v9359_v36  ;;  %v519_v48 = vshrl.u32 %v224_v17, 16  ;;  %v9304_v17 = vld [vmem:[%s11774_s23 + $0x90] sm:$0xf] }
  0x69   : > { %v3744_v42 = vor.u32 %v3743_v38, %v3739_v28  ;;  %v525_v49 = vshll.u32 %v268_v26, 16  ;;  %v3751_v50 = vshrl.u32 %v9301_v8, 16  ;;  %v517_v54 = vrot.slane %v515_v45, 5  ;;  %v9306_v35 = vld [vmem:[%s11774_s23 + $0x98] sm:$0xf] }
  0x6a   : > { %v508_v51 = vsel %vm11803_vm5, %v503_v39, %v507_v23  ;;  %v3740_v52 = vsel %vm11803_vm5, %v3735_v43, %v3739_v28  ;;  %v512_v53 = vor.u32 %v511_v44, %v507_v23  ;;  %v521_v59 = vrot.slane %v519_v48, 4 }
  0x6b   : > { %v8955_v56 = vcombine.low %v498_v37, %v508_v51  ;;  %v3745_v58 = vrot.slane %v3744_v42, 4  ;;  %v527_v61 = vrot.slane %v525_v49, 5  ;;  %v3753_v0 = vrot.slane %v3751_v50, 4 }
  0x6c   : > { %v513_v62 = vrot.slane %v512_v53, 4  ;;  %v3757_v2 = vshll.u32 %v9302_v41, 16  ;;  %v3761_v5 = vshrl.u32 %v9302_v41, 16  ;;  %v522_v8 = vor.u32 %v521_v59, %v517_v54 }
  0x6d   : > { %10296 = vmatprep.mubr.msk.bf16.mxu1 %vm1047_vm4, %v8955_v56  ;;  %v3750_v6 = vsel %vm11803_vm5, %v3745_v58, %v3749_v40  ;;  %v3767_v9 = vshll.u32 %v9303_v46, 16  ;;  %v530_v10 = vshrl.u32 %v225_v47, 16  ;;  %v3754_v14 = vor.u32 %v3753_v0, %v3749_v40 }
  0x6e   : > { %v9360_v12 = vcombine.low %v3740_v52, %v3750_v6  ;;  %v518_v13 = vsel %vm11803_vm5, %v513_v62, %v517_v54  ;;  %v3759_v15 = vrot.slane %v3757_v2, 5  ;;  %v523_v18 = vrot.slane %v522_v8, 4  ;;  %v228_v52 = vld [vmem:[%s11774_s23 + $0x78] sm:$0xf]  ;;  %v9307_v6 = vld [vmem:[%s11774_s23 + $0x9c] sm:$0xf] }
  0x6f   : > { %v3763_v22 = vrot.slane %v3761_v5, 4  ;;  %v3769_v23 = vrot.slane %v3767_v9, 5  ;;  %v532_v25 = vrot.slane %v530_v10, 4  ;;  %v3755_v26 = vrot.slane %v3754_v14, 4 }
  0x70   : > { %10560 = vmatprep.mubr.msk.bf16.mxu0 %vm1047_vm4, %v9360_v12  ;;  %v533_v27 = vshll.u32 %v225_v47, 16  ;;  %v539_v28 = vshll.u32 %v226_v11, 16  ;;  %v543_v29 = vshrl.u32 %v226_v11, 16  ;;  %v528_v31 = vsel %vm11803_vm5, %v523_v18, %v527_v61  ;;  %v229_v61 = vld [vmem:[%s11774_s23 + $0x7c] sm:$0xf] }
  0x71   : > { %v3764_v32 = vor.u32 %v3763_v22, %v3759_v15  ;;  %v549_v34 = vshll.u32 %v227_v16, 16  ;;  %v3772_v36 = vshrl.u32 %v9304_v17, 16  ;;  %v8956_v37 = vcombine.low %v518_v13, %v528_v31  ;;  %v9308_v12 = vld [vmem:[%s11774_s23 + $0xa0] sm:$0xf] }
  0x72   : > { %v3760_v38 = vsel %vm11803_vm5, %v3755_v26, %v3759_v15  ;;  %v535_v40 = vrot.slane %v533_v27, 5  ;;  %v541_v41 = vrot.slane %v539_v28, 5  ;;  %v545_v43 = vrot.slane %v543_v29, 4 }
  0x73   : > { %v3765_v39 = vrot.slane %v3764_v32, 4  ;;  %v551_v44 = vrot.slane %v549_v34, 5  ;;  %v3774_v45 = vrot.slane %v3772_v36, 4  ;;  %10297 = vmatmul.mubr.msk.bf16.gmra.mrb[20].mxu1 %vm1047_vm4, %v8956_v37  ;;  %v3775_v47 = vshll.u32 %v9304_v17, 16 }
  0x74   : > { %v536_v46 = vor.u32 %v535_v40, %v532_v25  ;;  %v3781_v42 = vshll.u32 %v9305_v57, 16  ;;  %v3785_v48 = vshrl.u32 %v9305_v57, 16  ;;  %v546_v50 = vor.u32 %v545_v43, %v541_v41  ;;  %v230_v25 = vld [vmem:[%s11774_s23 + $0x80] sm:$0xf] }
  0x75   : > { %v3770_v49 = vsel %vm11803_vm5, %v3765_v39, %v3769_v23  ;;  %v3791_v51 = vshll.u32 %v9306_v35, 16  ;;  %v553_v53 = vshrl.u32 %v227_v16, 16  ;;  %v3777_v58 = vrot.slane %v3775_v47, 5 }
  0x76   : > { %v9361_v54 = vcombine.low %v3760_v38, %v3770_v49  ;;  %v537_v56 = vrot.slane %v536_v46, 4  ;;  %v3783_v59 = vrot.slane %v3781_v42, 5  ;;  %v547_v62 = vrot.slane %v546_v50, 4 }
  0x77   : > { %v3787_v0 = vrot.slane %v3785_v48, 4  ;;  %v3793_v2 = vrot.slane %v3791_v51, 5  ;;  %v555_v5 = vrot.slane %v553_v53, 4  ;;  %v3778_v9 = vor.u32 %v3777_v58, %v3774_v45  ;;  %v9310_v53 = vld [vmem:[%s11774_s23 + $0xa8] sm:$0xf] }
  0x78   : > { %10561 = vmatmul.mubr.msk.bf16.gmra.mrb[20].mxu0 %vm1047_vm4, %v9361_v54  ;;  %v542_v8 = vsel %vm11803_vm5, %v537_v56, %v541_v41  ;;  %v559_v11 = vshll.u32 %v228_v52, 16  ;;  %v563_v10 = vshrl.u32 %v228_v52, 16  ;;  %v552_v13 = vsel %vm11803_vm5, %v547_v62, %v551_v44  ;;  %v231_v41 = vld [vmem:[%s11774_s23 + $0x84] sm:$0xf] }
  0x79   : > { %v3788_v14 = vor.u32 %v3787_v0, %v3783_v59  ;;  %v556_v15 = vor.u32 %v555_v5, %v551_v44  ;;  %v569_v16 = vshll.u32 %v229_v61, 16  ;;  %v8957_v17 = vcombine.low %v542_v8, %v552_v13  ;;  %v9309_v52 = vld [vmem:[%s11774_s23 + $0xa4] sm:$0xf]  ;;  %v232_v5 = vld [vmem:[%s11774_s23 + $0x88] sm:$0xf] }
  0x7a   : > { %v3779_v18 = vrot.slane %v3778_v9, 4  ;;  %v561_v22 = vrot.slane %v559_v11, 5  ;;  %v565_v23 = vrot.slane %v563_v10, 4  ;;  %v3795_v29 = vshrl.u32 %v9306_v35, 16 }
  0x7b   : > { %v3789_v26 = vrot.slane %v3788_v14, 4  ;;  %v557_v27 = vrot.slane %v556_v15, 4  ;;  %v571_v28 = vrot.slane %v569_v16, 5  ;;  %10300 = vmatprep.mubr.msk.bf16.mxu1 %vm1047_vm4, %v8957_v17  ;;  %v3801_v32 = vshll.u32 %v9307_v6, 16 }
  0x7c   : > { %v3784_v57 = vsel %vm11803_vm5, %v3779_v18, %v3783_v59  ;;  %v566_v31 = vor.u32 %v565_v23, %v561_v22  ;;  %v3805_v34 = vshrl.u32 %v9307_v6, 16  ;;  %v3797_v38 = vrot.slane %v3795_v29, 4 }
  0x7d   : > { %v3794_v36 = vsel %vm11803_vm5, %v3789_v26, %v3793_v2  ;;  %v562_v37 = vsel %vm11803_vm5, %v557_v27, %v561_v22  ;;  %v3811_v40 = vshll.u32 %v9308_v12, 16  ;;  %v3803_v43 = vrot.slane %v3801_v32, 5  ;;  %v269_v22 = vld [vmem:[%s11774_s23 + $0x8c] sm:$0x1] }
  0x7e   : > { %v9362_v35 = vcombine.low %v3784_v57, %v3794_v36  ;;  %v567_v39 = vrot.slane %v566_v31, 4  ;;  %v3807_v44 = vrot.slane %v3805_v34, 4  ;;  %v3798_v45 = vor.u32 %v3797_v38, %v3793_v2  ;;  %v9312_v34 = vld [vmem:[%s11774_s23 + $0xb0] sm:$0x1] }
  0x7f   : > { %v3813_v46 = vrot.slane %v3811_v40, 5  ;;  %v573_v47 = vshrl.u32 %v229_v61, 16  ;;  %v579_v42 = vshll.u32 %v230_v25, 16  ;;  %v583_v50 = vshrl.u32 %v230_v25, 16 }
  0x80   : > { %10564 = vmatprep.mubr.msk.bf16.mxu0 %vm1047_vm4, %v9362_v35  ;;  %v572_v48 = vsel %vm11803_vm5, %v567_v39, %v571_v28  ;;  %v3808_v49 = vor.u32 %v3807_v44, %v3803_v43  ;;  %v589_v51 = vshll.u32 %v231_v41, 16  ;;  %v3799_v56 = vrot.slane %v3798_v45, 4  ;;  %v233_v35 = vld [vmem:[%s11774_s23 + $0x90] sm:$0xf] }
  0x81   : > { %v8958_v54 = vcombine.low %v562_v37, %v572_v48  ;;  %v575_v58 = vrot.slane %v573_v47, 4  ;;  %v581_v59 = vrot.slane %v579_v42, 5  ;;  %v585_v0 = vrot.slane %v583_v50, 4  ;;  %v234_v48 = vld [vmem:[%s11774_s23 + $0x94] sm:$0xf] }
  0x82   : > { %v3809_v62 = vrot.slane %v3808_v49, 4  ;;  %v591_v2 = vrot.slane %v589_v51, 5  ;;  %v3815_v61 = vshrl.u32 %v9308_v12, 16  ;;  %v3804_v6 = vsel %vm11803_vm5, %v3799_v56, %v3803_v43 }
  0x83   : > { %10301 = vmatmul.mubr.msk.bf16.gmra.mrb[24].mxu1 %vm1047_vm4, %v8958_v54  ;;  %v576_v8 = vor.u32 %v575_v58, %v571_v28  ;;  %v3821_v9 = vshll.u32 %v9309_v52, 16  ;;  %v3825_v11 = vshrl.u32 %v9309_v52, 16  ;;  %v586_v13 = vor.u32 %v585_v0, %v581_v59  ;;  %v9311_v28 = vld [vmem:[%s11774_s23 + $0xac] sm:$0xf] }
  0x84   : > { %v3814_v10 = vsel %vm11803_vm5, %v3809_v62, %v3813_v46  ;;  %v3817_v14 = vrot.slane %v3815_v61, 4  ;;  %v3831_v15 = vshll.u32 %v9310_v53, 16  ;;  %v593_v27 = vshrl.u32 %v231_v41, 16 }
  0x85   : > { %v9363_v16 = vcombine.low %v3804_v6, %v3814_v10  ;;  %v577_v17 = vrot.slane %v576_v8, 4  ;;  %v3823_v12 = vrot.slane %v3821_v9, 5  ;;  %v3827_v18 = vrot.slane %v3825_v11, 4  ;;  %v235_v8 = vld [vmem:[%s11774_s23 + $0x98] sm:$0xf] }
  0x86   : > { %v587_v23 = vrot.slane %v586_v13, 4  ;;  %v3818_v25 = vor.u32 %v3817_v14, %v3813_v46  ;;  %v3833_v26 = vrot.slane %v3831_v15, 5  ;;  %v599_v31 = vshll.u32 %v232_v5, 16  ;;  %v9414_v11 = vld [vmem:[%s11774_s23 + $0x24] sm:$0xe] }
  0x87   : > { %10565 = vmatmul.mubr.msk.bf16.gmra.mrb[24].mxu0 %vm1047_vm4, %v9363_v16  ;;  %v582_v29 = vsel %vm11803_vm5, %v577_v17, %v581_v59  ;;  %v3828_v57 = vor.u32 %v3827_v18, %v3823_v12  ;;  %v603_v32 = vshrl.u32 %v232_v5, 16  ;;  %v595_v38 = vrot.slane %v593_v27, 4  ;;  %v9561_v16 = vld [vmem:[%s14729_s1 + $0xc] sm:$0x3] }
  0x88   : > { %v592_v36 = vsel %vm11803_vm5, %v587_v23, %v591_v2  ;;  %v3819_v37 = vrot.slane %v3818_v25, 4  ;;  %v609_v40 = vshll.u32 %v269_v22, 16  ;;  %v601_v43 = vrot.slane %v599_v31, 5  ;;  %v236_v23 = vld [vmem:[%s11774_s23 + $0x9c] sm:$0xf] }
  0x89   : > { %v8959_v39 = vcombine.low %v582_v29, %v592_v36  ;;  %v3829_v41 = vrot.slane %v3828_v57, 4  ;;  %v605_v44 = vrot.slane %v603_v32, 4  ;;  %v596_v46 = vor.u32 %v595_v38, %v591_v2  ;;  %v237_v31 = vld [vmem:[%s11774_s23 + $0xa0] sm:$0xf] }
  0x8a   : > { %v3824_v45 = vsel %vm11803_vm5, %v3819_v37, %v3823_v12  ;;  %v611_v47 = vrot.slane %v609_v40, 5  ;;  %v3835_v42 = vshrl.u32 %v9310_v53, 16  ;;  %v3841_v51 = vshll.u32 %v9311_v28, 16 }
  0x8b   : > { %10304 = vmatprep.mubr.msk.bf16.mxu1 %vm1047_vm4, %v8959_v39  ;;  %v3834_v49 = vsel %vm11803_vm5, %v3829_v41, %v3833_v26  ;;  %v606_v50 = vor.u32 %v605_v44, %v601_v43  ;;  %v3845_v52 = vshrl.u32 %v9311_v28, 16  ;;  %v597_v56 = vrot.slane %v596_v46, 4 }
  0x8c   : > { %v9364_v54 = vcombine.low %v3824_v45, %v3834_v49  ;;  %v3837_v58 = vrot.slane %v3835_v42, 4  ;;  %v3851_v59 = vshll.u32 %v9312_v34, 16  ;;  %v3843_v0 = vrot.slane %v3841_v51, 5  ;;  %v238_v49 = vld [vmem:[%s11774_s23 + $0xa4] sm:$0xf] }
  0x8d   : > { %v607_v62 = vrot.slane %v606_v50, 4  ;;  %v3847_v2 = vrot.slane %v3845_v52, 4  ;;  %v614_v61 = vshrl.u32 %v233_v35, 16  ;;  %v602_v53 = vsel %vm11803_vm5, %v597_v56, %v601_v43  ;;  %v239_v56 = vld [vmem:[%s11774_s23 + $0xa8] sm:$0xf] }
  0x8e   : > { %10568 = vmatprep.mubr.msk.bf16.mxu0 %vm1047_vm4, %v9364_v54  ;;  %v3838_v5 = vor.u32 %v3837_v58, %v3833_v26  ;;  %v3853_v6 = vrot.slane %v3851_v59, 5  ;;  %v617_v9 = vshll.u32 %v233_v35, 16  ;;  %v623_v15 = vshll.u32 %v234_v48, 16 }
  0x8f   : > { %v612_v10 = vsel %vm11803_vm5, %v607_v62, %v611_v47  ;;  %v3848_v13 = vor.u32 %v3847_v2, %v3843_v0  ;;  %v616_v14 = vrot.slane %v614_v61, 4  ;;  %v627_v22 = vshrl.u32 %v234_v48, 16 }
  0x90   : > { %v8960_v17 = vcombine.low %v602_v53, %v612_v10  ;;  %v3839_v12 = vrot.slane %v3838_v5, 4  ;;  %v619_v18 = vrot.slane %v617_v9, 5  ;;  %v625_v26 = vrot.slane %v623_v15, 5  ;;  %v240_v53 = vld [vmem:[%s11774_s23 + $0xac] sm:$0xf] }
  0x91   : > { %v3849_v25 = vrot.slane %v3848_v13, 4  ;;  %v633_v27 = vshll.u32 %v235_v8, 16  ;;  %v629_v57 = vrot.slane %v627_v22, 4  ;;  %vm2013_vm7 = vcmask 1046532  }
  0x92   : > { %10305 = vmatmul.mubr.msk.bf16.gmra.mrb[28].mxu1 %vm1047_vm4, %v8960_v17  ;;  %v3844_v28 = vsel %vm11803_vm5, %v3839_v12, %v3843_v0  ;;  %v620_v29 = vor.u32 %v619_v18, %v616_v14  ;;  %vm12072_vm8 = vmor %vm2012_vm6, %vm2013_vm7  ;;  %v9422_v37 = vrot.slane %v9414_v11, 9  ;;  %v4825_v38 = vrot.slane %v4823_v63, 4  ;;  %v270_v18 = vld [vmem:[%s11774_s23 + $0xb0] sm:$0x1] }
  0x93   : > { %v3854_v32 = vsel %vm11803_vm5, %v3849_v25, %v3853_v6  ;;  %v635_v34 = vrot.slane %v633_v27, 5  ;;  %v630_v39 = vor.u32 %v629_v57, %v625_v26  ;;  %v5898_v41 = vand.u32 %v9561_v16, %v11769_v4  ;;  %v241_v57 = vld [vmem:[%s11774_s23 + $0xb4] sm:$0xf] }
  0x94   : > { %v9365_v40 = vcombine.low %v3844_v28, %v3854_v32  ;;  %v621_v35 = vrot.slane %v620_v29, 4  ;;  %v4824_v43 = vsel %vm12072_vm8, %v9422_v37, %v4823_v63  ;;  %v4827_v44 = vsel %vm12072_vm8, %v4825_v38, %v4826_v55  ;;  %v242_v38 = vld [vmem:[%s11774_s23 + $0xb8] sm:$0xf] }
  0x95   : > { %v637_v45 = vshrl.u32 %v235_v8, 16  ;;  %v643_v46 = vshll.u32 %v236_v23, 16  ;;  %v631_v42 = vrot.slane %v630_v39, 4  ;;  %v9431_v48 = vcombine.low %v4824_v43, %v4827_v44  ;;  %10670 = vmatprep.subr.bf16.mxu0 %v5898_v41  ;;  %v11503_v8 = vld [vmem:[%s11774_s23 + $0x38] sm:$0xf] }
  0x96   : > { %10569 = vmatmul.mubr.msk.bf16.gmra.mrb[28].mxu0 %vm1047_vm4, %v9365_v40  ;;  %v626_v47 = vsel %vm11803_vm5, %v621_v35, %v625_v26  ;;  %v647_v19 = vshrl.u32 %v236_v23, 16  ;;  %v653_v51 = vshll.u32 %v237_v31, 16  ;;  %v4830_v24 = vsel %vm12072_vm8, %v11836_v3, %v4829_v20  ;;  %v11504_v23 = vld [vmem:[%s11774_s23 + $0x3c] sm:$0xf] }
  0x97   : > { %v639_v50 = vrot.slane %v637_v45, 4  ;;  %v645_v63 = vrot.slane %v643_v46, 5  ;;  %v636_v55 = vsel %vm11803_vm5, %v631_v42, %v635_v34  ;;  %10606 = vmatprep.mubr.msk.bf16.mxu0 %vm1047_vm4, %v9431_v48  ;;  %v4833_v54 = vsel %vm12072_vm8, %v11853_v30, %v4832_v21  ;;  %v243_v43 = vld [vmem:[%s11774_s23 + $0xbc] sm:$0xf] }
  0x98   : > { %v649_v52 = vrot.slane %v647_v19, 4  ;;  %v657_v60 = vshrl.u32 %v237_v31, 16  ;;  %v8961_v58 = vcombine.low %v626_v47, %v636_v55  ;;  %v655_v62 = vrot.slane %v653_v51, 5  ;;  %v11505_v47 = vld [vmem:[%s11774_s23 + $0x40] sm:$0xf] }
  0x99   : > { %v640_v59 = vor.u32 %v639_v50, %v635_v34  ;;  %v9432_v0 = vcombine.low %v4830_v24, %v4833_v54  ;;  %v663_v2 = vshll.u32 %v238_v49, 16  ;;  %v667_v61 = vshrl.u32 %v238_v49, 16  ;;  %v11506_v50 = vld [vmem:[%s11774_s23 + $0x44] sm:$0x1] }
  0x9a   : > { %v650_v3 = vor.u32 %v649_v52, %v645_v63  ;;  %v659_v20 = vrot.slane %v657_v60, 4  ;;  %10308 = vmatprep.mubr.msk.bf16.mxu1 %vm1047_vm4, %v8961_v58  ;;  %v673_v6 = vshll.u32 %v239_v56, 16  ;;  %v4834_v30 = vrot.slane %v4832_v21, 4 }
  0x9b   : > { %v641_v5 = vrot.slane %v640_v59, 4  ;;  %v4835_v9 = vrot.slane %v11503_v8, 5  ;;  %v665_v13 = vrot.slane %v663_v2, 5  ;;  %v669_v14 = vrot.slane %v667_v61, 4 }
  0x9c   : > { %v651_v11 = vrot.slane %v650_v3, 4  ;;  %v660_v10 = vor.u32 %v659_v20, %v655_v62  ;;  %v675_v16 = vrot.slane %v673_v6, 5  ;;  %v4838_v25 = vrot.slane %v11504_v23, 5  ;;  %v9415_v20 = vld [vmem:[%s11774_s23 + $0x48] sm:$0xe] }
  0x9d   : > { %v646_v15 = vsel %vm11803_vm5, %v641_v5, %v645_v63  ;;  %v4836_v17 = vsel %vm12072_vm8, %v4834_v30, %v4835_v9  ;;  %v4837_v12 = vrot.slane %v4835_v9, 4  ;;  %v670_v22 = vor.u32 %v669_v14, %v665_v13  ;;  %v244_v6 = vld [vmem:[%s11774_s23 + $0xc0] sm:$0xf]  ;;  %v11507_v14 = vld [vmem:[%s11774_s23 + $0x4c] sm:$0xf] }
  0x9e   : > { %v656_v1 = vsel %vm11803_vm5, %v651_v11, %v655_v62  ;;  %10607 = vmatmul.mubr.msk.bf16.vlgmr.msra.gmra.mrb[0].mxu0 %vm1047_vm4, %v9432_v0  ;;  %v661_v21 = vrot.slane %v660_v10, 4  ;;  %v677_v27 = vshrl.u32 %v239_v56, 16  ;;  %v683_v28 = vshll.u32 %v240_v53, 16  ;;  %v245_v10 = vld [vmem:[%s11774_s23 + $0xc4] sm:$0xf] }
  0x9f   : > { %v8962_v26 = vcombine.low %v646_v15, %v656_v1  ;;  %10671 = vmatpush3.bf16.msra.mxu0 %v5898_v41  ;;  %v687_v29 = vshrl.u32 %v240_v53, 16  ;;  %v671_v32 = vrot.slane %v670_v22, 4  ;;  %v4839_v34 = vsel %vm12072_vm8, %v4837_v12, %v4838_v25 }
  0xa0   : > { %v666_v31 = vsel %vm11803_vm5, %v661_v21, %v665_v13  ;;  %v693_v37 = vshll.u32 %v270_v18, 16  ;;  %v9433_v40 = vcombine.low %v4836_v17, %v4839_v34  ;;  %v679_v35 = vrot.slane %v677_v27, 4  ;;  %v247_v34 = vld [vmem:[%s11774_s23 + $0xcc] sm:$0xf] }
  0xa1   : > { %10309 = vmatmul.mubr.msk.bf16.gmra.mrb[32].mxu1 %vm1047_vm4, %v8962_v26  ;;  %v685_v39 = vrot.slane %v683_v28, 5  ;;  %v689_v41 = vrot.slane %v687_v29, 4  ;;  %v676_v44 = vsel %vm11803_vm5, %v671_v32, %v675_v16  ;;  %v4840_v46 = vrot.slane %v4838_v25, 4  ;;  %v246_v28 = vld [vmem:[%s11774_s23 + $0xc8] sm:$0xf] }
  0xa2   : > { %v695_v45 = vrot.slane %v693_v37, 5  ;;  %v4841_v42 = vrot.slane %v11505_v47, 5  ;;  %v8963_v48 = vcombine.low %v666_v31, %v676_v44  ;;  %10610 = vmatprep.mubr.msk.bf16.mxu0 %vm1047_vm4, %v9433_v40  ;;  %v680_v19 = vor.u32 %v679_v35, %v675_v16  ;;  %v11508_v16 = vld [vmem:[%s11774_s23 + $0x50] sm:$0xf]  ;;  %v11509_v44 = vld [vmem:[%s11774_s23 + $0x54] sm:$0xf] }
  0xa3   : > { %v690_v49 = vor.u32 %v689_v41, %v685_v39  ;;  %v4844_v63 = vrot.slane %v11506_v50, 5  ;;  %v698_v55 = vshrl.u32 %v241_v57, 16  ;;  %v701_v52 = vshll.u32 %v241_v57, 16 }
  0xa4   : > { %v4842_v51 = vsel %vm12072_vm8, %v4840_v46, %v4841_v42  ;;  %v4843_v24 = vrot.slane %v4841_v42, 4  ;;  %10312 = vmatprep.mubr.msk.bf16.mxu1 %vm1047_vm4, %v8963_v48  ;;  %v681_v54 = vrot.slane %v680_v19, 4  ;;  %v707_v60 = vshll.u32 %v242_v38, 16  ;;  %v11510_v42 = vld [vmem:[%s11774_s23 + $0x58] sm:$0xf] }
  0xa5   : > { %v691_v56 = vrot.slane %v690_v49, 4  ;;  %v711_v58 = vshrl.u32 %v242_v38, 16  ;;  %v700_v62 = vrot.slane %v698_v55, 4  ;;  %v703_v0 = vrot.slane %v701_v52, 5 }
  0xa6   : > { %v4845_v59 = vsel %vm12072_vm8, %v4843_v24, %v4844_v63  ;;  %v717_v3 = vshll.u32 %v243_v43, 16  ;;  %v686_v2 = vsel %vm11803_vm5, %v681_v54, %v685_v39  ;;  %v709_v5 = vrot.slane %v707_v60, 5  ;;  %v248_v24 = vld [vmem:[%s11774_s23 + $0xd0] sm:$0xf]  ;;  %v271_v60 = vld [vmem:[%s11774_s23 + $0xd4] sm:$0x1] }
  0xa7   : > { %v696_v61 = vsel %vm11803_vm5, %v691_v56, %v695_v45  ;;  %v9434_v53 = vcombine.low %v4842_v51, %v4845_v59  ;;  %v704_v8 = vor.u32 %v703_v0, %v700_v62  ;;  %v713_v9 = vrot.slane %v711_v58, 4 }
  0xa8   : > { %v8964_v30 = vcombine.low %v686_v2, %v696_v61  ;;  %v719_v11 = vrot.slane %v717_v3, 5  ;;  %v9423_v13 = vrot.slane %v9415_v20, 9  ;;  %v4848_v15 = vrot.slane %v11507_v14, 5 }
  0xa9   : > { %10611 = vmatmul.mubr.msk.bf16.gmra.mrb[4].mxu0 %vm1047_vm4, %v9434_v53  ;;  %v4851_v17 = vrot.slane %v11508_v16, 5  ;;  %v721_v12 = vshrl.u32 %v243_v43, 16  ;;  %v705_v18 = vrot.slane %v704_v8, 4  ;;  %v714_v1 = vor.u32 %v713_v9, %v709_v5 }
  0xaa   : > { %10313 = vmatmul.mubr.msk.bf16.gmra.mrb[36].mxu1 %vm1047_vm4, %v8964_v30  ;;  %v727_v21 = vshll.u32 %v244_v6, 16  ;;  %v731_v22 = vshrl.u32 %v244_v6, 16  ;;  %v4849_v23 = vsel %vm12072_vm8, %v9423_v13, %v4848_v15  ;;  %v4850_v25 = vrot.slane %v4848_v15, 4  ;;  %v11512_v30 = vld [vmem:[%s11774_s23 + $0x60] sm:$0xf] }
  0xab   : > { %v723_v26 = vrot.slane %v721_v12, 4  ;;  %v737_v27 = vshll.u32 %v245_v10, 16  ;;  %v710_v29 = vsel %vm11803_vm5, %v705_v18, %v709_v5  ;;  %v715_v57 = vrot.slane %v714_v1, 4  ;;  %v11511_v5 = vld [vmem:[%s11774_s23 + $0x5c] sm:$0xf] }
  0xac   : > { %v729_v31 = vrot.slane %v727_v21, 5  ;;  %v733_v32 = vrot.slane %v731_v22, 4  ;;  %v4852_v37 = vsel %vm12072_vm8, %v4850_v25, %v4851_v17  ;;  %v4853_v35 = vrot.slane %v4851_v17, 4  ;;  %v249_v15 = vld [vmem:[%s11774_s23 + $0xd8] sm:$0xf] }
  0xad   : > { %v724_v38 = vor.u32 %v723_v26, %v719_v11  ;;  %v739_v40 = vrot.slane %v737_v27, 5  ;;  %v720_v39 = vsel %vm11803_vm5, %v715_v57, %v719_v11  ;;  %v9435_v41 = vcombine.low %v4849_v23, %v4852_v37  ;;  %v250_v25 = vld [vmem:[%s11774_s23 + $0xdc] sm:$0xf]  ;;  %v251_v57 = vld [vmem:[%s11774_s23 + $0xe0] sm:$0xf] }
  0xae   : > { %v734_v43 = vor.u32 %v733_v32, %v729_v31  ;;  %v4854_v45 = vrot.slane %v11509_v44, 5  ;;  %v8965_v46 = vcombine.low %v710_v29, %v720_v39  ;;  %v4857_v48 = vrot.slane %v11510_v42, 5  ;;  %v11513_v37 = vld [vmem:[%s11774_s23 + $0x64] sm:$0xf]  ;;  %v11514_v39 = vld [vmem:[%s11774_s23 + $0x68] sm:$0x1] }
  0xaf   : > { %v725_v47 = vrot.slane %v724_v38, 4  ;;  %v741_v19 = vshrl.u32 %v245_v10, 16  ;;  %10614 = vmatprep.mubr.msk.bf16.mxu0 %vm1047_vm4, %v9435_v41  ;;  %v747_v51 = vshll.u32 %v246_v28, 16  ;;  %v751_v54 = vshrl.u32 %v246_v28, 16  ;;  %v9416_v44 = vld [vmem:[%s11774_s23 + $0x6c] sm:$0xe] }
  0xb0   : > { %v735_v49 = vrot.slane %v734_v43, 4  ;;  %v4855_v50 = vsel %vm12072_vm8, %v4853_v35, %v4854_v45  ;;  %v4856_v63 = vrot.slane %v4854_v45, 4  ;;  %10316 = vmatprep.mubr.msk.bf16.mxu1 %vm1047_vm4, %v8965_v46  ;;  %v757_v56 = vshll.u32 %v247_v34, 16 }
  0xb1   : > { %v730_v55 = vsel %vm11803_vm5, %v725_v47, %v729_v31  ;;  %v743_v52 = vrot.slane %v741_v19, 4  ;;  %v749_v62 = vrot.slane %v747_v51, 5  ;;  %v4859_v0 = vrot.slane %v4857_v48, 4 }
  0xb2   : > { %v740_v58 = vsel %vm11803_vm5, %v735_v49, %v739_v40  ;;  %v4858_v59 = vsel %vm12072_vm8, %v4856_v63, %v4857_v48  ;;  %v753_v61 = vrot.slane %v751_v54, 4  ;;  %v759_v53 = vrot.slane %v757_v56, 5  ;;  %v12194_v48 = vld [vmem:[%s11774_s23 + $0xe4] sm:$0xf] }
  0xb3   : > { %v8966_v3 = vcombine.low %v730_v55, %v740_v58  ;;  %v9436_v20 = vcombine.low %v4855_v50, %v4858_v59  ;;  %v744_v2 = vor.u32 %v743_v52, %v739_v40  ;;  %v4860_v6 = vrot.slane %v11511_v5, 5  ;;  %v12204_v59 = vld [vmem:[%s11774_s23 + $0xe8] sm:$0xf] }
  0xb4   : > { %v4863_v8 = vrot.slane %v11512_v30, 5  ;;  %v761_v9 = vshrl.u32 %v247_v34, 16  ;;  %v754_v10 = vor.u32 %v753_v61, %v749_v62  ;;  %v767_v13 = vshll.u32 %v248_v24, 16 }
  0xb5   : > { %10317 = vmatmul.mubr.msk.bf16.gmra.mrb[40].mxu1 %vm1047_vm4, %v8966_v3  ;;  %10615 = vmatmul.mubr.msk.bf16.gmra.mrb[8].mxu0 %vm1047_vm4, %v9436_v20  ;;  %v745_v11 = vrot.slane %v744_v2, 4  ;;  %v771_v14 = vshrl.u32 %v248_v24, 16  ;;  %v4861_v16 = vsel %vm12072_vm8, %v4859_v0, %v4860_v6  ;;  %v4862_v17 = vrot.slane %v4860_v6, 4  ;;  %v11515_v20 = vld [vmem:[%s11774_s23 + $0x70] sm:$0xf] }
  0xb6   : > { %v763_v12 = vrot.slane %v761_v9, 4  ;;  %v777_v18 = vshll.u32 %v271_v60, 16  ;;  %v755_v21 = vrot.slane %v754_v10, 4  ;;  %v769_v22 = vrot.slane %v767_v13, 5  ;;  %v12215_v13 = vld [vmem:[%s11774_s23 + $0xec] sm:$0xf] }
  0xb7   : > { %v750_v1 = vsel %vm11803_vm5, %v745_v11, %v749_v62  ;;  %v773_v23 = vrot.slane %v771_v14, 4  ;;  %v4864_v26 = vsel %vm12072_vm8, %v4862_v17, %v4863_v8  ;;  %v4865_v29 = vrot.slane %v4863_v8, 4 }
  0xb8   : > { %v764_v27 = vor.u32 %v763_v12, %v759_v53  ;;  %v779_v28 = vrot.slane %v777_v18, 5  ;;  %v760_v31 = vsel %vm11803_vm5, %v755_v21, %v759_v53  ;;  %v9437_v32 = vcombine.low %v4861_v16, %v4864_v26  ;;  %v11516_v53 = vld [vmem:[%s11774_s23 + $0x74] sm:$0xf]  ;;  %v12219_v12 = vld [vmem:[%s11774_s23 + $0xf0] sm:$0xf] }
  0xb9   : > { %v774_v34 = vor.u32 %v773_v23, %v769_v22  ;;  %v4866_v38 = vrot.slane %v11513_v37, 5  ;;  %v8967_v40 = vcombine.low %v750_v1, %v760_v31  ;;  %v4869_v41 = vrot.slane %v11514_v39, 5  ;;  %v12234_v39 = vld [vmem:[%s11774_s23 + $0xf4] sm:$0xf] }
  0xba   : > { %v765_v35 = vrot.slane %v764_v27, 4  ;;  %v782_v43 = vshrl.u32 %v249_v15, 16  ;;  %10618 = vmatprep.mubr.msk.bf16.mxu0 %vm1047_vm4, %v9437_v32  ;;  %v785_v42 = vshll.u32 %v249_v15, 16  ;;  %v791_v50 = vshll.u32 %v250_v25, 16  ;;  %v11518_v32 = vld [vmem:[%s11774_s23 + $0x7c] sm:$0xf] }
  0xbb   : > { %v775_v45 = vrot.slane %v774_v34, 4  ;;  %v4867_v46 = vsel %vm12072_vm8, %v4865_v29, %v4866_v38  ;;  %v4868_v47 = vrot.slane %v4866_v38, 4  ;;  %10320 = vmatprep.mubr.msk.bf16.mxu1 %vm1047_vm4, %v8967_v40  ;;  %v795_v63 = vshrl.u32 %v250_v25, 16 }
  0xbc   : > { %v770_v19 = vsel %vm11803_vm5, %v765_v35, %v769_v22  ;;  %v784_v49 = vrot.slane %v782_v43, 4  ;;  %v787_v55 = vrot.slane %v785_v42, 5  ;;  %v801_v52 = vshll.u32 %v251_v57, 16 }
  0xbd   : > { %v780_v51 = vsel %vm11803_vm5, %v775_v45, %v779_v28  ;;  %v4870_v24 = vsel %vm12072_vm8, %v4868_v47, %v4869_v41  ;;  %v793_v60 = vrot.slane %v791_v50, 5  ;;  %v797_v58 = vrot.slane %v795_v63, 4 }
  0xbe   : > { %v8968_v54 = vcombine.low %v770_v19, %v780_v51  ;;  %v9438_v56 = vcombine.low %v4867_v46, %v4870_v24  ;;  %v788_v62 = vor.u32 %v787_v55, %v784_v49  ;;  %v803_v0 = vrot.slane %v801_v52, 5  ;;  %v272_v46 = vld [vmem:[%s11774_s23 + $0xf8] sm:$0x1] }
  0xbf   : > { %v9424_v3 = vrot.slane %v9416_v44, 9  ;;  %v4873_v2 = vrot.slane %v11515_v20, 5  ;;  %v798_v61 = vor.u32 %v797_v58, %v793_v60  ;;  %v4876_v5 = vrot.slane %v11516_v53, 5 }
  0xc0   : > { %10321 = vmatmul.mubr.msk.bf16.gmra.mrb[44].mxu1 %vm1047_vm4, %v8968_v54  ;;  %10619 = vmatmul.mubr.msk.bf16.gmra.mrb[12].mxu0 %vm1047_vm4, %v9438_v56  ;;  %v805_v6 = vshrl.u32 %v251_v57, 16  ;;  %v811_v30 = vshll.u32 %v12194_v48, 16  ;;  %v789_v8 = vrot.slane %v788_v62, 4  ;;  %v815_v10 = vshrl.u32 %v12194_v48, 16  ;;  %v11517_v57 = vld [vmem:[%s11774_s23 + $0x78] sm:$0xf] }
  0xc1   : > { %v4874_v9 = vsel %vm12072_vm8, %v9424_v3, %v4873_v2  ;;  %v4875_v11 = vrot.slane %v4873_v2, 4  ;;  %v799_v14 = vrot.slane %v798_v61, 4  ;;  %v821_v17 = vshll.u32 %v12204_v59, 16  ;;  %v11520_v62 = vld [vmem:[%s11774_s23 + $0x84] sm:$0xf] }
  0xc2   : > { %v807_v15 = vrot.slane %v805_v6, 4  ;;  %v813_v16 = vrot.slane %v811_v30, 5  ;;  %v794_v18 = vsel %vm11803_vm5, %v789_v8, %v793_v60  ;;  %v817_v21 = vrot.slane %v815_v10, 4  ;;  %v11519_v60 = vld [vmem:[%s11774_s23 + $0x80] sm:$0xf] }
  0xc3   : > { %v4877_v1 = vsel %vm12072_vm8, %v4875_v11, %v4876_v5  ;;  %v4878_v22 = vrot.slane %v4876_v5, 4  ;;  %v804_v23 = vsel %vm11803_vm5, %v799_v14, %v803_v0  ;;  %v823_v27 = vrot.slane %v821_v17, 5  ;;  %v12255_v6 = vld [vmem:[%s11774_s23 + $0xfc] sm:$0xf]  ;;  %v12264_v17 = vld [vmem:[%s11774_s23 + $0x100] sm:$0xf] }
  0xc4   : > { %v9439_v25 = vcombine.low %v4874_v9, %v4877_v1  ;;  %v808_v26 = vor.u32 %v807_v15, %v803_v0  ;;  %v8969_v28 = vcombine.low %v794_v18, %v804_v23  ;;  %v818_v29 = vor.u32 %v817_v21, %v813_v16  ;;  %v12269_v23 = vld [vmem:[%s11774_s23 + $0x104] sm:$0xf] }
  0xc5   : > { %v4879_v31 = vrot.slane %v11517_v57, 5  ;;  %v4882_v34 = vrot.slane %v11518_v32, 5  ;;  %v825_v38 = vshrl.u32 %v12204_v59, 16  ;;  %v831_v40 = vshll.u32 %v12215_v13, 16 }
  0xc6   : > { %10622 = vmatprep.mubr.msk.bf16.mxu0 %vm1047_vm4, %v9439_v25  ;;  %v809_v37 = vrot.slane %v808_v26, 4  ;;  %v835_v35 = vshrl.u32 %v12215_v13, 16  ;;  %10324 = vmatprep.mubr.msk.bf16.mxu1 %vm1047_vm4, %v8969_v28  ;;  %v819_v41 = vrot.slane %v818_v29, 4  ;;  %v841_v45 = vshll.u32 %v12219_v12, 16  ;;  %v11522_v29 = vld [vmem:[%s11774_s23 + $0x8c] sm:$0x1] }
  0xc7   : > { %v4880_v43 = vsel %vm12072_vm8, %v4878_v22, %v4879_v31  ;;  %v4881_v44 = vrot.slane %v4879_v31, 4  ;;  %v827_v42 = vrot.slane %v825_v38, 4  ;;  %v833_v19 = vrot.slane %v831_v40, 5  ;;  %v9417_v31 = vld [vmem:[%s11774_s23 + $0x90] sm:$0xe] }
  0xc8   : > { %v814_v47 = vsel %vm11803_vm5, %v809_v37, %v813_v16  ;;  %v837_v49 = vrot.slane %v835_v35, 4  ;;  %v824_v50 = vsel %vm11803_vm5, %v819_v41, %v823_v27  ;;  %v843_v51 = vrot.slane %v841_v45, 5 }
  0xc9   : > { %v4883_v63 = vsel %vm12072_vm8, %v4881_v44, %v4882_v34  ;;  %v4884_v24 = vrot.slane %v4882_v34, 4  ;;  %v8970_v55 = vcombine.low %v814_v47, %v824_v50  ;;  %v828_v54 = vor.u32 %v827_v42, %v823_v27  ;;  %v11521_v27 = vld [vmem:[%s11774_s23 + $0x88] sm:$0xf] }
  0xca   : > { %v9440_v52 = vcombine.low %v4880_v43, %v4883_v63  ;;  %v838_v56 = vor.u32 %v837_v49, %v833_v19  ;;  %v4885_v58 = vrot.slane %v11519_v60, 5  ;;  %v4888_v0 = vrot.slane %v11520_v62, 5  ;;  %v12283_v44 = vld [vmem:[%s11774_s23 + $0x108] sm:$0xf] }
  0xcb   : > { %v845_v3 = vshrl.u32 %v12219_v12, 16  ;;  %v851_v20 = vshll.u32 %v12234_v39, 16  ;;  %10325 = vmatmul.mubr.msk.bf16.gmra.mrb[48].mxu1 %vm1047_vm4, %v8970_v55  ;;  %v829_v2 = vrot.slane %v828_v54, 4  ;;  %v855_v53 = vshrl.u32 %v12234_v39, 16 }
  0xcc   : > { %10623 = vmatmul.mubr.msk.bf16.gmra.mrb[16].mxu0 %vm1047_vm4, %v9440_v52  ;;  %v839_v61 = vrot.slane %v838_v56, 4  ;;  %v861_v5 = vshll.u32 %v272_v46, 16  ;;  %v4886_v30 = vsel %vm12072_vm8, %v4884_v24, %v4885_v58  ;;  %v4887_v8 = vrot.slane %v4885_v58, 4  ;;  %v11523_v58 = vld [vmem:[%s11774_s23 + $0x94] sm:$0xf] }
  0xcd   : > { %v847_v9 = vrot.slane %v845_v3, 4  ;;  %v853_v11 = vrot.slane %v851_v20, 5  ;;  %v834_v10 = vsel %vm11803_vm5, %v829_v2, %v833_v19  ;;  %v857_v15 = vrot.slane %v855_v53, 4 }
  0xce   : > { %v844_v14 = vsel %vm11803_vm5, %v839_v61, %v843_v51  ;;  %v863_v16 = vrot.slane %v861_v5, 5  ;;  %v4889_v1 = vsel %vm12072_vm8, %v4887_v8, %v4888_v0  ;;  %v4890_v22 = vrot.slane %v4888_v0, 4  ;;  %v11524_v0 = vld [vmem:[%s11774_s23 + $0x98] sm:$0xf]  ;;  %v12303_v5 = vld [vmem:[%s11774_s23 + $0x110] sm:$0xf] }
  0xcf   : > { %v8971_v18 = vcombine.low %v834_v10, %v844_v14  ;;  %v848_v21 = vor.u32 %v847_v9, %v843_v51  ;;  %v9441_v25 = vcombine.low %v4886_v30, %v4889_v1  ;;  %v858_v26 = vor.u32 %v857_v15, %v853_v11  ;;  %v12293_v51 = vld [vmem:[%s11774_s23 + $0x10c] sm:$0xf] }
  0xd0   : > { %v4891_v28 = vrot.slane %v11521_v27, 5  ;;  %v4894_v57 = vrot.slane %v11522_v29, 5  ;;  %v866_v34 = vshrl.u32 %v12255_v6, 16  ;;  %v869_v37 = vshll.u32 %v12255_v6, 16 }
  0xd1   : > { %10328 = vmatprep.mubr.msk.bf16.mxu1 %vm1047_vm4, %v8971_v18  ;;  %v849_v32 = vrot.slane %v848_v21, 4  ;;  %v875_v38 = vshll.u32 %v12264_v17, 16  ;;  %10626 = vmatprep.mubr.msk.bf16.mxu0 %vm1047_vm4, %v9441_v25  ;;  %v859_v40 = vrot.slane %v858_v26, 4  ;;  %v879_v43 = vshrl.u32 %v12264_v17, 16  ;;  %v12315_v25 = vld [vmem:[%s11774_s23 + $0x114] sm:$0xf] }
  0xd2   : > { %v4892_v35 = vsel %vm12072_vm8, %v4890_v22, %v4891_v28  ;;  %v4893_v41 = vrot.slane %v4891_v28, 4  ;;  %v868_v46 = vrot.slane %v866_v34, 4  ;;  %v871_v47 = vrot.slane %v869_v37, 5 }
  0xd3   : > { %v854_v45 = vsel %vm11803_vm5, %v849_v32, %v853_v11  ;;  %v877_v42 = vrot.slane %v875_v38, 5  ;;  %v864_v19 = vsel %vm11803_vm5, %v859_v40, %v863_v16  ;;  %v881_v50 = vrot.slane %v879_v43, 4  ;;  %v11526_v32 = vld [vmem:[%s11774_s23 + $0xa0] sm:$0xf] }
  0xd4   : > { %v4895_v49 = vsel %vm12072_vm8, %v4893_v41, %v4894_v57  ;;  %v885_v63 = vshll.u32 %v12269_v23, 16  ;;  %v8972_v24 = vcombine.low %v854_v45, %v864_v19  ;;  %v872_v52 = vor.u32 %v871_v47, %v868_v46  ;;  %v11525_v57 = vld [vmem:[%s11774_s23 + $0x9c] sm:$0xf] }
  0xd5   : > { %v9442_v55 = vcombine.low %v4892_v35, %v4895_v49  ;;  %v9425_v54 = vrot.slane %v9417_v31, 9  ;;  %v882_v56 = vor.u32 %v881_v50, %v877_v42  ;;  %v4898_v62 = vrot.slane %v11523_v58, 5 }
  0xd6   : > { %v887_v60 = vrot.slane %v885_v63, 5  ;;  %v4901_v3 = vrot.slane %v11524_v0, 5  ;;  %10329 = vmatmul.mubr.msk.bf16.gmra.mrb[52].mxu1 %vm1047_vm4, %v8972_v24  ;;  %v873_v20 = vrot.slane %v872_v52, 4  ;;  %v889_v2 = vshrl.u32 %v12269_v23, 16  ;;  %v12332_v24 = vld [vmem:[%s11774_s23 + $0x118] sm:$0xf] }
  0xd7   : > { %10627 = vmatmul.mubr.msk.bf16.gmra.mrb[20].mxu0 %vm1047_vm4, %v9442_v55  ;;  %v895_v61 = vshll.u32 %v12283_v44, 16  ;;  %v899_v53 = vshrl.u32 %v12283_v44, 16  ;;  %v883_v30 = vrot.slane %v882_v56, 4  ;;  %v4899_v8 = vsel %vm12072_vm8, %v9425_v54, %v4898_v62  ;;  %v11527_v0 = vld [vmem:[%s11774_s23 + $0xa4] sm:$0xf] }
  0xd8   : > { %v4900_v9 = vrot.slane %v4898_v62, 4  ;;  %v905_v11 = vshll.u32 %v12293_v51, 16  ;;  %v878_v10 = vsel %vm11803_vm5, %v873_v20, %v877_v42  ;;  %v891_v14 = vrot.slane %v889_v2, 4  ;;  %v11528_v20 = vld [vmem:[%s11774_s23 + $0xa8] sm:$0xf] }
  0xd9   : > { %v897_v15 = vrot.slane %v895_v61, 5  ;;  %v901_v16 = vrot.slane %v899_v53, 4  ;;  %v888_v18 = vsel %vm11803_vm5, %v883_v30, %v887_v60  ;;  %v4903_v22 = vrot.slane %v4901_v3, 4 }
  0xda   : > { %v4902_v1 = vsel %vm12072_vm8, %v4900_v9, %v4901_v3  ;;  %v907_v21 = vrot.slane %v905_v11, 5  ;;  %v8973_v26 = vcombine.low %v878_v10, %v888_v18  ;;  %v892_v28 = vor.u32 %v891_v14, %v887_v60  ;;  %v273_v60 = vld [vmem:[%s11774_s23 + $0x11c] sm:$0x1] }
  0xdb   : > { %v9443_v27 = vcombine.low %v4899_v8, %v4902_v1  ;;  %v902_v29 = vor.u32 %v901_v16, %v897_v15  ;;  %v4904_v31 = vrot.slane %v11525_v57, 5  ;;  %v4907_v34 = vrot.slane %v11526_v32, 5  ;;  %v9418_v57 = vld [vmem:[%s11774_s23 + $0xb4] sm:$0xe] }
  0xdc   : > { %v909_v37 = vshrl.u32 %v12293_v51, 16  ;;  %v915_v38 = vshll.u32 %v12303_v5, 16  ;;  %10332 = vmatprep.mubr.msk.bf16.mxu1 %vm1047_vm4, %v8973_v26  ;;  %v893_v40 = vrot.slane %v892_v28, 4  ;;  %v919_v41 = vshrl.u32 %v12303_v5, 16 }
  0xdd   : > { %10630 = vmatprep.mubr.msk.bf16.mxu0 %vm1047_vm4, %v9443_v27  ;;  %v903_v35 = vrot.slane %v902_v29, 4  ;;  %v925_v43 = vshll.u32 %v12315_v25, 16  ;;  %v4905_v45 = vsel %vm12072_vm8, %v4903_v22, %v4904_v31  ;;  %v4906_v46 = vrot.slane %v4904_v31, 4  ;;  %v9314_v29 = vld [vmem:[%s11774_s23 + $0xb8] sm:$0xf] }
  0xde   : > { %v911_v47 = vrot.slane %v909_v37, 4  ;;  %v917_v42 = vrot.slane %v915_v38, 5  ;;  %v898_v19 = vsel %vm11803_vm5, %v893_v40, %v897_v15  ;;  %v921_v50 = vrot.slane %v919_v41, 4  ;;  %v9315_v38 = vld [vmem:[%s11774_s23 + $0xbc] sm:$0xf] }
  0xdf   : > { %v908_v49 = vsel %vm11803_vm5, %v903_v35, %v907_v21  ;;  %v927_v63 = vrot.slane %v925_v43, 5  ;;  %v4908_v52 = vsel %vm12072_vm8, %v4906_v46, %v4907_v34  ;;  %v4909_v56 = vrot.slane %v4907_v34, 4  ;;  %v11529_v40 = vld [vmem:[%s11774_s23 + $0xac] sm:$0xf]  ;;  %v11530_v41 = vld [vmem:[%s11774_s23 + $0xb0] sm:$0x1] }
  0xe0   : > { %v8974_v55 = vcombine.low %v898_v19, %v908_v49  ;;  %v912_v54 = vor.u32 %v911_v47, %v907_v21  ;;  %v9444_v58 = vcombine.low %v4905_v45, %v4908_v52  ;;  %v922_v62 = vor.u32 %v921_v50, %v917_v42  ;;  %v9081_v21 = vld [vmem:[%s14729_s1 + $0x4] sm:$0x3] }
  0xe1   : > { %v4910_v3 = vrot.slane %v11527_v0, 5  ;;  %v4913_v2 = vrot.slane %v11528_v20, 5  ;;  %v929_v53 = vshrl.u32 %v12315_v25, 16  ;;  %v935_v30 = vshll.u32 %v12332_v24, 16  ;;  %v9316_v0 = vld [vmem:[%s11774_s23 + $0xc0] sm:$0xf] }
  0xe2   : > { %10333 = vmatmul.mubr.msk.bf16.gmra.mrb[56].mxu1 %vm1047_vm4, %v8974_v55  ;;  %v913_v61 = vrot.slane %v912_v54, 4  ;;  %v939_v8 = vshrl.u32 %v12332_v24, 16  ;;  %10631 = vmatmul.mubr.msk.bf16.gmra.mrb[24].mxu0 %vm1047_vm4, %v9444_v58  ;;  %v923_v9 = vrot.slane %v922_v62, 4  ;;  %v945_v14 = vshll.u32 %v273_v60, 16  ;;  %v12369_v55 = vld [vmem:[%s11774_s23 + $0x4] sm:$0xf] }
  0xe3   : > { %v4911_v11 = vsel %vm12072_vm8, %v4909_v56, %v4910_v3  ;;  %v4912_v10 = vrot.slane %v4910_v3, 4  ;;  %v931_v16 = vrot.slane %v929_v53, 4  ;;  %v937_v18 = vrot.slane %v935_v30, 5  ;;  %v9317_v3 = vld [vmem:[%s11774_s23 + $0xc4] sm:$0xf] }
  0xe4   : > { %v918_v15 = vsel %vm11803_vm5, %v913_v61, %v917_v42  ;;  %v941_v1 = vrot.slane %v939_v8, 4  ;;  %v928_v22 = vsel %vm11803_vm5, %v923_v9, %v927_v63  ;;  %v947_v27 = vrot.slane %v945_v14, 5  ;;  %v9318_v61 = vld [vmem:[%s11774_s23 + $0xc8] sm:$0xf]  ;;  %v9319_v53 = vld [vmem:[%s11774_s23 + $0xcc] sm:$0xf] }
  0xe5   : > { %v4914_v26 = vsel %vm12072_vm8, %v4912_v10, %v4913_v2  ;;  %v4915_v28 = vrot.slane %v4913_v2, 4  ;;  %v8975_v31 = vcombine.low %v918_v15, %v928_v22  ;;  %v932_v34 = vor.u32 %v931_v16, %v927_v63  ;;  %v11531_v63 = vld [vmem:[%s11774_s23] sm:$0xf]  ;;  %v9320_v15 = vld [vmem:[%s11774_s23 + $0xd0] sm:$0xf] }
  0xe6   : > { %v9445_v32 = vcombine.low %v4911_v11, %v4914_v26  ;;  %v942_v37 = vor.u32 %v941_v1, %v937_v18  ;;  %v4916_v35 = vrot.slane %v11529_v40, 5  ;;  %v4919_v43 = vrot.slane %v11530_v41, 5  ;;  %v9419_v40 = vld [vmem:[%s11774_s23 + $0xd8] sm:$0xe]  ;;  %v12411_v41 = vld [vmem:[%s11774_s23 + $0x10] sm:$0xf] }
  0xe7   : > { %v12361_v45 = vand.u32 %v9081_v21, %v11769_v4  ;;  %10336 = vmatprep.mubr.msk.bf16.mxu1 %vm1047_vm4, %v8975_v31  ;;  %v933_v46 = vrot.slane %v932_v34, 4  ;;  %v9426_v42 = vrot.slane %v9418_v57, 9  ;;  %v4923_v19 = vrot.slane %v9314_v29, 5  ;;  %v9323_v29 = vld [vmem:[%s11774_s23 + $0xdc] sm:$0xf] }
  0xe8   : > { %10634 = vmatprep.mubr.msk.bf16.mxu0 %vm1047_vm4, %v9445_v32  ;;  %v943_v47 = vrot.slane %v942_v37, 4  ;;  %v4917_v49 = vsel %vm12072_vm8, %v4915_v28, %v4916_v35  ;;  %v4918_v50 = vrot.slane %v4916_v35, 4  ;;  %v9009_v52 = vcombine.low %v11531_v63, %v12369_v55  ;;  %v12397_v57 = vld [vmem:[%s11774_s23 + $0x8] sm:$0xf]  ;;  %v12400_v31 = vld [vmem:[%s11774_s23 + $0xc] sm:$0xf] }
  0xe9   : > { %10406 = vmatprep.subr.bf16.mxu1 %v12361_v45  ;;  %v4926_v54 = vrot.slane %v9315_v38, 5  ;;  %v938_v56 = vsel %vm11803_vm5, %v933_v46, %v937_v18  ;;  %v4924_v58 = vsel %vm12072_vm8, %v9426_v42, %v4923_v19  ;;  %v4925_v62 = vrot.slane %v4923_v19, 4  ;;  %v9324_v38 = vld [vmem:[%s11774_s23 + $0xe0] sm:$0xf] }
  0xea   : > { %v948_v60 = vsel %vm11803_vm5, %v943_v47, %v947_v27  ;;  %v4920_v2 = vsel %vm12072_vm8, %v4918_v50, %v4919_v43  ;;  %v4929_v10 = vrot.slane %v9316_v0, 5  ;;  %v4932_v14 = vrot.slane %v9317_v3, 5  ;;  %v9321_v27 = vld [vmem:[%s11774_s23 + $0xd4] sm:$0x1]  ;;  %v9326_v3 = vld [vmem:[%s11774_s23 + $0xe8] sm:$0xf] }
  0xeb   : > { %v8976_v20 = vcombine.low %v938_v56, %v948_v60  ;;  %v9446_v30 = vcombine.low %v4917_v49, %v4920_v2  ;;  %v4927_v8 = vsel %vm12072_vm8, %v4925_v62, %v4926_v54  ;;  %v4928_v9 = vrot.slane %v4926_v54, 4  ;;  %v12414_v43 = vld [vmem:[%s11774_s23 + $0x14] sm:$0xf]  ;;  %v9325_v56 = vld [vmem:[%s11774_s23 + $0xe4] sm:$0xf] }
  0xec   : > { %v9447_v11 = vcombine.low %v4924_v58, %v4927_v8  ;;  %v4935_v16 = vrot.slane %v9318_v61, 5  ;;  %v4938_v18 = vrot.slane %v9319_v53, 5  ;;  %v4931_v21 = vrot.slane %v4929_v10, 4  ;;  %v9327_v58 = vld [vmem:[%s11774_s23 + $0xec] sm:$0xf] }
  0xed   : > { %10337 = vmatmul.mubr.msk.bf16.gmra.mrb[60].mxu1 %vm1047_vm4, %v8976_v20  ;;  %10635 = vmatmul.mubr.msk.bf16.gmra.mrb[28].mxu0 %vm1047_vm4, %v9446_v30  ;;  %v4930_v1 = vsel %vm12072_vm8, %v4928_v9, %v4929_v10  ;;  %v4934_v22 = vrot.slane %v4932_v14, 4  ;;  %v4941_v28 = vrot.slane %v9320_v15, 5  ;;  %v9010_v32 = vcombine.low %v12397_v57, %v12400_v31  ;;  %v12437_v53 = vld [vmem:[%s11774_s23 + $0x18] sm:$0xf]  ;;  %v12440_v30 = vld [vmem:[%s11774_s23 + $0x1c] sm:$0xf] }
  0xee   : > { %10342 = vmatprep.mubr.msk.bf16.mxu1 %vm1047_vm4, %v9009_v52  ;;  %10638 = vmatprep.mubr.msk.bf16.mxu0 %vm1047_vm4, %v9447_v11  ;;  %v4937_v26 = vrot.slane %v4935_v16, 4  ;;  %v4933_v34 = vsel %vm12072_vm8, %v4931_v21, %v4932_v14  ;;  %v9011_v46 = vcombine.low %v12411_v41, %v12414_v43  ;;  %v4940_v42 = vrot.slane %v4938_v18, 4  ;;  %v9328_v9 = vld [vmem:[%s11774_s23 + $0xf0] sm:$0xf]  ;;  %v11539_v10 = vld [vmem:[%s11774_s23 + $0x24] sm:$0xf] }
  0xef   : > { %v4936_v37 = vsel %vm12072_vm8, %v4934_v22, %v4935_v16  ;;  %v9448_v35 = vcombine.low %v4930_v1, %v4933_v34  ;;  %v4943_v49 = vrot.slane %v4941_v28, 4  ;;  %v4944_v50 = vrot.slane %v9321_v27, 5  ;;  %v12447_v14 = vld [vmem:[%s11774_s23 + $0x28] sm:$0xf] }
  0xf0   : > { %v4939_v47 = vsel %vm12072_vm8, %v4937_v26, %v4938_v18  ;;  %v4948_v63 = vrot.slane %v9323_v29, 5  ;;  %v9427_v52 = vrot.slane %v9419_v40, 9  ;;  %v4951_v54 = vrot.slane %v9324_v38, 5  ;;  %v9332_v29 = vld [vmem:[%s11774_s23 + $0x100] sm:$0xf] }
  0xf1   : > { %v9449_v19 = vcombine.low %v4936_v37, %v4939_v47  ;;  %v4942_v62 = vsel %vm12072_vm8, %v4940_v42, %v4941_v28  ;;  %v4945_v0 = vsel %vm12072_vm8, %v4943_v49, %v4944_v50  ;;  %v4954_v20 = vrot.slane %v9325_v56, 5  ;;  %v9329_v28 = vld [vmem:[%s11774_s23 + $0xf4] sm:$0xf]  ;;  %v12466_v47 = vld [vmem:[%s11774_s23 + $0x2c] sm:$0xf] }
  0xf2   : > { %v4950_v60 = vrot.slane %v4948_v63, 4  ;;  %v4949_v2 = vsel %vm12072_vm8, %v9427_v52, %v4948_v63  ;;  %v4960_v61 = vrot.slane %v9327_v58, 5  ;;  %v9012_v8 = vcombine.low %v12437_v53, %v12440_v30  ;;  %v12469_v42 = vld [vmem:[%s11774_s23 + $0x30] sm:$0xf]  ;;  %v9333_v49 = vld [vmem:[%s11774_s23 + $0x104] sm:$0xf] }
  0xf3   : > { %v9450_v11 = vcombine.low %v4942_v62, %v4945_v0  ;;  %v9013_v15 = vcombine.low %v11539_v10, %v12447_v14  ;;  %v4957_v16 = vrot.slane %v9326_v3, 5  ;;  %v4953_v1 = vrot.slane %v4951_v54, 4  ;;  %v9420_v50 = vld [vmem:[%s11774_s23 + $0xfc] sm:$0xe]  ;;  %v12476_v52 = vld [vmem:[%s11774_s23 + $0x34] sm:$0xf] }
  0xf4   : > { %v4956_v21 = vrot.slane %v4954_v20, 4  ;;  %v4962_v26 = vrot.slane %v4960_v61, 4  ;;  %v4963_v27 = vrot.slane %v9328_v9, 5  ;;  %v4966_v37 = vrot.slane %v9329_v28, 5 }
  0xf5   : > { %10343 = vmatmul.mubr.msk.bf16.vlgmr.msra.gmra.mrb[0].mxu1 %vm1047_vm4, %v9010_v32  ;;  %10639 = vmatmul.mubr.msk.bf16.gmra.mrb[32].mxu0 %vm1047_vm4, %v9448_v35  ;;  %v4959_v22 = vrot.slane %v4957_v16, 4  ;;  %v4955_v32 = vsel %vm12072_vm8, %v4953_v1, %v4954_v20  ;;  %v9330_v35 = vld [vmem:[%s11774_s23 + $0xf8] sm:$0x1]  ;;  %v9428_v3 = vrot.slane %v9420_v50, 9  ;;  %vm8768_vm9 = vcmask 60416  }
  0xf6   : > { %10407 = vmatpush3.bf16.msra.mxu1 %v12361_v45  ;;  %10346 = vmatprep.mubr.msk.bf16.mxu1 %vm1047_vm4, %v9011_v46  ;;  %v4952_v45 = vsel %vm12072_vm8, %v4950_v60, %v4951_v54  ;;  %v4958_v34 = vsel %vm12072_vm8, %v4956_v21, %v4957_v16  ;;  %v4964_v40 = vsel %vm12072_vm8, %v4962_v26, %v4963_v27  ;;  %v4973_v46 = vrot.slane %v9332_v29, 5  ;;  %v12479_v54 = vld [vmem:[%s11774_s23 + $0x38] sm:$0xf]  ;;  %v12502_v21 = vld [vmem:[%s11774_s23 + $0x3c] sm:$0xf] }
  0xf7   : > { %10642 = vmatprep.mubr.msk.bf16.mxu0 %vm1047_vm4, %v9449_v19  ;;  %v9451_v18 = vcombine.low %v4949_v2, %v4952_v45  ;;  %v4961_v38 = vsel %vm12072_vm8, %v4959_v22, %v4960_v61  ;;  %v9014_v19 = vcombine.low %v12466_v47, %v12469_v42  ;;  %v9452_v63 = vcombine.low %v4955_v32, %v4958_v34  ;;  %v9334_v45 = vld [vmem:[%s11774_s23 + $0x108] sm:$0xf]  ;;  %v9336_v61 = vld [vmem:[%s11774_s23 + $0x110] sm:$0xf]  ;;  %v12505_v22 = vld [vmem:[%s11774_s23 + $0x40] sm:$0xf] }
  0xf8   : > { %v9015_v56 = vcombine.low %v12476_v52, %v12479_v54  ;;  %v9453_v60 = vcombine.low %v4961_v38, %v4964_v40  ;;  %v4965_v58 = vrot.slane %v4963_v27, 4  ;;  %v4968_v62 = vrot.slane %v4966_v37, 4  ;;  %v9337_v27 = vld [vmem:[%s11774_s23 + $0x114] sm:$0xf]  ;;  %v11547_v29 = vld [vmem:[%s11774_s23 + $0x48] sm:$0xf] }
  0xf9   : > { %v4969_v0 = vrot.slane %v9330_v35, 5  ;;  %v4975_v20 = vrot.slane %v4973_v46, 4  ;;  %v4976_v2 = vrot.slane %v9333_v49, 5  ;;  %v4979_v10 = vrot.slane %v9334_v45, 5  ;;  %v12512_v32 = vld [vmem:[%s11774_s23 + $0x4c] sm:$0xf] }
  0xfa   : > { %v4974_v16 = vsel %vm12072_vm8, %v9428_v3, %v4973_v46  ;;  %v4985_v1 = vrot.slane %v9336_v61, 5  ;;  %v9016_v26 = vcombine.low %v12502_v21, %v12505_v22  ;;  %v9017_v34 = vcombine.low %v11547_v29, %v12512_v32 }
  0xfb   : > { %v4970_v9 = vsel %vm12072_vm8, %v4968_v62, %v4969_v0  ;;  %v4978_v35 = vrot.slane %v4976_v2, 4  ;;  %v4981_v46 = vrot.slane %v4979_v10, 4  ;;  %v4988_v50 = vrot.slane %v9337_v27, 5 }
  0xfc   : > { %v4987_v49 = vrot.slane %v4985_v1, 4 }
  0xfd   : > { %10347 = vmatmul.mubr.msk.bf16.gmra.mrb[4].mxu1 %vm1047_vm4, %v9012_v8  ;;  %10643 = vmatmul.mubr.msk.bf16.gmra.mrb[36].mxu0 %vm1047_vm4, %v9450_v11  ;;  %v4967_v8 = vsel %vm12072_vm8, %v4965_v58, %v4966_v37  ;;  %v9335_v11 = vld [vmem:[%s11774_s23 + $0x10c] sm:$0xf]  ;;  %v4980_v58 = vsel %vm12072_vm8, %v4978_v35, %v4979_v10  ;;  %v9342_v10 = vld [vmem:[%s11774_s23 + $0x128] sm:$0xf] }
  0xfe   : > { %10350 = vmatprep.mubr.msk.bf16.mxu1 %vm1047_vm4, %v9013_v15  ;;  %10646 = vmatprep.mubr.msk.bf16.mxu0 %vm1047_vm4, %v9451_v18  ;;  %v9698_v15 = vld [vmem:[%s14729_s1 + $0xe] sm:$0x3]  ;;  %v4977_v18 = vsel %vm12072_vm8, %v4975_v20, %v4976_v2  ;;  %v9454_v28 = vcombine.low %v4967_v8, %v4970_v9  ;;  %v4982_v37 = vrot.slane %v9335_v11, 5  ;;  %v4989_v20 = vsel %vm12072_vm8, %v4987_v49, %v4988_v50  ;;  %v9339_v2 = vld [vmem:[%s11774_s23 + $0x11c] sm:$0x1] }
  0xff   : > { %v12516_v38 = vand.u32 %v9698_v15, %v11769_v4  ;;  %v9455_v40 = vcombine.low %v4974_v16, %v4977_v18  ;;  %v12541_v8 = vld [vmem:[%s11774_s23 + $0x50] sm:$0xf]  ;;  %v12544_v9 = vld [vmem:[%s11774_s23 + $0x54] sm:$0xf]  ;;  %v9421_v15 = vld [vmem:[%s11774_s23 + $0x120] sm:$0xe] }
 0x100   : > { %v4983_v62 = vsel %vm12072_vm8, %v4981_v46, %v4982_v37  ;;  %v9018_v11 = vcombine.low %v12541_v8, %v12544_v9  ;;  %v12551_v18 = vld [vmem:[%s11774_s23 + $0x58] sm:$0xf]  ;;  %v5001_v35 = vrot.slane %v9342_v10, 5  ;;  %v9343_v46 = vld [vmem:[%s11774_s23 + $0x12c] sm:$0xf] }
 0x101   : > { %10736 = vmatprep.subr.bf16.mxu0 %v12516_v38  ;;  %v9456_v16 = vcombine.low %v4980_v58, %v4983_v62  ;;  %v11555_v10 = vld [vmem:[%s11774_s23 + $0x6c] sm:$0xf] }
 0x105   : > { %10351 = vmatmul.mubr.msk.bf16.gmra.mrb[8].mxu1 %vm1047_vm4, %v9014_v19  ;;  %10647 = vmatmul.mubr.msk.bf16.gmra.mrb[40].mxu0 %vm1047_vm4, %v9452_v63  ;;  %v4984_v19 = vrot.slane %v4982_v37, 4  ;;  %v9338_v63 = vld [vmem:[%s11774_s23 + $0x118] sm:$0xf]  ;;  %v9429_v37 = vrot.slane %v9421_v15, 9  ;;  %v12585_v15 = vld [vmem:[%s11774_s23 + $0x70] sm:$0xf] }
 0x106   : > { %10354 = vmatprep.mubr.msk.bf16.mxu1 %vm1047_vm4, %v9015_v56  ;;  %10650 = vmatprep.mubr.msk.bf16.mxu0 %vm1047_vm4, %v9453_v60  ;;  %v9341_v56 = vld [vmem:[%s11774_s23 + $0x124] sm:$0xf]  ;;  %v4991_v0 = vrot.slane %v9338_v63, 5  ;;  %v9344_v63 = vld [vmem:[%s11774_s23 + $0x130] sm:$0xf] }
 0x107   : > { %v9212_v60 = vld [vmem:[%s14729_s1 + $0x6] sm:$0x3]  ;;  %v4986_v3 = vsel %vm12072_vm8, %v4984_v19, %v4985_v1  ;;  %v4998_v45 = vrot.slane %v9341_v56, 5  ;;  %v12554_v1 = vld [vmem:[%s11774_s23 + $0x5c] sm:$0xf]  ;;  %v5004_v56 = vrot.slane %v9343_v46, 5 }
 0x108   : > { %v12538_v61 = vand.u32 %v9212_v60, %v11769_v4  ;;  %v9457_v27 = vcombine.low %v4986_v3, %v4989_v20  ;;  %v4993_v29 = vrot.slane %v4991_v0, 4  ;;  %v9345_v19 = vld [vmem:[%s11774_s23 + $0x134] sm:$0xf]  ;;  %v12575_v3 = vld [vmem:[%s11774_s23 + $0x60] sm:$0xf] }
 0x109   : > { %v4999_v60 = vsel %vm12072_vm8, %v9429_v37, %v4998_v45  ;;  %v5010_v62 = vrot.slane %v9345_v19, 5  ;;  %v12578_v20 = vld [vmem:[%s11774_s23 + $0x64] sm:$0xf] }
 0x10a   : > { %10472 = vmatprep.subr.bf16.mxu1 %v12538_v61 }
 0x10d   : > { %10355 = vmatmul.mubr.msk.bf16.gmra.mrb[12].mxu1 %vm1047_vm4, %v9016_v26  ;;  %10651 = vmatmul.mubr.msk.bf16.gmra.mrb[44].mxu0 %vm1047_vm4, %v9454_v28  ;;  %v9019_v26 = vcombine.low %v12551_v18, %v12554_v1  ;;  %v4990_v28 = vrot.slane %v4988_v50, 4 }
 0x10e   : > { %10358 = vmatprep.mubr.msk.bf16.mxu1 %vm1047_vm4, %v9017_v34  ;;  %10654 = vmatprep.mubr.msk.bf16.mxu0 %vm1047_vm4, %v9455_v40  ;;  %v4994_v34 = vrot.slane %v9339_v2, 5  ;;  %v5000_v40 = vrot.slane %v4998_v45, 4  ;;  %v9346_v2 = vld [vmem:[%s11774_s23 + $0x138] sm:$0xf]  ;;  %v5007_v45 = vrot.slane %v9344_v63, 5 }
 0x10f   : > { %v4992_v49 = vsel %vm12072_vm8, %v4990_v28, %v4991_v0  ;;  %v9020_v0 = vcombine.low %v12575_v3, %v12578_v20  ;;  %v5006_v28 = vrot.slane %v5004_v56, 4  ;;  %v5013_v37 = vrot.slane %v9346_v2, 5  ;;  %v9348_v63 = vld [vmem:[%s11774_s23 + $0x140] sm:$0x1]  ;;  %v12611_v2 = vld [vmem:[%s11774_s23 + $0x7c] sm:$0xf] }
 0x110   : > { %v4995_v50 = vsel %vm12072_vm8, %v4993_v29, %v4994_v34  ;;  %v5002_v58 = vsel %vm12072_vm8, %v5000_v40, %v5001_v35  ;;  %v5009_v29 = vrot.slane %v5007_v45, 4  ;;  %v5012_v34 = vrot.slane %v5010_v62, 4  ;;  %v9347_v40 = vld [vmem:[%s11774_s23 + $0x13c] sm:$0xf] }
 0x111   : > { %v5008_v46 = vsel %vm12072_vm8, %v5006_v28, %v5007_v45  ;;  %v5016_v19 = vrot.slane %v9347_v40, 5 }
 0x113   : > { %v5018_v45 = vrot.slane %v5016_v19, 4 }
 0x115   : > { %10359 = vmatmul.mubr.msk.bf16.gmra.mrb[16].mxu1 %vm1047_vm4, %v9018_v11  ;;  %10655 = vmatmul.mubr.msk.bf16.gmra.mrb[48].mxu0 %vm1047_vm4, %v9456_v16  ;;  %v9458_v11 = vcombine.low %v4992_v49, %v4995_v50  ;;  %v9021_v16 = vcombine.low %v11555_v10, %v12585_v15  ;;  %v5011_v49 = vsel %vm12072_vm8, %v5009_v29, %v5010_v62  ;;  %v12627_v29 = vld [vmem:[%s11774_s23 + $0x84] sm:$0xf] }
 0x116   : > { %10362 = vmatprep.mubr.msk.bf16.mxu1 %vm1047_vm4, %v9019_v26  ;;  %10658 = vmatprep.mubr.msk.bf16.mxu0 %vm1047_vm4, %v9457_v27  ;;  %v9459_v26 = vcombine.low %v4999_v60, %v5002_v58  ;;  %v5003_v27 = vrot.slane %v5001_v35, 4  ;;  %v5014_v50 = vsel %vm12072_vm8, %v5012_v34, %v5013_v37  ;;  %v12603_v60 = vld [vmem:[%s11774_s23 + $0x74] sm:$0xf]  ;;  %v12606_v58 = vld [vmem:[%s11774_s23 + $0x78] sm:$0xf] }
 0x117   : > { %v9461_v10 = vcombine.low %v5011_v49, %v5014_v50  ;;  %v12630_v34 = vld [vmem:[%s11774_s23 + $0x88] sm:$0xf]  ;;  %v12645_v50 = vld [vmem:[%s11774_s23 + $0x98] sm:$0xf] }
 0x118   : > { %v5005_v35 = vsel %vm12072_vm8, %v5003_v27, %v5004_v56  ;;  %v11424_v49 = vld [vmem:[%s11774_s23 + $0x48] sm:$0xff]  }
 0x119   : > { %v9460_v56 = vcombine.low %v5005_v35, %v5008_v46  ;;  %v11563_v35 = vld [vmem:[%s11774_s23 + $0x90] sm:$0xf]  ;;  %v12636_v46 = vld [vmem:[%s11774_s23 + $0x94] sm:$0xf] }
 0x11d   : > { %10363 = vmatmul.mubr.msk.bf16.gmra.mrb[20].mxu1 %vm1047_vm4, %v9020_v0  ;;  %10659 = vmatmul.mubr.msk.bf16.gmra.mrb[52].mxu0 %vm1047_vm4, %v9458_v11  ;;  %v9022_v0 = vcombine.low %v12603_v60, %v12606_v58  ;;  %v12614_v11 = vld [vmem:[%s11774_s23 + $0x80] sm:$0xf] }
 0x11e   : > { %10366 = vmatprep.mubr.msk.bf16.mxu1 %vm1047_vm4, %v9021_v16  ;;  %10662 = vmatprep.mubr.msk.bf16.mxu0 %vm1047_vm4, %v9459_v26  ;;  %v9023_v62 = vcombine.low %v12611_v2, %v12614_v11  ;;  %v5015_v16 = vrot.slane %v5013_v37, 4  ;;  %v5019_v26 = vrot.slane %v9348_v63, 5  ;;  %v9024_v37 = vcombine.low %v12627_v29, %v12630_v34  ;;  %v12648_v63 = vld [vmem:[%s11774_s23 + $0x9c] sm:$0xf] }
 0x120   : > { %v5017_v27 = vsel %vm12072_vm8, %v5015_v16, %v5016_v19  ;;  %v5020_v28 = vsel %vm12072_vm8, %v5018_v45, %v5019_v26  ;;  %v9025_v19 = vcombine.low %v11563_v35, %v12636_v46  ;;  %v12660_v16 = vld [vmem:[%s11774_s23 + $0xa4] sm:$0xf]  ;;  %v11428_v26 = vld [vmem:[%s11774_s23 + $0x58] sm:$0xff]   ;;  %v11571_v35 = vld [vmem:[%s11774_s23 + $0xb4] sm:$0xf] }
 0x121   : > { %v9462_v40 = vcombine.low %v5017_v27, %v5020_v28  ;;  %v12675_v28 = vld [vmem:[%s11774_s23 + $0xa8] sm:$0xf] }
 0x125   : > { %10367 = vmatmul.mubr.msk.bf16.gmra.mrb[24].mxu1 %vm1047_vm4, %v9022_v0  ;;  %10663 = vmatmul.mubr.msk.bf16.gmra.mrb[56].mxu0 %vm1047_vm4, %v9460_v56  ;;  %v9026_v0 = vcombine.low %v12645_v50, %v12648_v63  ;;  %v9779_v56 = vld [vmem:[%s14729_s1 + $0x10] sm:$0x3] }
 0x126   : > { %10370 = vmatprep.mubr.msk.bf16.mxu1 %vm1047_vm4, %v9023_v62  ;;  %10666 = vmatprep.mubr.msk.bf16.mxu0 %vm1047_vm4, %v9461_v10  ;;  %v11426_v62 = vld [vmem:[%s11774_s23 + $0x50] sm:$0xff]   ;;  %v12657_v10 = vld [vmem:[%s11774_s23 + $0xa0] sm:$0xf]  ;;  %v12666_v27 = vand.u32 %v9779_v56, %v11769_v4  ;;  %v12678_v4 = vld [vmem:[%s11774_s23 + $0xac] sm:$0xf] }
 0x127   : > { %v9027_v45 = vcombine.low %v12657_v10, %v12660_v16  ;;  %v12697_v56 = vld [vmem:[%s11774_s23 + $0xc0] sm:$0xf] }
 0x128   : > { %14742 = vst [vmem:[#allocation2_spill] sm:$0xff] %v12666_v27  ;;  %14743 = vst [vmem:[#allocation3_spill] sm:$0xff] %v12697_v56 }
 0x12d   : > { %10371 = vmatmul.mubr.msk.bf16.gmra.mrb[28].mxu1 %vm1047_vm4, %v9024_v37  ;;  %10667 = vmatmul.mubr.msk.bf16.gmra.mrb[60].mxu0 %vm1047_vm4, %v9462_v40  ;;  %v9028_v37 = vcombine.low %v12675_v28, %v12678_v4  ;;  %v11430_v40 = vld [vmem:[%s11774_s23 + $0x60] sm:$0xff]  }
 0x12e   : > { %10374 = vmatprep.mubr.msk.bf16.mxu1 %vm1047_vm4, %v9025_v19  ;;  %10672 = vmatprep.mubr.msk.bf16.mxu0 %vm1047_vm4, %v11424_v49  ;;  %v12685_v19 = vld [vmem:[%s11774_s23 + $0xb8] sm:$0xf]  ;;  %v11432_v49 = vld [vmem:[%s11774_s23 + $0x6c] sm:$0xff]  }
 0x135   : > { %10375 = vmatmul.mubr.msk.bf16.gmra.mrb[32].mxu1 %vm1047_vm4, %v9026_v0  ;;  %10673 = vmatmul.mubr.msk.bf16.vlgmr.msra.gmra.mrb[0].mxu0 %vm1047_vm4, %v11426_v62  ;;  %v12694_v0 = vld [vmem:[%s11774_s23 + $0xbc] sm:$0xf] }
 0x136   : > { %10378 = vmatprep.mubr.msk.bf16.mxu1 %vm1047_vm4, %v9027_v45  ;;  %10737 = vmatpush3.bf16.msra.mxu0 %v12516_v38  ;;  %v9029_v38 = vcombine.low %v11571_v35, %v12685_v19  ;;  %v9030_v62 = vcombine.low %v12694_v0, %v12697_v56  ;;  %v11434_v45 = vld [vmem:[%s11774_s23 + $0x74] sm:$0xff]   ;;  %v11436_v35 = vld [vmem:[%s11774_s23 + $0x7c] sm:$0xff]  }
 0x137   : > { %10676 = vmatprep.mubr.msk.bf16.mxu0 %vm1047_vm4, %v11428_v26  ;;  %10802 = vmatprep.subr.bf16.mxu0 %v12666_v27  ;;  %v12703_v26 = vld [vmem:[%s11774_s23 + $0xc4] sm:$0xf]  ;;  %v12726_v56 = vld [vmem:[%s11774_s23 + $0xdc] sm:$0xf] }
 0x138   : > { %14744 = vst [vmem:[#allocation4_spill] sm:$0xff] %v12703_v26  ;;  %14747 = vst [vmem:[#allocation7_spill] sm:$0xff] %v12726_v56 }
 0x13d   : > { %10379 = vmatmul.mubr.msk.bf16.gmra.mrb[36].mxu1 %vm1047_vm4, %v9028_v37  ;;  %10677 = vmatmul.mubr.msk.bf16.gmra.mrb[4].mxu0 %vm1047_vm4, %v11430_v40  ;;  %v12706_v37 = vld [vmem:[%s11774_s23 + $0xc8] sm:$0xf] }
 0x13e   : > { %10382 = vmatprep.mubr.msk.bf16.mxu1 %vm1047_vm4, %v9029_v38  ;;  %10680 = vmatprep.mubr.msk.bf16.mxu0 %vm1047_vm4, %v11432_v49  ;;  %14745 = vst [vmem:[#allocation5_spill] sm:$0xff] %v12706_v37  ;;  %v9031_v40 = vcombine.low %v12703_v26, %v12706_v37  ;;  %v12716_v38 = vld [vmem:[%s11774_s23 + $0xcc] sm:$0xf]  ;;  %v12719_v49 = vld [vmem:[%s11774_s23 + $0xd0] sm:$0xf]  ;;  %v11438_v37 = vld [vmem:[%s11774_s23 + $0x84] sm:$0xff]  }
 0x13f   : > { %14746 = vst [vmem:[#allocation6_spill] sm:$0xff] %v12719_v49  ;;  %v9032_v27 = vcombine.low %v12716_v38, %v12719_v49  ;;  %v11579_v26 = vld [vmem:[%s11774_s23 + $0xd8] sm:$0xf] }
 0x140   : > { %v11442_v49 = vld [vmem:[%s11774_s23 + $0x98] sm:$0xff]  }
 0x145   : > { %10383 = vmatmul.mubr.msk.bf16.gmra.mrb[40].mxu1 %vm1047_vm4, %v9030_v62  ;;  %10681 = vmatmul.mubr.msk.bf16.gmra.mrb[8].mxu0 %vm1047_vm4, %v11434_v45  ;;  %v9033_v62 = vcombine.low %v11579_v26, %v12726_v56  ;;  %v11440_v45 = vld [vmem:[%s11774_s23 + $0x90] sm:$0xff]   ;;  %v9035_v26 = vcombine.low %v12204_v59, %v12215_v13  ;;  %v11444_v56 = vld [vmem:[%s11774_s23 + $0xa0] sm:$0xff]   ;;  %v2017_v59 = vrot.slane %v12369_v55, 5  ;;  %v2029_v55 = vrot.slane %v12414_v43, 5 }
 0x146   : > { %10386 = vmatprep.mubr.msk.bf16.mxu1 %vm1047_vm4, %v9031_v40  ;;  %10684 = vmatprep.mubr.msk.bf16.mxu0 %vm1047_vm4, %v11436_v35  ;;  %v12735_v40 = vld [vmem:[%s11774_s23 + $0xe0] sm:$0xf] }
 0x147   : > { %v9034_v35 = vcombine.low %v12735_v40, %v12194_v48  ;;  %v11446_v48 = vld [vmem:[%s11774_s23 + $0xa8] sm:$0xff]   ;;  %v1988_v13 = vld [vmem:[%s11774_s23] sm:$0xe]  ;;  %v2031_v43 = vrot.slane %v2029_v55, 4 }
 0x14d   : > { %10387 = vmatmul.mubr.msk.bf16.gmra.mrb[44].mxu1 %vm1047_vm4, %v9032_v27  ;;  %10685 = vmatmul.mubr.msk.bf16.gmra.mrb[12].mxu0 %vm1047_vm4, %v11438_v37  ;;  %v9036_v27 = vcombine.low %v12219_v12, %v12234_v39  ;;  %v9037_v37 = vcombine.low %v12255_v6, %v12264_v17  ;;  %v11450_v12 = vld [vmem:[%s11774_s23 + $0xbc] sm:$0xff]   ;;  %v9039_v39 = vcombine.low %v12293_v51, %v12303_v5  ;;  %v11452_v6 = vld [vmem:[%s11774_s23 + $0xc4] sm:$0xff]   ;;  %v9073_v17 = vrot.slane %v1988_v13, 9 }
 0x14e   : > { %10390 = vmatprep.mubr.msk.bf16.mxu1 %vm1047_vm4, %v9033_v62  ;;  %10688 = vmatprep.mubr.msk.bf16.mxu0 %vm1047_vm4, %v11440_v45  ;;  %v11448_v62 = vld [vmem:[%s11774_s23 + $0xb4] sm:$0xff]   ;;  %v2020_v45 = vrot.slane %v12397_v57, 5 }
 0x14f   : > { %v2018_v51 = vsel %vm12072_vm8, %v9073_v17, %v2017_v59  ;;  %v11582_v17 = vld [vmem:[%s11774_s23 + $0x20] sm:$0x1] }
 0x150   : > { %v2022_v57 = vrot.slane %v2020_v45, 4 }
 0x155   : > { %10391 = vmatmul.mubr.msk.bf16.gmra.mrb[48].mxu1 %vm1047_vm4, %v9034_v35  ;;  %10689 = vmatmul.mubr.msk.bf16.gmra.mrb[16].mxu0 %vm1047_vm4, %v11442_v49  ;;  %v2019_v49 = vrot.slane %v2017_v59, 4  ;;  %v2026_v35 = vrot.slane %v12411_v41, 5  ;;  %v2045_v59 = vrot.slane %v12466_v47, 5  ;;  %v2054_v47 = vrot.slane %v12479_v54, 5 }
 0x156   : > { %10394 = vmatprep.mubr.msk.bf16.mxu1 %vm1047_vm4, %v9035_v26  ;;  %10692 = vmatprep.mubr.msk.bf16.mxu0 %vm1047_vm4, %v11444_v56  ;;  %v9038_v56 = vcombine.low %v12269_v23, %v12283_v44  ;;  %v2023_v26 = vrot.slane %v12400_v31, 5  ;;  %v2032_v23 = vrot.slane %v12437_v53, 5  ;;  %v2035_v31 = vrot.slane %v12440_v30, 5 }
 0x157   : > { %v2028_v44 = vrot.slane %v2026_v35, 4  ;;  %v2021_v5 = vsel %vm12072_vm8, %v2019_v49, %v2020_v45  ;;  %v9040_v53 = vcombine.low %v12315_v25, %v12332_v24  ;;  %v2038_v25 = vrot.slane %v11582_v17, 5 }
 0x158   : > { %v2025_v41 = vrot.slane %v2023_v26, 4  ;;  %v9082_v13 = vcombine.low %v2018_v51, %v2021_v5  ;;  %v2051_v54 = vrot.slane %v12476_v52, 5  ;;  %v2079_v17 = vrot.slane %v12554_v1, 5 }
 0x159   : > { %v2030_v30 = vsel %vm12072_vm8, %v2028_v44, %v2029_v55  ;;  %v2060_v55 = vrot.slane %v12505_v22, 5  ;;  %v2067_v44 = vrot.slane %v12512_v32, 5  ;;  %v2073_v22 = vrot.slane %v12544_v9, 5 }
 0x15a   : > { %v2027_v24 = vsel %vm12072_vm8, %v2025_v41, %v2026_v35  ;;  %v2047_v35 = vrot.slane %v2045_v59, 4  ;;  %v2053_v32 = vrot.slane %v2051_v54, 4  ;;  %v2056_v41 = vrot.slane %v2054_v47, 4 }
 0x15d   : > { %10395 = vmatmul.mubr.msk.bf16.gmra.mrb[52].mxu1 %vm1047_vm4, %v9036_v27  ;;  %10693 = vmatmul.mubr.msk.bf16.gmra.mrb[20].mxu0 %vm1047_vm4, %v11446_v48  ;;  %v2034_v27 = vrot.slane %v2032_v23, 4  ;;  %v1989_v48 = vld [vmem:[%s11774_s23 + $0x24] sm:$0xe] }
 0x15e   : > { %10398 = vmatprep.mubr.msk.bf16.mxu1 %vm1047_vm4, %v9037_v37  ;;  %10696 = vmatprep.mubr.msk.bf16.mxu0 %vm1047_vm4, %v11448_v62  ;;  %v2042_v37 = vrot.slane %v12447_v14, 5  ;;  %v11454_v62 = vld [vmem:[%s11774_s23 + $0xcc] sm:$0xff]   ;;  %v2033_v14 = vsel %vm12072_vm8, %v2031_v43, %v2032_v23  ;;  %v9074_v49 = vrot.slane %v1989_v48, 9 }
 0x15f   : > { %v9084_v5 = vcombine.low %v2030_v30, %v2033_v14  ;;  %v2085_v14 = vrot.slane %v12578_v20, 5 }
 0x160   : > { %v2044_v45 = vrot.slane %v2042_v37, 4  ;;  %v12818_v52 = vsel %vm12072_vm8, %v9074_v49, %v2042_v37 }
 0x162   : > { %v12822_v43 = vsel %vm12072_vm8, %v2044_v45, %v2045_v59  ;;  %v2076_v59 = vrot.slane %v12551_v18, 5 }
 0x163   : > { %v9086_v18 = vcombine.low %v12818_v52, %v12822_v43  ;;  %v2095_v52 = vrot.slane %v12603_v60, 5  ;;  %v11458_v43 = vld [vmem:[%s11774_s23 + $0xf0] sm:$0xff]   ;;  %v2101_v60 = vrot.slane %v12611_v2, 5 }
 0x164   : > { %v2078_v45 = vrot.slane %v2076_v59, 4 }
 0x165   : > { %10399 = vmatmul.mubr.msk.bf16.gmra.mrb[56].mxu1 %vm1047_vm4, %v9038_v56  ;;  %10697 = vmatmul.mubr.msk.bf16.gmra.mrb[24].mxu0 %vm1047_vm4, %v11450_v12  ;;  %v2048_v56 = vrot.slane %v12469_v42, 5  ;;  %v11455_v12 = vld [vmem:[%s11774_s23 + $0xd8] sm:$0xff]   ;;  %v12800_v42 = vsel %vm12072_vm8, %v2034_v27, %v2035_v31  ;;  %v2062_v27 = vrot.slane %v2060_v55, 4  ;;  %v2097_v2 = vrot.slane %v2095_v52, 4 }
 0x166   : > { %10402 = vmatprep.mubr.msk.bf16.mxu1 %vm1047_vm4, %v9039_v39  ;;  %10700 = vmatprep.mubr.msk.bf16.mxu0 %vm1047_vm4, %v11452_v6  ;;  %v2024_v39 = vsel %vm12072_vm8, %v2022_v57, %v2023_v26  ;;  %v2037_v6 = vrot.slane %v2035_v31, 4  ;;  %v2057_v26 = vrot.slane %v12502_v21, 5  ;;  %v1990_v57 = vld [vmem:[%s11774_s23 + $0x48] sm:$0xe]  ;;  %v2070_v21 = vrot.slane %v12541_v8, 5 }
 0x167   : > { %v2050_v23 = vrot.slane %v2048_v56, 4  ;;  %v9083_v51 = vcombine.low %v2024_v39, %v2027_v24  ;;  %v11583_v8 = vld [vmem:[%s11774_s23 + $0x44] sm:$0x1]  ;;  %v12828_v9 = vsel %vm12072_vm8, %v2047_v35, %v2048_v56  ;;  %v9075_v37 = vrot.slane %v1990_v57, 9  ;;  %v11457_v39 = vld [vmem:[%s11774_s23 + $0xe8] sm:$0xff]  }
 0x168   : > { %v12814_v31 = vsel %vm12072_vm8, %v2037_v6, %v2038_v25  ;;  %v2063_v48 = vrot.slane %v11583_v8, 5  ;;  %v2072_v30 = vrot.slane %v2070_v21, 4  ;;  %v2075_v6 = vrot.slane %v2073_v22, 4  ;;  %v9626_v57 = vld [vmem:[%s11774_s23 + $0x48] sm:$0xf] }
 0x169   : > { %v12839_v25 = vsel %vm12072_vm8, %v2053_v32, %v2054_v47  ;;  %v12843_v56 = vsel %vm12072_vm8, %v2056_v41, %v2057_v26  ;;  %v2082_v24 = vrot.slane %v12575_v3, 5  ;;  %v9085_v49 = vcombine.low %v12800_v42, %v12814_v31  ;;  %v9627_v41 = vld [vmem:[%s11774_s23 + $0x4c] sm:$0xf] }
 0x16a   : > { %v12858_v47 = vsel %vm12072_vm8, %v2062_v27, %v2063_v48  ;;  %v12866_v20 = vsel %vm12072_vm8, %v9075_v37, %v2067_v44  ;;  %v2081_v35 = vrot.slane %v2079_v17, 4  ;;  %v2098_v32 = vrot.slane %v12606_v58, 5  ;;  %v11459_v48 = vld [vmem:[%s11774_s23 + $0xfc] sm:$0xff]  }
 0x16b   : > { %v2104_v8 = vrot.slane %v12614_v11, 5  ;;  %v6326_v58 = vshrl.u32 %v9626_v57, 16  ;;  %v6329_v37 = vshll.u32 %v9626_v57, 16 }
 0x16d   : > { %10403 = vmatmul.mubr.msk.bf16.gmra.mrb[60].mxu1 %vm1047_vm4, %v9040_v53  ;;  %10701 = vmatmul.mubr.msk.bf16.gmra.mrb[28].mxu0 %vm1047_vm4, %v11454_v62  ;;  %v2059_v53 = vrot.slane %v2057_v26, 4  ;;  %v11456_v62 = vld [vmem:[%s11774_s23 + $0xe0] sm:$0xff]   ;;  %v12878_v26 = vsel %vm12072_vm8, %v2072_v30, %v2073_v22  ;;  %v11584_v22 = vld [vmem:[%s11774_s23 + $0x68] sm:$0x1]  ;;  %v9628_v30 = vld [vmem:[%s11774_s23 + $0x50] sm:$0xf] }
 0x16e   : > { %10408 = vmatprep.mubr.msk.bf16.mxu1 %vm1047_vm4, %v9082_v13  ;;  %10704 = vmatprep.mubr.msk.bf16.mxu0 %vm1047_vm4, %v11455_v12  ;;  %v12832_v13 = vsel %vm12072_vm8, %v2050_v23, %v2051_v54  ;;  %v2069_v12 = vrot.slane %v2067_v44, 4  ;;  %v1991_v23 = vld [vmem:[%s11774_s23 + $0x6c] sm:$0xe]  ;;  %v2084_v44 = vrot.slane %v2082_v24, 4  ;;  %v2088_v31 = vrot.slane %v11584_v22, 5 }
 0x16f   : > { %v12854_v1 = vsel %vm12072_vm8, %v2059_v53, %v2060_v55  ;;  %v9087_v3 = vcombine.low %v12828_v9, %v12832_v13  ;;  %v12882_v55 = vsel %vm12072_vm8, %v2075_v6, %v2076_v59  ;;  %v9076_v27 = vrot.slane %v1991_v23, 9 }
 0x170   : > { %v12870_v42 = vsel %vm12072_vm8, %v2069_v12, %v2070_v21  ;;  %v9089_v54 = vcombine.low %v12854_v1, %v12858_v47  ;;  %v9091_v53 = vcombine.low %v12878_v26, %v12882_v55  ;;  %v6335_v6 = vshll.u32 %v9627_v41, 16 }
 0x171   : > { %v9090_v21 = vcombine.low %v12866_v20, %v12870_v42  ;;  %v6339_v59 = vshrl.u32 %v9627_v41, 16  ;;  %v12915_v11 = vsel %vm12072_vm8, %v2084_v44, %v2085_v14  ;;  %v6328_v23 = vrot.slane %v6326_v58, 4 }
 0x172   : > { %v6331_v44 = vrot.slane %v6329_v37, 5  ;;  %v6349_v57 = vshrl.u32 %v9628_v30, 16  ;;  %v12934_v22 = vrot.slane %v6335_v6, 5  ;;  %v1992_v6 = vld [vmem:[%s11774_s23 + $0x90] sm:$0xe] }
 0x175   : > { %10409 = vmatmul.mubr.msk.bf16.vlgmr.msra.gmra.mrb[0].mxu1 %vm1047_vm4, %v9083_v51  ;;  %10705 = vmatmul.mubr.msk.bf16.gmra.mrb[32].mxu0 %vm1047_vm4, %v11456_v62  ;;  %v2087_v51 = vrot.slane %v2085_v14, 4  ;;  %v12907_v62 = vsel %vm12072_vm8, %v2081_v35, %v2082_v24  ;;  %v2100_v24 = vrot.slane %v2098_v32, 4  ;;  %v2110_v14 = vrot.slane %v12630_v34, 5  ;;  %v9629_v35 = vld [vmem:[%s11774_s23 + $0x54] sm:$0xf] }
 0x176   : > { %10473 = vmatpush3.bf16.msra.mxu1 %v12538_v61  ;;  %10412 = vmatprep.mubr.msk.bf16.mxu1 %vm1047_vm4, %v9084_v5  ;;  %v9088_v61 = vcombine.low %v12839_v25, %v12843_v56  ;;  %v2092_v5 = vrot.slane %v12585_v15, 5  ;;  %v12901_v15 = vsel %vm12072_vm8, %v2078_v45, %v2079_v17  ;;  %v2103_v45 = vrot.slane %v2101_v60, 4 }
 0x177   : > { %10708 = vmatprep.mubr.msk.bf16.mxu0 %vm1047_vm4, %v11457_v39  ;;  %10868 = vmatprep.subr.bf16.mxu1 %v11781_v7  ;;  %v2107_v39 = vrot.slane %v12627_v29, 5  ;;  %v12919_v17 = vsel %vm12072_vm8, %v2087_v51, %v2088_v31  ;;  %v6345_v51 = vshll.u32 %v9628_v30, 16  ;;  %v6341_v31 = vrot.slane %v6339_v59, 4 }
 0x178   : > { %v2094_v12 = vrot.slane %v2092_v5, 4  ;;  %v12925_v29 = vsel %vm12072_vm8, %v9076_v27, %v2092_v5  ;;  %v12938_v34 = vsel %vm12072_vm8, %v2097_v2, %v2098_v32  ;;  %v12942_v41 = vsel %vm12072_vm8, %v2100_v24, %v2101_v60  ;;  %v11461_v32 = vld [vmem:[%s11774_s23 + $0x10c] sm:$0xff]  }
 0x179   : > { %v2109_v5 = vrot.slane %v2107_v39, 4  ;;  %v6359_v27 = vshrl.u32 %v9629_v35, 16  ;;  %v12947_v58 = vsel %vm12072_vm8, %v2103_v45, %v2104_v8  ;;  %v2112_v37 = vrot.slane %v2110_v14, 4 }
 0x17a   : > { %v2117_v59 = vrot.slane %v12636_v46, 5  ;;  %v6332_v60 = vor.u32 %v6331_v44, %v6328_v23  ;;  %v6347_v2 = vrot.slane %v6345_v51, 5  ;;  %v6351_v24 = vrot.slane %v6349_v57, 4  ;;  %v9630_v51 = vld [vmem:[%s11774_s23 + $0x58] sm:$0xf] }
 0x17b   : > { %v6342_v45 = vor.u32 %v6341_v31, %v12934_v22  ;;  %v9095_v46 = vcombine.low %v12938_v34, %v12942_v41  ;;  %v6361_v44 = vrot.slane %v6359_v27, 4  ;;  %v12982_v13 = vsel %vm12072_vm8, %v2109_v5, %v2110_v14  ;;  %v9631_v57 = vld [vmem:[%s11774_s23 + $0x5c] sm:$0xf]  ;;  %v14752_v41 = vld [vmem:[#allocation6_spill] sm:$0xff] }
 0x17c   : > { %v2119_v56 = vrot.slane %v2117_v59, 4  ;;  %v6352_v31 = vor.u32 %v6351_v24, %v6347_v2  ;;  %v2126_v14 = vrot.slane %v12657_v10, 5  ;;  %v2129_v5 = vrot.slane %v12660_v16, 5  ;;  %v11463_v10 = vld [vmem:[%s11774_s23 + $0x120] sm:$0xff]  }
 0x17d   : > { %10413 = vmatmul.mubr.msk.bf16.gmra.mrb[4].mxu1 %vm1047_vm4, %v9085_v49  ;;  %10709 = vmatmul.mubr.msk.bf16.gmra.mrb[36].mxu0 %vm1047_vm4, %v11458_v43  ;;  %v2106_v49 = vrot.slane %v2104_v8, 4  ;;  %v6355_v43 = vshll.u32 %v9629_v35, 16  ;;  %v9092_v35 = vcombine.low %v12901_v15, %v12907_v62  ;;  %v9093_v8 = vcombine.low %v12915_v11, %v12919_v17 }
 0x17e   : > { %10416 = vmatprep.mubr.msk.bf16.mxu1 %vm1047_vm4, %v9086_v18  ;;  %10712 = vmatprep.mubr.msk.bf16.mxu0 %vm1047_vm4, %v11459_v48  ;;  %v12932_v18 = vsel %vm12072_vm8, %v2094_v12, %v2095_v52  ;;  %v11460_v48 = vld [vmem:[%s11774_s23 + $0x104] sm:$0xff]   ;;  %v11585_v12 = vld [vmem:[%s11774_s23 + $0x8c] sm:$0x1]  ;;  %v6369_v27 = vshrl.u32 %v9630_v51, 16 }
 0x17f   : > { %v12951_v52 = vsel %vm12072_vm8, %v2106_v49, %v2107_v39  ;;  %v2113_v30 = vrot.slane %v11585_v12, 5  ;;  %v9094_v39 = vcombine.low %v12925_v29, %v12932_v18  ;;  %v2120_v49 = vrot.slane %v12645_v50, 5 }
 0x180   : > { %v12971_v23 = vrot.slane %v6355_v43, 5  ;;  %v2123_v50 = vrot.slane %v12648_v63, 5  ;;  %v6343_v43 = vrot.slane %v6342_v45, 4  ;;  %v6375_v12 = vshll.u32 %v9631_v57, 16 }
 0x181   : > { %v12990_v25 = vsel %vm12072_vm8, %v2112_v37, %v2113_v30  ;;  %v13005_v16 = vsel %vm12072_vm8, %v2119_v56, %v2120_v49  ;;  %v2131_v37 = vrot.slane %v2129_v5, 4  ;;  %v6371_v9 = vrot.slane %v6369_v27, 4 }
 0x182   : > { %v6362_v63 = vor.u32 %v6361_v44, %v12971_v23  ;;  %v2125_v24 = vrot.slane %v2123_v50, 4  ;;  %v6353_v44 = vrot.slane %v6352_v31, 4  ;;  %v9635_v31 = vld [vmem:[%s11774_s23 + $0x6c] sm:$0xf] }
 0x184   : > { %v13033_v47 = vsel %vm12072_vm8, %v2125_v24, %v2126_v14  ;;  %v6358_v42 = vsel %vm11803_vm5, %v6353_v44, %v12971_v23 }
 0x185   : > { %10417 = vmatmul.mubr.msk.bf16.gmra.mrb[8].mxu1 %vm1047_vm4, %v9087_v3  ;;  %10713 = vmatmul.mubr.msk.bf16.gmra.mrb[40].mxu0 %vm1047_vm4, %v11460_v48  ;;  %v9077_v3 = vrot.slane %v1992_v6, 9  ;;  %v6365_v48 = vshll.u32 %v9630_v51, 16  ;;  %v11462_v6 = vld [vmem:[%s11774_s23 + $0x114] sm:$0xff]   ;;  %v2128_v51 = vrot.slane %v2126_v14, 4 }
 0x186   : > { %10420 = vmatprep.mubr.msk.bf16.mxu1 %vm1047_vm4, %v9088_v61  ;;  %10716 = vmatprep.mubr.msk.bf16.mxu0 %vm1047_vm4, %v11461_v32  ;;  %v6333_v61 = vrot.slane %v6332_v60, 4  ;;  %v6379_v32 = vshrl.u32 %v9631_v57, 16  ;;  %v2122_v60 = vrot.slane %v2120_v49, 4  ;;  %v6348_v57 = vsel %vm11803_vm5, %v6343_v43, %v6347_v2  ;;  %v9633_v2 = vld [vmem:[%s11774_s23 + $0x64] sm:$0xf] }
 0x187   : > { %v13000_v30 = vsel %vm12072_vm8, %v9077_v3, %v2117_v59  ;;  %v2132_v59 = vrot.slane %v12675_v28, 5  ;;  %v9632_v3 = vld [vmem:[%s11774_s23 + $0x60] sm:$0xf]  ;;  %v6363_v49 = vrot.slane %v6362_v63, 4  ;;  %v6367_v56 = vrot.slane %v6365_v48, 5 }
 0x188   : > { %v6338_v45 = vsel %vm11803_vm5, %v6333_v61, %v12934_v22  ;;  %v13018_v22 = vrot.slane %v6375_v12, 5  ;;  %v6381_v61 = vrot.slane %v6379_v32, 4  ;;  %v9098_v28 = vcombine.low %v13000_v30, %v13005_v16  ;;  %v9636_v63 = vld [vmem:[%s11774_s23 + $0x70] sm:$0xf]  ;;  %v11464_v32 = vld [vmem:[%s11774_s23 + $0x128] sm:$0xff]  }
 0x189   : > { %v13029_v1 = vsel %vm12072_vm8, %v2122_v60, %v2123_v50  ;;  %v13038_v20 = vcombine.low %v6338_v45, %v6348_v57  ;;  %v6385_v50 = vshll.u32 %v9632_v3, 16  ;;  %v6372_v43 = vor.u32 %v6371_v9, %v6367_v56  ;;  %v11586_v60 = vld [vmem:[%s11774_s23 + $0xb0] sm:$0x1] }
 0x18a   : > { %v2134_v14 = vrot.slane %v2132_v59, 4  ;;  %v6389_v27 = vshrl.u32 %v9632_v3, 16  ;;  %v6368_v48 = vsel %vm11803_vm5, %v6363_v49, %v6367_v56  ;;  %v6382_v23 = vor.u32 %v6381_v61, %v13018_v22  ;;  %v11465_v45 = vld [vmem:[%s11774_s23 + $0x130] sm:$0xff]  }
 0x18b   : > { %v6395_v12 = vshll.u32 %v9633_v2, 16  ;;  %v2138_v24 = vrot.slane %v11586_v60, 5  ;;  %v9099_v9 = vcombine.low %v13029_v1, %v13033_v47  ;;  %v13061_v44 = vrot.slane %v6385_v50, 5 }
 0x18c   : > { %v6419_v57 = vshll.u32 %v9636_v63, 16  ;;  %v13064_v3 = vcombine.low %v6358_v42, %v6368_v48  ;;  %v6373_v56 = vrot.slane %v6372_v43, 4  ;;  %v6391_v61 = vrot.slane %v6389_v27, 4  ;;  %v9638_v48 = vld [vmem:[%s11774_s23 + $0x78] sm:$0xf] }
 0x18d   : > { %10421 = vmatmul.mubr.msk.bf16.gmra.mrb[12].mxu1 %vm1047_vm4, %v9089_v54  ;;  %10717 = vmatmul.mubr.msk.bf16.gmra.mrb[44].mxu0 %vm1047_vm4, %v11462_v6  ;;  %v2135_v54 = vrot.slane %v12678_v4, 5  ;;  %v13050_v4 = vsel %vm12072_vm8, %v2131_v37, %v2132_v59  ;;  %v6413_v37 = vshll.u32 %v9635_v31, 16  ;;  %v6423_v59 = vshrl.u32 %v9636_v63, 16 }
 0x18e   : > { %10424 = vmatprep.mubr.msk.bf16.mxu1 %vm1047_vm4, %v9090_v21  ;;  %10720 = vmatprep.mubr.msk.bf16.mxu0 %vm1047_vm4, %v11463_v10  ;;  %v13045_v21 = vsel %vm12072_vm8, %v2128_v51, %v2129_v5  ;;  %v6399_v5 = vshrl.u32 %v9633_v2, 16  ;;  %v6410_v10 = vshrl.u32 %v9635_v31, 16  ;;  %v9634_v51 = vld [vmem:[%s11774_s23 + $0x68] sm:$0x1]  ;;  %v9637_v2 = vld [vmem:[%s11774_s23 + $0x74] sm:$0xf]  ;;  %v6392_v62 = vor.u32 %v6391_v61, %v13061_v44 }
 0x18f   : > { %v2137_v6 = vrot.slane %v2135_v54, 4  ;;  %v6383_v31 = vrot.slane %v6382_v23, 4  ;;  %v13075_v50 = vsel %vm12072_vm8, %v2134_v14, %v2135_v54  ;;  %v13077_v63 = vrot.slane %v6395_v12, 5  ;;  %v11467_v61 = vld [vmem:[%s11774_s23 + $0x144] sm:$0xff]  }
 0x190   : > { %v6401_v42 = vrot.slane %v6399_v5, 4  ;;  %v6405_v55 = vshll.u32 %v9634_v51, 16  ;;  %v6412_v54 = vrot.slane %v6410_v10, 4  ;;  %v6415_v43 = vrot.slane %v6413_v37, 5  ;;  %v11466_v10 = vld [vmem:[%s11774_s23 + $0x138] sm:$0xff]   ;;  %v14748_v51 = vld [vmem:[#allocation3_spill] sm:$0xff] }
 0x191   : > { %v13087_v26 = vsel %vm12072_vm8, %v2137_v6, %v2138_v24  ;;  %v13091_v14 = vrot.slane %v6419_v57, 5  ;;  %v6425_v27 = vrot.slane %v6423_v59, 4  ;;  %v6429_v23 = vshll.u32 %v9637_v2, 16  ;;  %v9640_v59 = vld [vmem:[%s11774_s23 + $0x80] sm:$0xf] }
 0x192   : > { %v6433_v15 = vshrl.u32 %v9637_v2, 16  ;;  %v6439_v12 = vshll.u32 %v9638_v48, 16  ;;  %v6443_v5 = vshrl.u32 %v9638_v48, 16  ;;  %v6388_v6 = vsel %vm11803_vm5, %v6383_v31, %v13061_v44 }
 0x193   : > { %v6402_v60 = vor.u32 %v6401_v42, %v13077_v63  ;;  %v9101_v37 = vcombine.low %v13075_v50, %v13087_v26  ;;  %v2148_v57 = vrot.slane %v14748_v51, 5  ;;  %v6431_v2 = vrot.slane %v6429_v23, 5  ;;  %v9639_v42 = vld [vmem:[%s11774_s23 + $0x7c] sm:$0xf]  ;;  %v9652_v26 = vld [vmem:[%s11774_s23 + $0xb0] sm:$0x1] }
 0x194   : > { %v6435_v44 = vrot.slane %v6433_v15, 4  ;;  %v6393_v31 = vrot.slane %v6392_v62, 4  ;;  %v6445_v49 = vrot.slane %v6443_v5, 4  ;;  %v6463_v51 = vshrl.u32 %v9640_v59, 16  ;;  %v14749_v15 = vld [vmem:[#allocation4_spill] sm:$0xff]  ;;  %v14750_v5 = vld [vmem:[#allocation5_spill] sm:$0xff] }
 0x195   : > { %10425 = vmatmul.mubr.msk.bf16.gmra.mrb[16].mxu1 %vm1047_vm4, %v9091_v53  ;;  %10721 = vmatmul.mubr.msk.bf16.gmra.mrb[48].mxu0 %vm1047_vm4, %v11464_v32  ;;  %v1993_v53 = vld [vmem:[%s11774_s23 + $0xb4] sm:$0xe]  ;;  %v6378_v32 = vsel %vm11803_vm5, %v6373_v56, %v13018_v22  ;;  %v6407_v22 = vrot.slane %v6405_v55, 5  ;;  %v6426_v56 = vor.u32 %v6425_v27, %v13091_v14  ;;  %v2150_v23 = vrot.slane %v2148_v57, 4 }
 0x196   : > { %10428 = vmatprep.mubr.msk.bf16.mxu1 %vm1047_vm4, %v9092_v35  ;;  %10724 = vmatprep.mubr.msk.bf16.mxu0 %vm1047_vm4, %v11465_v45  ;;  %v2142_v35 = vrot.slane %v12685_v19, 5  ;;  %v9078_v24 = vrot.slane %v1993_v53, 9  ;;  %v2145_v19 = vrot.slane %v12694_v0, 5  ;;  %v6416_v45 = vor.u32 %v6415_v43, %v6412_v54 }
 0x197   : > { %v13111_v53 = vrot.slane %v6439_v12, 5  ;;  %v6403_v0 = vrot.slane %v6402_v60, 4  ;;  %v6453_v54 = vshrl.u32 %v9639_v42, 16  ;;  %v6459_v43 = vshll.u32 %v9640_v59, 16 }
 0x198   : > { %v2144_v48 = vrot.slane %v2142_v35, 4  ;;  %v6417_v55 = vrot.slane %v6416_v45, 4  ;;  %v2147_v27 = vrot.slane %v2145_v19, 4  ;;  %v2151_v11 = vrot.slane %v14749_v15, 5 }
 0x199   : > { %v13124_v17 = vcombine.low %v6378_v32, %v6388_v6  ;;  %v6436_v62 = vor.u32 %v6435_v44, %v6431_v2  ;;  %v6449_v12 = vshll.u32 %v9639_v42, 16  ;;  %v6398_v29 = vsel %vm11803_vm5, %v6393_v31, %v13077_v63  ;;  %v9641_v6 = vld [vmem:[%s11774_s23 + $0x84] sm:$0xf] }
 0x19a   : > { %v13131_v18 = vsel %vm12072_vm8, %v9078_v24, %v2142_v35  ;;  %v2154_v60 = vrot.slane %v14750_v5, 5  ;;  %v13137_v32 = vsel %vm12072_vm8, %v2144_v48, %v2145_v19  ;;  %v13140_v45 = vrot.slane %v6459_v43, 5  ;;  %v11469_v19 = vld [vmem:[%s11774_s23 + $0x154] sm:$0xff]   ;;  %v9642_v48 = vld [vmem:[%s11774_s23 + $0x88] sm:$0xf] }
 0x19b   : > { %v6465_v59 = vrot.slane %v6463_v51, 4  ;;  %v6408_v63 = vsel %vm11803_vm5, %v6403_v0, %v6407_v22  ;;  %v13150_v35 = vsel %vm12072_vm8, %v2147_v27, %v2148_v57  ;;  %v13154_v24 = vsel %vm12072_vm8, %v2150_v23, %v2151_v11  ;;  %v9646_v5 = vld [vmem:[%s11774_s23 + $0x98] sm:$0xf] }
 0x19c   : > { %v13159_v44 = vrot.slane %v6436_v62, 4  ;;  %v13161_v31 = vrot.slane %v6449_v12, 5  ;;  %v2153_v22 = vrot.slane %v2151_v11, 4  ;;  %v2157_v57 = vrot.slane %v12716_v38, 5  ;;  %v9643_v11 = vld [vmem:[%s11774_s23 + $0x8c] sm:$0x1] }
 0x19d   : > { %10429 = vmatmul.mubr.msk.bf16.gmra.mrb[20].mxu1 %vm1047_vm4, %v9093_v8  ;;  %10725 = vmatmul.mubr.msk.bf16.gmra.mrb[52].mxu0 %vm1047_vm4, %v11466_v10  ;;  %v6427_v8 = vrot.slane %v6426_v56, 4  ;;  %v6455_v10 = vrot.slane %v6453_v54, 4  ;;  %v6469_v0 = vshll.u32 %v9641_v6, 16  ;;  %v6466_v43 = vor.u32 %v6465_v59, %v13140_v45 }
 0x19e   : > { %10432 = vmatprep.mubr.msk.bf16.mxu1 %vm1047_vm4, %v9094_v39  ;;  %10728 = vmatprep.mubr.msk.bf16.mxu0 %vm1047_vm4, %v11467_v61  ;;  %v6446_v39 = vor.u32 %v6445_v49, %v13111_v53  ;;  %v11468_v61 = vld [vmem:[%s11774_s23 + $0x14c] sm:$0xff]   ;;  %v6422_v49 = vsel %vm11803_vm5, %v6417_v55, %v13091_v14  ;;  %v2156_v14 = vrot.slane %v2154_v60, 4  ;;  %v6473_v51 = vshrl.u32 %v9641_v6, 16 }
 0x19f   : > { %v6432_v56 = vsel %vm11803_vm5, %v6427_v8, %v6431_v2  ;;  %v9102_v2 = vcombine.low %v13131_v18, %v13137_v32  ;;  %v6456_v54 = vor.u32 %v6455_v10, %v13161_v31  ;;  %v14751_v38 = vcombine.low %v12947_v58, %v12951_v52  ;;  %v9644_v8 = vld [vmem:[%s11774_s23 + $0x90] sm:$0xf] }
 0x1a0   : > { %v13164_v42 = vrot.slane %v6446_v39, 4  ;;  %v13180_v34 = vcombine.low %v6398_v29, %v6408_v63  ;;  %v6479_v55 = vshll.u32 %v9642_v48, 16  ;;  %v6483_v27 = vshrl.u32 %v9642_v48, 16  ;;  %v9647_v63 = vld [vmem:[%s11774_s23 + $0x9c] sm:$0xf] }
 0x1a1   : > { %v13184_v23 = vcombine.low %v6422_v49, %v6432_v56  ;;  %v9103_v15 = vcombine.low %v13150_v35, %v13154_v24  ;;  %v6442_v58 = vsel %vm11803_vm5, %v13159_v44, %v13111_v53  ;;  %v13194_v52 = vsel %vm12072_vm8, %v2153_v22, %v2154_v60  ;;  %v9645_v53 = vld [vmem:[%s11774_s23 + $0x94] sm:$0xf]  ;;  %v11470_v49 = vld [vmem:[%s11774_s23 + $0x15c] sm:$0xff]   ;;  %v1994_v22 = vld [vmem:[%s11774_s23 + $0xd8] sm:$0xe] }
 0x1a2   : > { %v6452_v62 = vsel %vm11803_vm5, %v13164_v42, %v13161_v31  ;;  %v13204_v12 = vsel %vm12072_vm8, %v2156_v14, %v2157_v57  ;;  %v6471_v29 = vrot.slane %v6469_v0, 5  ;;  %v2159_v39 = vrot.slane %v2157_v57, 4  ;;  %v11587_v60 = vld [vmem:[%s11774_s23 + $0xd4] sm:$0x1] }
 0x1a3   : > { %v6457_v6 = vrot.slane %v6456_v54, 4  ;;  %v6467_v10 = vrot.slane %v6466_v43, 4  ;;  %v2163_v59 = vrot.slane %v11587_v60, 5  ;;  %v13211_v56 = vrot.slane %v6479_v55, 5 }
 0x1a4   : > { %v6485_v44 = vrot.slane %v6483_v27, 4  ;;  %v6489_v31 = vshll.u32 %v9643_v11, 16  ;;  %v6494_v48 = vshrl.u32 %v9644_v8, 16  ;;  %v6497_v42 = vshll.u32 %v9644_v8, 16  ;;  %v14754_v8 = vld [vmem:[#allocation7_spill] sm:$0xff] }
 0x1a5   : > { %10433 = vmatmul.mubr.msk.bf16.gmra.mrb[24].mxu1 %vm1047_vm4, %v9095_v46  ;;  %10729 = vmatmul.mubr.msk.bf16.gmra.mrb[56].mxu0 %vm1047_vm4, %v11468_v61  ;;  %v2160_v46 = vrot.slane %v14752_v41, 5  ;;  %v6475_v61 = vrot.slane %v6473_v51, 4  ;;  %v6503_v14 = vshll.u32 %v9645_v53, 16  ;;  %v6507_v0 = vshrl.u32 %v9645_v53, 16 }
 0x1a6   : > { %10436 = vmatprep.mubr.msk.bf16.mxu1 %vm1047_vm4, %v14751_v38  ;;  %10732 = vmatprep.mubr.msk.bf16.mxu0 %vm1047_vm4, %v11469_v19  ;;  %v6513_v57 = vshll.u32 %v9646_v5, 16  ;;  %v6517_v38 = vshrl.u32 %v9646_v5, 16  ;;  %v6523_v41 = vshll.u32 %v9647_v63, 16  ;;  %v6527_v54 = vshrl.u32 %v9647_v63, 16 }
 0x1a7   : > { %v2162_v19 = vrot.slane %v2160_v46, 4  ;;  %v14753_v43 = vcombine.low %v12982_v13, %v12990_v25  ;;  %v6462_v51 = vsel %vm11803_vm5, %v6457_v6, %v13140_v45  ;;  %v6472_v55 = vsel %vm11803_vm5, %v6467_v10, %v6471_v29 }
 0x1a8   : > { %v13225_v27 = vsel %vm12072_vm8, %v2159_v39, %v2160_v46  ;;  %v6476_v11 = vor.u32 %v6475_v61, %v6471_v29  ;;  %v6486_v25 = vor.u32 %v6485_v44, %v13211_v56  ;;  %v9079_v45 = vrot.slane %v1994_v22, 9  ;;  %v9649_v22 = vld [vmem:[%s11774_s23 + $0xa4] sm:$0xf] }
 0x1a9   : > { %v13234_v13 = vsel %vm12072_vm8, %v2162_v19, %v2163_v59  ;;  %v2167_v53 = vrot.slane %v14754_v8, 5  ;;  %v6496_v46 = vrot.slane %v6494_v48, 4  ;;  %v6499_v29 = vrot.slane %v6497_v42, 5 }
 0x1aa   : > { %v13240_v39 = vrot.slane %v6503_v14, 5  ;;  %v6509_v30 = vrot.slane %v6507_v0, 4  ;;  %v13242_v16 = vrot.slane %v6513_v57, 5  ;;  %v6519_v5 = vrot.slane %v6517_v38, 4 }
 0x1ab   : > { %v13245_v6 = vrot.slane %v6523_v41, 5  ;;  %v6529_v10 = vrot.slane %v6527_v54, 4  ;;  %v13247_v60 = vcombine.low %v6442_v58, %v6452_v62  ;;  %v9104_v59 = vcombine.low %v13194_v52, %v13204_v12  ;;  %v11588_v58 = vld [vmem:[%s11774_s23 + $0xe4] sm:$0xf]  ;;  %v11589_v41 = vld [vmem:[%s11774_s23 + $0xec] sm:$0xf] }
 0x1ac   : > { %v6491_v61 = vrot.slane %v6489_v31, 5  ;;  %v13251_v63 = vcombine.low %v6462_v51, %v6472_v55  ;;  %v6487_v19 = vrot.slane %v6486_v25, 4  ;;  %v2170_v44 = vrot.slane %v12735_v40, 5 }
 0x1ad   : > { %10437 = vmatmul.mubr.msk.bf16.gmra.mrb[28].mxu1 %vm1047_vm4, %v14753_v43  ;;  %10733 = vmatmul.mubr.msk.bf16.gmra.mrb[60].mxu0 %vm1047_vm4, %v11470_v49  ;;  %v9105_v49 = vcombine.low %v13225_v27, %v13234_v13  ;;  %v6500_v48 = vor.u32 %v6499_v29, %v6496_v46  ;;  %v6510_v42 = vor.u32 %v6509_v30, %v13240_v39  ;;  %v2173_v62 = vrot.slane %v11588_v58, 5 }
 0x1ae   : > { %10440 = vmatprep.mubr.msk.bf16.mxu1 %vm1047_vm4, %v9098_v28  ;;  %10738 = vmatprep.mubr.msk.bf16.mxu0 %vm1047_vm4, %v13038_v20  ;;  %v9648_v28 = vld [vmem:[%s11774_s23 + $0xa0] sm:$0xf]  ;;  %v6477_v20 = vrot.slane %v6476_v11, 4  ;;  %v13261_v31 = vsel %vm12072_vm8, %v9079_v45, %v2167_v53  ;;  %v2169_v0 = vrot.slane %v2167_v53, 4  ;;  %v6520_v57 = vor.u32 %v6519_v5, %v13242_v16  ;;  %v9650_v11 = vld [vmem:[%s11774_s23 + $0xa8] sm:$0xf] }
 0x1af   : > { %v6533_v14 = vshll.u32 %v9648_v28, 16  ;;  %v6530_v38 = vor.u32 %v6529_v10, %v13245_v6  ;;  %v2179_v54 = vrot.slane %v11589_v41, 5  ;;  %v6537_v43 = vshrl.u32 %v9648_v28, 16  ;;  %v14756_v45 = vld [vmem:[#allocation2_spill] sm:$0xff]  ;;  %v11591_v28 = vld [vmem:[%s11774_s23 + $0xf0] sm:$0xf] }
 0x1b0   : > { %v6482_v40 = vsel %vm11803_vm5, %v6477_v20, %v13211_v56  ;;  %v6543_v51 = vshll.u32 %v9649_v22, 16  ;;  %v14755_v55 = vcombine.low %v13045_v21, %v13050_v4  ;;  %v6492_v1 = vsel %vm11803_vm5, %v6487_v19, %v6491_v61  ;;  %v9651_v4 = vld [vmem:[%s11774_s23 + $0xac] sm:$0xf] }
 0x1b1   : > { %v2172_v47 = vrot.slane %v2170_v44, 4  ;;  %v6547_v25 = vshrl.u32 %v9649_v22, 16  ;;  %v6511_v8 = vrot.slane %v6510_v42, 4  ;;  %v2175_v53 = vrot.slane %v2173_v62, 4 }
 0x1b2   : > { %v6535_v21 = vrot.slane %v6533_v14, 5  ;;  %v6521_v46 = vrot.slane %v6520_v57, 4  ;;  %v6531_v29 = vrot.slane %v6530_v38, 4  ;;  %v2182_v5 = vrot.slane %v11591_v28, 5  ;;  %v11594_v28 = vld [vmem:[%s11774_s23 + $0x100] sm:$0xf] }
 0x1b3   : > { %v2181_v10 = vrot.slane %v2179_v54, 4  ;;  %v6539_v20 = vrot.slane %v6537_v43, 4  ;;  %v13288_v61 = vrot.slane %v6543_v51, 5  ;;  %v6553_v19 = vshll.u32 %v9650_v11, 16 }
 0x1b4   : > { %v6549_v22 = vrot.slane %v6547_v25, 4  ;;  %v6557_v58 = vshrl.u32 %v9650_v11, 16  ;;  %v6563_v41 = vshll.u32 %v9651_v4, 16  ;;  %v13294_v42 = vsel %vm12072_vm8, %v2169_v0, %v2170_v44  ;;  %v11592_v25 = vld [vmem:[%s11774_s23 + $0xf4] sm:$0xf] }
 0x1b5   : > { %10441 = vmatmul.mubr.msk.bf16.gmra.mrb[32].mxu1 %vm1047_vm4, %v9099_v9  ;;  %10739 = vmatmul.mubr.msk.bf16.vlgmr.msra.gmra.mrb[0].mxu0 %vm1047_vm4, %v13064_v3  ;;  %v11590_v9 = vld [vmem:[%s11774_s23 + $0xe8] sm:$0xf]  ;;  %v6501_v3 = vrot.slane %v6500_v48, 4  ;;  %v13290_v48 = vcombine.low %v6482_v40, %v6492_v1  ;;  %v13301_v57 = vsel %vm12072_vm8, %v2172_v47, %v2173_v62  ;;  %v6516_v38 = vsel %vm11803_vm5, %v6511_v8, %v13242_v16 }
 0x1b6   : > { %10444 = vmatprep.mubr.msk.bf16.mxu1 %vm1047_vm4, %v14755_v55  ;;  %v2176_v56 = vrot.slane %v11590_v9, 5  ;;  %10803 = vmatpush3.bf16.msra.mxu0 %v14756_v45  ;;  %v6526_v44 = vsel %vm11803_vm5, %v6521_v46, %v13245_v6  ;;  %v6536_v16 = vsel %vm11803_vm5, %v6531_v29, %v6535_v21  ;;  %v13326_v62 = vsel %vm12072_vm8, %v2181_v10, %v2182_v5 }
 0x1b7   : > { %10742 = vmatprep.mubr.msk.bf16.mxu0 %vm1047_vm4, %v13124_v17  ;;  %v6567_v17 = vshrl.u32 %v9651_v4, 16  ;;  %v6506_v14 = vsel %vm11803_vm5, %v6501_v3, %v13240_v39  ;;  %v9653_v39 = vld [vmem:[%s11774_s23 + $0xb4] sm:$0xf]  ;;  %v6540_v43 = vor.u32 %v6539_v20, %v6535_v21  ;;  %v13328_v51 = vrot.slane %v6553_v19, 5  ;;  %v11593_v3 = vld [vmem:[%s11774_s23 + $0xf8] sm:$0x1] }
 0x1b8   : > { %v2178_v30 = vrot.slane %v2176_v56, 4  ;;  %v13308_v40 = vsel %vm12072_vm8, %v2175_v53, %v2176_v56  ;;  %v6550_v50 = vor.u32 %v6549_v22, %v13288_v61  ;;  %v13338_v6 = vrot.slane %v6563_v41, 5  ;;  %v9655_v56 = vld [vmem:[%s11774_s23 + $0xbc] sm:$0xf]  ;;  %v9656_v21 = vld [vmem:[%s11774_s23 + $0xc0] sm:$0xf] }
 0x1b9   : > { %v13344_v18 = vcombine.low %v6506_v14, %v6516_v38  ;;  %v6578_v32 = vshrl.u32 %v9653_v39, 16  ;;  %v9107_v55 = vcombine.low %v13301_v57, %v13308_v40  ;;  %v13348_v1 = vcombine.low %v6526_v44, %v6536_v16 }
 0x1ba   : > { %v13315_v0 = vsel %vm12072_vm8, %v2178_v30, %v2179_v54  ;;  %v6569_v54 = vrot.slane %v6567_v17, 4  ;;  %v2184_v9 = vrot.slane %v2182_v5, 4  ;;  %v6541_v11 = vrot.slane %v6540_v43, 4  ;;  %v1995_v30 = vld [vmem:[%s11774_s23 + $0xfc] sm:$0xe] }
 0x1bb   : > { %v9108_v47 = vcombine.low %v13315_v0, %v13326_v62  ;;  %v2185_v45 = vrot.slane %v11592_v25, 5  ;;  %v2188_v8 = vrot.slane %v11593_v3, 5  ;;  %v6573_v53 = vshll.u32 %v9652_v26, 16  ;;  %v9657_v25 = vld [vmem:[%s11774_s23 + $0xc4] sm:$0xf] }
 0x1bc   : > { %v6551_v4 = vrot.slane %v6550_v50, 4  ;;  %v6570_v29 = vor.u32 %v6569_v54, %v13338_v6  ;;  %v2192_v10 = vrot.slane %v11594_v28, 5  ;;  %v6580_v20 = vrot.slane %v6578_v32, 4  ;;  %v9658_v3 = vld [vmem:[%s11774_s23 + $0xc8] sm:$0xf] }
 0x1bd   : > { %10445 = vmatmul.mubr.msk.bf16.gmra.mrb[36].mxu1 %vm1047_vm4, %v9101_v37  ;;  %10743 = vmatmul.mubr.msk.bf16.gmra.mrb[4].mxu0 %vm1047_vm4, %v13180_v34  ;;  %v6559_v37 = vrot.slane %v6557_v58, 4  ;;  %v9106_v34 = vcombine.low %v13261_v31, %v13294_v42  ;;  %v6597_v58 = vshll.u32 %v9655_v56, 16  ;;  %v6601_v41 = vshrl.u32 %v9655_v56, 16 }
 0x1be   : > { %10448 = vmatprep.mubr.msk.bf16.mxu1 %vm1047_vm4, %v9102_v2  ;;  %10746 = vmatprep.mubr.msk.bf16.mxu0 %vm1047_vm4, %v13184_v23  ;;  %v6581_v2 = vshll.u32 %v9653_v39, 16  ;;  %v9654_v23 = vld [vmem:[%s11774_s23 + $0xb8] sm:$0xf]  ;;  %v6607_v17 = vshll.u32 %v9656_v21, 16  ;;  %v6611_v14 = vshrl.u32 %v9656_v21, 16  ;;  %v13367_v38 = vsel %vm12072_vm8, %v2184_v9, %v2185_v45 }
 0x1bf   : > { %v6560_v46 = vor.u32 %v6559_v37, %v13328_v51  ;;  %v6587_v5 = vshll.u32 %v9654_v23, 16  ;;  %v6591_v22 = vshrl.u32 %v9654_v23, 16  ;;  %v2187_v44 = vrot.slane %v2185_v45, 4 }
 0x1c0   : > { %v6583_v19 = vrot.slane %v6581_v2, 5  ;;  %v6575_v39 = vrot.slane %v6573_v53, 5  ;;  %v9080_v16 = vrot.slane %v1995_v30, 9  ;;  %v6571_v35 = vrot.slane %v6570_v29, 4 }
 0x1c1   : > { %v6561_v43 = vrot.slane %v6560_v46, 4  ;;  %v2194_v24 = vrot.slane %v2192_v10, 4  ;;  %v13378_v37 = vrot.slane %v6587_v5, 5  ;;  %v6593_v54 = vrot.slane %v6591_v22, 4 }
 0x1c2   : > { %v6584_v26 = vor.u32 %v6583_v19, %v6580_v20  ;;  %v13381_v2 = vrot.slane %v6597_v58, 5  ;;  %v6603_v52 = vrot.slane %v6601_v41, 4  ;;  %v13383_v12 = vrot.slane %v6607_v17, 5  ;;  %v11598_v20 = vld [vmem:[%s11774_s23 + $0x110] sm:$0xf] }
 0x1c3   : > { %v6546_v9 = vsel %vm11803_vm5, %v6541_v11, %v13288_v61  ;;  %v13393_v23 = vsel %vm12072_vm8, %v2187_v44, %v2188_v8  ;;  %v13397_v56 = vsel %vm12072_vm8, %v9080_v16, %v2192_v10  ;;  %v6566_v45 = vsel %vm11803_vm5, %v6561_v43, %v13338_v6  ;;  %v9659_v58 = vld [vmem:[%s11774_s23 + $0xcc] sm:$0xf]  ;;  %v9660_v17 = vld [vmem:[%s11774_s23 + $0xd0] sm:$0xf]  ;;  %v11599_v16 = vld [vmem:[%s11774_s23 + $0x114] sm:$0xf] }
 0x1c4   : > { %v6576_v61 = vsel %vm11803_vm5, %v6571_v35, %v6575_v39  ;;  %v13410_v8 = vrot.slane %v6584_v26, 4  ;;  %v6594_v53 = vor.u32 %v6593_v54, %v13378_v37  ;;  %v6604_v6 = vor.u32 %v6603_v52, %v13381_v2  ;;  %v9662_v35 = vld [vmem:[%s11774_s23 + $0xd8] sm:$0xf]  ;;  %v9663_v26 = vld [vmem:[%s11774_s23 + $0xdc] sm:$0xf] }
 0x1c5   : > { %10449 = vmatmul.mubr.msk.bf16.gmra.mrb[40].mxu1 %vm1047_vm4, %v9103_v15  ;;  %10747 = vmatmul.mubr.msk.bf16.gmra.mrb[8].mxu0 %vm1047_vm4, %v13247_v60  ;;  %v11595_v15 = vld [vmem:[%s11774_s23 + $0x104] sm:$0xf]  ;;  %v11596_v60 = vld [vmem:[%s11774_s23 + $0x108] sm:$0xf]  ;;  %v6617_v28 = vshll.u32 %v9657_v25, 16  ;;  %v9109_v10 = vcombine.low %v13367_v38, %v13393_v23  ;;  %v2204_v19 = vrot.slane %v11598_v20, 5  ;;  %v13429_v27 = vcombine.low %v6566_v45, %v6576_v61 }
 0x1c6   : > { %10452 = vmatprep.mubr.msk.bf16.mxu1 %vm1047_vm4, %v9104_v59  ;;  %v2195_v50 = vrot.slane %v11595_v15, 5  ;;  %10750 = vmatprep.mubr.msk.bf16.mxu0 %vm1047_vm4, %v13251_v63  ;;  %v2198_v32 = vrot.slane %v11596_v60, 5  ;;  %v6613_v59 = vrot.slane %v6611_v14, 4  ;;  %v6556_v63 = vsel %vm11803_vm5, %v6551_v4, %v13328_v51  ;;  %v11597_v4 = vld [vmem:[%s11774_s23 + $0x10c] sm:$0xf] }
 0x1c7   : > { %v2201_v46 = vrot.slane %v11597_v4, 5  ;;  %v9709_v29 = vcombine.low %v6546_v9, %v6556_v63  ;;  %v6621_v5 = vshrl.u32 %v9657_v25, 16  ;;  %v6627_v22 = vshll.u32 %v9658_v3, 16  ;;  %v9664_v61 = vld [vmem:[%s11774_s23 + $0xe0] sm:$0xf] }
 0x1c8   : > { %v13407_v51 = vsel %vm12072_vm8, %v2194_v24, %v2195_v50  ;;  %v2197_v11 = vrot.slane %v2195_v50, 4  ;;  %v2200_v21 = vrot.slane %v2198_v32, 4  ;;  %v6614_v30 = vor.u32 %v6613_v59, %v13383_v12  ;;  %v13490_v4 = vld [vmem:[%s11774_s23 + $0xd4] sm:$0x1]  ;;  %v9665_v20 = vld [vmem:[%s11774_s23 + $0xe4] sm:$0xf] }
 0x1c9   : > { %v9110_v13 = vcombine.low %v13397_v56, %v13407_v51  ;;  %v6631_v41 = vshrl.u32 %v9658_v3, 16  ;;  %v6590_v31 = vsel %vm11803_vm5, %v13410_v8, %v13378_v37  ;;  %v6605_v14 = vrot.slane %v6604_v6, 4 }
 0x1ca   : > { %v13446_v42 = vsel %vm12072_vm8, %v2200_v21, %v2201_v46  ;;  %v6615_v44 = vrot.slane %v6614_v30, 4  ;;  %v6619_v39 = vrot.slane %v6617_v28, 5  ;;  %v2207_v43 = vrot.slane %v11599_v16, 5 }
 0x1cb   : > { %v6623_v24 = vrot.slane %v6621_v5, 4  ;;  %v13451_v15 = vrot.slane %v6627_v22, 5  ;;  %v6637_v50 = vshll.u32 %v9659_v58, 16  ;;  %v6633_v37 = vrot.slane %v6631_v41, 4  ;;  %v11600_v22 = vld [vmem:[%s11774_s23 + $0x118] sm:$0xf] }
 0x1cc   : > { %v6641_v54 = vshrl.u32 %v9659_v58, 16  ;;  %v6647_v60 = vshll.u32 %v9660_v17, 16  ;;  %v6662_v9 = vshrl.u32 %v9662_v35, 16  ;;  %v6665_v63 = vshll.u32 %v9662_v35, 16  ;;  %v9667_v41 = vld [vmem:[%s11774_s23 + $0xec] sm:$0xf] }
 0x1cd   : > { %10453 = vmatmul.mubr.msk.bf16.gmra.mrb[44].mxu1 %vm1047_vm4, %v9105_v49  ;;  %10751 = vmatmul.mubr.msk.bf16.gmra.mrb[12].mxu0 %vm1047_vm4, %v13290_v48  ;;  %v13435_v49 = vsel %vm12072_vm8, %v2197_v11, %v2198_v32  ;;  %v6595_v48 = vrot.slane %v6594_v53, 4  ;;  %v6651_v32 = vshrl.u32 %v9660_v17, 16  ;;  %v6610_v25 = vsel %vm11803_vm5, %v6605_v14, %v13383_v12 }
 0x1ce   : > { %10456 = vmatprep.mubr.msk.bf16.mxu1 %vm1047_vm4, %v9106_v34  ;;  %10754 = vmatprep.mubr.msk.bf16.mxu0 %vm1047_vm4, %v13344_v18  ;;  %v2203_v34 = vrot.slane %v2201_v46, 4  ;;  %v2206_v18 = vrot.slane %v2204_v19, 4  ;;  %v9111_v59 = vcombine.low %v13435_v49, %v13446_v42  ;;  %v6671_v11 = vshll.u32 %v9663_v26, 16  ;;  %v9670_v49 = vld [vmem:[%s11774_s23 + $0xf8] sm:$0x1] }
 0x1cf   : > { %v6600_v52 = vsel %vm11803_vm5, %v6595_v48, %v13381_v2  ;;  %v6675_v3 = vshrl.u32 %v9663_v26, 16  ;;  %v6620_v2 = vsel %vm11803_vm5, %v6615_v44, %v6619_v39  ;;  %v6624_v12 = vor.u32 %v6623_v24, %v6619_v39  ;;  %v9666_v39 = vld [vmem:[%s11774_s23 + $0xe8] sm:$0xf] }
 0x1d0   : > { %v13464_v45 = vsel %vm12072_vm8, %v2203_v34, %v2204_v19  ;;  %v13475_v8 = vsel %vm12072_vm8, %v2206_v18, %v2207_v43  ;;  %v13477_v53 = vrot.slane %v6637_v50, 5  ;;  %v6634_v57 = vor.u32 %v6633_v37, %v13451_v15 }
 0x1d1   : > { %v6643_v40 = vrot.slane %v6641_v54, 4  ;;  %v6653_v21 = vrot.slane %v6651_v32, 4  ;;  %v6664_v46 = vrot.slane %v6662_v9, 4  ;;  %v6681_v6 = vshll.u32 %v9664_v61, 16  ;;  %v11601_v54 = vld [vmem:[%s11774_s23 + $0x11c] sm:$0x1] }
 0x1d2   : > { %v6685_v30 = vshrl.u32 %v9664_v61, 16  ;;  %v9711_v0 = vcombine.low %v6590_v31, %v6600_v52  ;;  %v2209_v62 = vrot.slane %v2207_v43, 4  ;;  %v6677_v28 = vrot.slane %v6675_v3, 4  ;;  %v9668_v32 = vld [vmem:[%s11774_s23 + $0xf0] sm:$0xf] }
 0x1d3   : > { %v13495_v19 = vcombine.low %v6610_v25, %v6620_v2  ;;  %v9112_v5 = vcombine.low %v13464_v45, %v13475_v8  ;;  %v2210_v58 = vrot.slane %v11600_v22, 5  ;;  %v6635_v48 = vrot.slane %v6634_v57, 4  ;;  %v9669_v9 = vld [vmem:[%s11774_s23 + $0xf4] sm:$0xf] }
 0x1d4   : > { %v6644_v34 = vor.u32 %v6643_v40, %v13477_v53  ;;  %v6657_v17 = vshll.u32 %v13490_v4, 16  ;;  %v13504_v44 = vrot.slane %v6681_v6, 5  ;;  %v6687_v16 = vrot.slane %v6685_v30, 4 }
 0x1d5   : > { %10457 = vmatmul.mubr.msk.bf16.gmra.mrb[48].mxu1 %vm1047_vm4, %v9107_v55  ;;  %10755 = vmatmul.mubr.msk.bf16.gmra.mrb[16].mxu0 %vm1047_vm4, %v13348_v1  ;;  %v13486_v55 = vrot.slane %v6647_v60, 5  ;;  %v6667_v1 = vrot.slane %v6665_v63, 5  ;;  %v6691_v43 = vshll.u32 %v9665_v20, 16  ;;  %v6695_v18 = vshrl.u32 %v9665_v20, 16 }
 0x1d6   : > { %10460 = vmatprep.mubr.msk.bf16.mxu1 %vm1047_vm4, %v9108_v47  ;;  %10758 = vmatprep.mubr.msk.bf16.mxu0 %vm1047_vm4, %v9709_v29  ;;  %v13492_v47 = vrot.slane %v6671_v11, 5  ;;  %v6625_v29 = vrot.slane %v6624_v12, 4  ;;  %v6705_v24 = vshrl.u32 %v9666_v39, 16  ;;  %v6711_v50 = vshll.u32 %v9667_v41, 16 }
 0x1d7   : > { %v6654_v31 = vor.u32 %v6653_v21, %v13486_v55  ;;  %v6668_v14 = vor.u32 %v6667_v1, %v6664_v46  ;;  %v2212_v37 = vrot.slane %v2210_v58, 4  ;;  %v2213_v60 = vrot.slane %v11601_v54, 5 }
 0x1d8   : > { %v6678_v35 = vor.u32 %v6677_v28, %v13492_v47  ;;  %v6630_v26 = vsel %vm11803_vm5, %v6625_v29, %v13451_v15  ;;  %v6715_v52 = vshrl.u32 %v9667_v41, 16  ;;  %v6640_v38 = vsel %vm11803_vm5, %v6635_v48, %v13477_v53  ;;  %v9671_v28 = vld [vmem:[%s11774_s23 + $0xfc] sm:$0xf] }
 0x1d9   : > { %v6645_v23 = vrot.slane %v6644_v34, 4  ;;  %v6701_v15 = vshll.u32 %v9666_v39, 16  ;;  %v6655_v63 = vrot.slane %v6654_v31, 4  ;;  %v6669_v25 = vrot.slane %v6668_v14, 4 }
 0x1da   : > { %v6688_v61 = vor.u32 %v6687_v16, %v13504_v44  ;;  %v6679_v11 = vrot.slane %v6678_v35, 4  ;;  %v6697_v56 = vrot.slane %v6695_v18, 4  ;;  %v6707_v51 = vrot.slane %v6705_v24, 4  ;;  %v9676_v24 = vld [vmem:[%s11774_s23 + $0x110] sm:$0xf] }
 0x1db   : > { %v6717_v3 = vrot.slane %v6715_v52, 4  ;;  %v6721_v2 = vshll.u32 %v9668_v32, 16  ;;  %v6725_v12 = vshrl.u32 %v9668_v32, 16  ;;  %v6731_v53 = vshll.u32 %v9669_v9, 16 }
 0x1dc   : > { %v9713_v57 = vcombine.low %v6630_v26, %v6640_v38  ;;  %v2211_v40 = vsel %vm12072_vm8, %v2209_v62, %v2210_v58  ;;  %v13535_v21 = vrot.slane %v6701_v15, 5  ;;  %v6735_v46 = vshrl.u32 %v9669_v9, 16  ;;  %v9672_v62 = vld [vmem:[%s11774_s23 + $0x100] sm:$0xf]  ;;  %v9675_v38 = vld [vmem:[%s11774_s23 + $0x10c] sm:$0xf] }
 0x1dd   : > { %10461 = vmatmul.mubr.msk.bf16.gmra.mrb[52].mxu1 %vm1047_vm4, %v9109_v10  ;;  %10759 = vmatmul.mubr.msk.bf16.gmra.mrb[20].mxu0 %vm1047_vm4, %v13429_v27  ;;  %v6659_v10 = vrot.slane %v6657_v17, 5  ;;  %v13529_v27 = vrot.slane %v6691_v43, 5  ;;  %v2214_v1 = vsel %vm12072_vm8, %v2212_v37, %v2213_v60  ;;  %v6650_v6 = vsel %vm11803_vm5, %v6645_v23, %v13486_v55 }
 0x1de   : > { %10464 = vmatprep.mubr.msk.bf16.mxu1 %vm1047_vm4, %v9110_v13  ;;  %10762 = vmatprep.mubr.msk.bf16.mxu0 %vm1047_vm4, %v9711_v0  ;;  %v13531_v13 = vrot.slane %v6711_v50, 5  ;;  %v6674_v0 = vsel %vm11803_vm5, %v6669_v25, %v13492_v47  ;;  %v6684_v20 = vsel %vm11803_vm5, %v6679_v11, %v13504_v44  ;;  %v13552_v29 = vrot.slane %v6688_v61, 4  ;;  %v11471_v50 = vld [vmem:[%s11774_s23 + $0x24] sm:$0xff]  }
 0x1df   : > { %v6660_v30 = vsel %vm11803_vm5, %v6655_v63, %v6659_v10  ;;  %v6698_v22 = vor.u32 %v6697_v56, %v13529_v27  ;;  %v6708_v55 = vor.u32 %v6707_v51, %v13535_v21  ;;  %v13561_v47 = vrot.slane %v6721_v2, 5  ;;  %v9677_v51 = vld [vmem:[%s11774_s23 + $0x114] sm:$0xf] }
 0x1e0   : > { %v6718_v58 = vor.u32 %v6717_v3, %v13531_v13  ;;  %v6727_v41 = vrot.slane %v6725_v12, 4  ;;  %v13563_v48 = vrot.slane %v6731_v53, 5  ;;  %v6737_v42 = vrot.slane %v6735_v46, 4 }
 0x1e1   : > { %v6749_v34 = vshll.u32 %v9671_v28, 16  ;;  %v6755_v31 = vshll.u32 %v9672_v62, 16  ;;  %v9113_v17 = vcombine.low %v2211_v40, %v2214_v1  ;;  %v6759_v14 = vshrl.u32 %v9672_v62, 16 }
 0x1e2   : > { %v9714_v44 = vcombine.low %v6650_v6, %v6660_v30  ;;  %v9715_v39 = vcombine.low %v6674_v0, %v6684_v20  ;;  %v6694_v45 = vsel %vm11803_vm5, %v13552_v29, %v13529_v27  ;;  %v6699_v8 = vrot.slane %v6698_v22, 4 }
 0x1e3   : > { %v6709_v16 = vrot.slane %v6708_v55, 4  ;;  %v6719_v43 = vrot.slane %v6718_v58, 4  ;;  %v6728_v35 = vor.u32 %v6727_v41, %v13561_v47  ;;  %v6741_v18 = vshll.u32 %v9670_v49, 16  ;;  %v11473_v58 = vld [vmem:[%s11774_s23 + $0x34] sm:$0xff]  }
 0x1e4   : > { %v6738_v26 = vor.u32 %v6737_v42, %v13563_v48  ;;  %v6751_v54 = vrot.slane %v6749_v34, 5  ;;  %v13583_v60 = vrot.slane %v6755_v31, 5  ;;  %v6761_v32 = vrot.slane %v6759_v14, 4  ;;  %v9680_v31 = vld [vmem:[%s11774_s23 + $0x120] sm:$0xf] }
 0x1e5   : > { %10465 = vmatmul.mubr.msk.bf16.gmra.mrb[56].mxu1 %vm1047_vm4, %v9111_v59  ;;  %10763 = vmatmul.mubr.msk.bf16.gmra.mrb[24].mxu0 %vm1047_vm4, %v13495_v19  ;;  %v6746_v59 = vshrl.u32 %v9671_v28, 16  ;;  %v9673_v19 = vld [vmem:[%s11774_s23 + $0x104] sm:$0xf]  ;;  %v6789_v9 = vshrl.u32 %v9675_v38, 16  ;;  %v6795_v63 = vshll.u32 %v9676_v24, 16  ;;  %v6799_v25 = vshrl.u32 %v9676_v24, 16 }
 0x1e6   : > { %10468 = vmatprep.mubr.msk.bf16.mxu1 %vm1047_vm4, %v9112_v5  ;;  %10766 = vmatprep.mubr.msk.bf16.mxu0 %vm1047_vm4, %v9713_v57  ;;  %v9674_v5 = vld [vmem:[%s11774_s23 + $0x108] sm:$0xf]  ;;  %v6765_v52 = vshll.u32 %v9673_v19, 16  ;;  %v6769_v23 = vshrl.u32 %v9673_v19, 16  ;;  %v6704_v61 = vsel %vm11803_vm5, %v6699_v8, %v13535_v21  ;;  %v6714_v27 = vsel %vm11803_vm5, %v6709_v16, %v13531_v13  ;;  %v9678_v57 = vld [vmem:[%s11774_s23 + $0x118] sm:$0xf] }
 0x1e7   : > { %v6748_v37 = vrot.slane %v6746_v59, 4  ;;  %v6775_v10 = vshll.u32 %v9674_v5, 16  ;;  %v6779_v15 = vshrl.u32 %v9674_v5, 16  ;;  %v6724_v11 = vsel %vm11803_vm5, %v6719_v43, %v13561_v47  ;;  %v11472_v28 = vld [vmem:[%s11774_s23 + $0x2c] sm:$0xff]   ;;  %v9679_v16 = vld [vmem:[%s11774_s23 + $0x11c] sm:$0x1] }
 0x1e8   : > { %v6743_v56 = vrot.slane %v6741_v18, 5  ;;  %v6729_v3 = vrot.slane %v6728_v35, 4  ;;  %v6739_v2 = vrot.slane %v6738_v26, 4  ;;  %v6785_v53 = vshll.u32 %v9675_v38, 16  ;;  %v11474_v38 = vld [vmem:[%s11774_s23 + $0x3c] sm:$0xff]  }
 0x1e9   : > { %v6752_v12 = vor.u32 %v6751_v54, %v6748_v37  ;;  %v6762_v13 = vor.u32 %v6761_v32, %v13583_v60  ;;  %v6767_v40 = vrot.slane %v6765_v52, 5  ;;  %v6771_v21 = vrot.slane %v6769_v23, 4  ;;  %v9682_v52 = vld [vmem:[%s11774_s23 + $0x128] sm:$0xf] }
 0x1ea   : > { %v13602_v46 = vrot.slane %v6775_v10, 5  ;;  %v6781_v1 = vrot.slane %v6779_v15, 4  ;;  %v6791_v6 = vrot.slane %v6789_v9, 4  ;;  %v13604_v30 = vrot.slane %v6795_v63, 5  ;;  %v9683_v63 = vld [vmem:[%s11774_s23 + $0x12c] sm:$0xf] }
 0x1eb   : > { %v6801_v0 = vrot.slane %v6799_v25, 4  ;;  %v6805_v62 = vshll.u32 %v9677_v51, 16  ;;  %v6809_v20 = vshrl.u32 %v9677_v51, 16  ;;  %v6815_v29 = vshll.u32 %v9678_v57, 16  ;;  %v11475_v25 = vld [vmem:[%s11774_s23 + $0x48] sm:$0xff]  }
 0x1ec   : > { %v6819_v22 = vshrl.u32 %v9678_v57, 16  ;;  %v9716_v55 = vcombine.low %v6694_v45, %v6704_v61  ;;  %v9717_v47 = vcombine.low %v6714_v27, %v6724_v11  ;;  %v13608_v41 = vrot.slane %v6785_v53, 5  ;;  %v9685_v57 = vld [vmem:[%s11774_s23 + $0x134] sm:$0xf] }
 0x1ed   : > { %10469 = vmatmul.mubr.msk.bf16.gmra.mrb[60].mxu1 %vm1047_vm4, %v9113_v17  ;;  %10767 = vmatmul.mubr.msk.bf16.gmra.mrb[28].mxu0 %vm1047_vm4, %v9714_v44  ;;  %v6734_v49 = vsel %vm11803_vm5, %v6729_v3, %v13563_v48  ;;  %v6744_v42 = vsel %vm11803_vm5, %v6739_v2, %v6743_v56  ;;  %v6753_v59 = vrot.slane %v6752_v12, 4  ;;  %v6763_v34 = vrot.slane %v6762_v13, 4  ;;  %v9681_v17 = vld [vmem:[%s11774_s23 + $0x124] sm:$0xf] }
 0x1ee   : > { %10474 = vmatprep.mubr.msk.bf16.mxu1 %vm1047_vm4, %v11471_v50  ;;  %10770 = vmatprep.mubr.msk.bf16.mxu0 %vm1047_vm4, %v9715_v39  ;;  %v6772_v14 = vor.u32 %v6771_v21, %v6767_v40  ;;  %v6782_v44 = vor.u32 %v6781_v1, %v13602_v46  ;;  %v6792_v39 = vor.u32 %v6791_v6, %v13608_v41  ;;  %v13621_v8 = vrot.slane %v6805_v62, 5 }
 0x1ef   : > { %v6802_v45 = vor.u32 %v6801_v0, %v13604_v30  ;;  %v6811_v48 = vrot.slane %v6809_v20, 4  ;;  %v13623_v19 = vrot.slane %v6815_v29, 5  ;;  %v6821_v5 = vrot.slane %v6819_v22, 4 }
 0x1f0   : > { %v6830_v43 = vshrl.u32 %v9680_v31, 16  ;;  %v6833_v35 = vshll.u32 %v9680_v31, 16  ;;  %v6839_v18 = vshll.u32 %v9681_v17, 16  ;;  %v6843_v24 = vshrl.u32 %v9681_v17, 16 }
 0x1f1   : > { %v9718_v50 = vcombine.low %v6734_v49, %v6744_v42  ;;  %v6758_v26 = vsel %vm11803_vm5, %v6753_v59, %v13583_v60  ;;  %v6773_v37 = vrot.slane %v6772_v14, 4  ;;  %v6783_v54 = vrot.slane %v6782_v44, 4  ;;  %v11476_v49 = vld [vmem:[%s11774_s23 + $0x50] sm:$0xff]   ;;  %v11477_v42 = vld [vmem:[%s11774_s23 + $0x58] sm:$0xff]  }
 0x1f2   : > { %v6793_v32 = vrot.slane %v6792_v39, 4  ;;  %v6803_v23 = vrot.slane %v6802_v45, 4  ;;  %v6812_v10 = vor.u32 %v6811_v48, %v13621_v8  ;;  %v6822_v15 = vor.u32 %v6821_v5, %v13623_v19  ;;  %v9686_v14 = vld [vmem:[%s11774_s23 + $0x138] sm:$0xf]  ;;  %v9687_v44 = vld [vmem:[%s11774_s23 + $0x13c] sm:$0xf] }
 0x1f3   : > { %v6825_v9 = vshll.u32 %v9679_v16, 16  ;;  %v6832_v61 = vrot.slane %v6830_v43, 4  ;;  %v6835_v60 = vrot.slane %v6833_v35, 5  ;;  %v13641_v27 = vrot.slane %v6839_v18, 5  ;;  %v9689_v5 = vld [vmem:[%s11774_s23 + $0x144] sm:$0xf] }
 0x1f4   : > { %v6845_v11 = vrot.slane %v6843_v24, 4  ;;  %v6849_v51 = vshll.u32 %v9682_v52, 16  ;;  %v6778_v3 = vsel %vm11803_vm5, %v6773_v37, %v13602_v46  ;;  %v6853_v2 = vshrl.u32 %v9682_v52, 16  ;;  %v9684_v46 = vld [vmem:[%s11774_s23 + $0x130] sm:$0xf] }
 0x1f5   : > { %10475 = vmatmul.mubr.msk.bf16.vlgmr.msra.gmra.mrb[0].mxu1 %vm1047_vm4, %v11472_v28  ;;  %10771 = vmatmul.mubr.msk.bf16.gmra.mrb[32].mxu0 %vm1047_vm4, %v9716_v55  ;;  %v6859_v12 = vshll.u32 %v9683_v63, 16  ;;  %v6863_v53 = vshrl.u32 %v9683_v63, 16  ;;  %v6788_v13 = vsel %vm11803_vm5, %v6783_v54, %v13608_v41  ;;  %v6808_v21 = vsel %vm11803_vm5, %v6803_v23, %v13621_v8  ;;  %v9690_v24 = vld [vmem:[%s11774_s23 + $0x148] sm:$0xf] }
 0x1f6   : > { %10869 = vmatpush3.bf16.msra.mxu1 %v11781_v7  ;;  %10478 = vmatprep.mubr.msk.bf16.mxu1 %vm1047_vm4, %v11473_v58  ;;  %v6768_v7 = vsel %vm11803_vm5, %v6763_v34, %v6767_v40  ;;  %v6798_v40 = vsel %vm11803_vm5, %v6793_v32, %v13604_v30  ;;  %v6827_v1 = vrot.slane %v6825_v9, 5  ;;  %v6813_v6 = vrot.slane %v6812_v10, 4  ;;  %v11478_v9 = vld [vmem:[%s11774_s23 + $0x60] sm:$0xff]  }
 0x1f7   : > { %10774 = vmatprep.mubr.msk.bf16.mxu0 %vm1047_vm4, %v9717_v47  ;;  %v9719_v56 = vcombine.low %v6758_v26, %v6768_v7  ;;  %v6823_v0 = vrot.slane %v6822_v15, 4  ;;  %v6836_v28 = vor.u32 %v6835_v60, %v6832_v61  ;;  %v6846_v62 = vor.u32 %v6845_v11, %v13641_v27  ;;  %v9688_v60 = vld [vmem:[%s11774_s23 + $0x140] sm:$0x1] }
 0x1f8   : > { %v6851_v30 = vrot.slane %v6849_v51, 5  ;;  %v6873_v20 = vshrl.u32 %v9684_v46, 16  ;;  %v6879_v29 = vshll.u32 %v9685_v57, 16  ;;  %v6883_v22 = vshrl.u32 %v9685_v57, 16 }
 0x1f9   : > { %v6855_v55 = vrot.slane %v6853_v2, 4  ;;  %v13662_v58 = vrot.slane %v6859_v12, 5  ;;  %v6865_v47 = vrot.slane %v6863_v53, 4  ;;  %v6869_v41 = vshll.u32 %v9684_v46, 16  ;;  %v9691_v12 = vld [vmem:[%s11774_s23 + $0x14c] sm:$0xf] }
 0x1fa   : > { %v9720_v59 = vcombine.low %v6778_v3, %v6788_v13  ;;  %v9721_v34 = vcombine.low %v6798_v40, %v6808_v21  ;;  %v6837_v31 = vrot.slane %v6836_v28, 4  ;;  %v6847_v17 = vrot.slane %v6846_v62, 4  ;;  %v11479_v3 = vld [vmem:[%s11774_s23 + $0x6c] sm:$0xff]  }
 0x1fb   : > { %v6818_v39 = vsel %vm11803_vm5, %v6813_v6, %v13623_v19  ;;  %v6875_v45 = vrot.slane %v6873_v20, 4  ;;  %v13671_v8 = vrot.slane %v6879_v29, 5  ;;  %v6885_v48 = vrot.slane %v6883_v22, 4  ;;  %v9692_v46 = vld [vmem:[%s11774_s23 + $0x150] sm:$0xf] }
 0x1fc   : > { %v6828_v16 = vsel %vm11803_vm5, %v6823_v0, %v6827_v1  ;;  %v6856_v43 = vor.u32 %v6855_v55, %v6851_v30  ;;  %v6866_v35 = vor.u32 %v6865_v47, %v13662_v58  ;;  %v6871_v18 = vrot.slane %v6869_v41, 5  ;;  %v9694_v22 = vld [vmem:[%s11774_s23 + $0x158] sm:$0xf] }
 0x1fd   : > { %10479 = vmatmul.mubr.msk.bf16.gmra.mrb[4].mxu1 %vm1047_vm4, %v11474_v38  ;;  %10775 = vmatmul.mubr.msk.bf16.gmra.mrb[36].mxu0 %vm1047_vm4, %v9718_v50  ;;  %v6889_v50 = vshll.u32 %v9686_v14, 16  ;;  %v6893_v26 = vshrl.u32 %v9686_v14, 16  ;;  %v6899_v7 = vshll.u32 %v9687_v44, 16  ;;  %v6903_v19 = vshrl.u32 %v9687_v44, 16 }
 0x1fe   : > { %10482 = vmatprep.mubr.msk.bf16.mxu1 %vm1047_vm4, %v11475_v25  ;;  %10778 = vmatprep.mubr.msk.bf16.mxu0 %vm1047_vm4, %v9719_v56  ;;  %v6842_v37 = vsel %vm11803_vm5, %v6837_v31, %v13641_v27  ;;  %v6852_v54 = vsel %vm11803_vm5, %v6847_v17, %v6851_v30  ;;  %v6914_v32 = vshrl.u32 %v9689_v5, 16  ;;  %v6917_v52 = vshll.u32 %v9689_v5, 16 }
 0x1ff   : > { %v6876_v38 = vor.u32 %v6875_v45, %v6871_v18  ;;  %v6886_v23 = vor.u32 %v6885_v48, %v13671_v8  ;;  %v6923_v10 = vshll.u32 %v9690_v24, 16  ;;  %v6927_v15 = vshrl.u32 %v9690_v24, 16 }
 0x200   : > { %v6857_v63 = vrot.slane %v6856_v43, 4  ;;  %v6867_v25 = vrot.slane %v6866_v35, 4  ;;  %v6891_v61 = vrot.slane %v6889_v50, 5  ;;  %v6895_v27 = vrot.slane %v6893_v26, 4  ;;  %v11481_v43 = vld [vmem:[%s11774_s23 + $0x7c] sm:$0xff]  }
 0x201   : > { %v13690_v11 = vrot.slane %v6899_v7, 5  ;;  %v6905_v56 = vrot.slane %v6903_v19, 4  ;;  %v9722_v51 = vcombine.low %v6818_v39, %v6828_v16  ;;  %v9723_v2 = vcombine.low %v6842_v37, %v6852_v54  ;;  %v11480_v39 = vld [vmem:[%s11774_s23 + $0x74] sm:$0xff]   ;;  %v9695_v7 = vld [vmem:[%s11774_s23 + $0x15c] sm:$0xf] }
 0x202   : > { %v6916_v53 = vrot.slane %v6914_v32, 4  ;;  %v6919_v57 = vrot.slane %v6917_v52, 5  ;;  %v6877_v13 = vrot.slane %v6876_v38, 4  ;;  %v6887_v40 = vrot.slane %v6886_v23, 4  ;;  %v9696_v32 = vld [vmem:[%s11774_s23 + $0x160] sm:$0xf] }
 0x203   : > { %v13694_v21 = vrot.slane %v6923_v10, 5  ;;  %v6929_v1 = vrot.slane %v6927_v15, 4  ;;  %v6862_v6 = vsel %vm11803_vm5, %v6857_v63, %v13662_v58  ;;  %v6872_v0 = vsel %vm11803_vm5, %v6867_v25, %v6871_v18 }
 0x204   : > { %v6909_v28 = vshll.u32 %v9688_v60, 16  ;;  %v6896_v62 = vor.u32 %v6895_v27, %v6891_v61  ;;  %v6906_v30 = vor.u32 %v6905_v56, %v13690_v11  ;;  %v6933_v20 = vshll.u32 %v9691_v12, 16 }
 0x205   : > { %10483 = vmatmul.mubr.msk.bf16.gmra.mrb[8].mxu1 %vm1047_vm4, %v11476_v49  ;;  %10779 = vmatmul.mubr.msk.bf16.gmra.mrb[40].mxu0 %vm1047_vm4, %v9720_v59  ;;  %v6937_v29 = vshrl.u32 %v9691_v12, 16  ;;  %v6920_v55 = vor.u32 %v6919_v57, %v6916_v53  ;;  %v6943_v58 = vshll.u32 %v9692_v46, 16  ;;  %v6947_v47 = vshrl.u32 %v9692_v46, 16 }
 0x206   : > { %10486 = vmatprep.mubr.msk.bf16.mxu1 %vm1047_vm4, %v11477_v42  ;;  %10782 = vmatprep.mubr.msk.bf16.mxu0 %vm1047_vm4, %v9721_v34  ;;  %v9724_v41 = vcombine.low %v6862_v6, %v6872_v0  ;;  %v6882_v49 = vsel %vm11803_vm5, %v6877_v13, %v13671_v8  ;;  %v6892_v42 = vsel %vm11803_vm5, %v6887_v40, %v6891_v61  ;;  %v9693_v34 = vld [vmem:[%s11774_s23 + $0x154] sm:$0xf]  ;;  %v6911_v31 = vrot.slane %v6909_v28, 5  ;;  %v9697_v0 = vld [vmem:[%s11774_s23 + $0x164] sm:$0x1] }
 0x207   : > { %v6930_v59 = vor.u32 %v6929_v1, %v13694_v21  ;;  %v6957_v17 = vshrl.u32 %v9693_v34, 16  ;;  %v6963_v14 = vshll.u32 %v9694_v22, 16  ;;  %v6967_v44 = vshrl.u32 %v9694_v22, 16 }
 0x208   : > { %v6897_v45 = vrot.slane %v6896_v62, 4  ;;  %v6907_v48 = vrot.slane %v6906_v30, 4  ;;  %v6935_v5 = vrot.slane %v6933_v20, 5  ;;  %v6939_v16 = vrot.slane %v6937_v29, 4 }
 0x209   : > { %v6921_v35 = vrot.slane %v6920_v55, 4  ;;  %v6945_v8 = vrot.slane %v6943_v58, 5  ;;  %v6949_v18 = vrot.slane %v6947_v47, 4  ;;  %v6953_v24 = vshll.u32 %v9693_v34, 16  ;;  %v11602_v58 = vld [vmem:[%s11774_s23 + $0x4c] sm:$0xf] }
 0x20a   : > { %v9725_v50 = vcombine.low %v6882_v49, %v6892_v42  ;;  %v6931_v26 = vrot.slane %v6930_v59, 4  ;;  %v6959_v19 = vrot.slane %v6957_v17, 4  ;;  %v6965_v37 = vrot.slane %v6963_v14, 5  ;;  %v9763_v49 = vld [vmem:[%s11774_s23 + $0x48] sm:$0xe]  ;;  %v11485_v59 = vld [vmem:[%s11774_s23 + $0xa0] sm:$0xff]  }
 0x20b   : > { %v6969_v54 = vrot.slane %v6967_v44, 4  ;;  %v6902_v52 = vsel %vm11803_vm5, %v6897_v45, %v13690_v11  ;;  %v6912_v38 = vsel %vm11803_vm5, %v6907_v48, %v6911_v31  ;;  %v6940_v23 = vor.u32 %v6939_v16, %v6935_v5  ;;  %v11603_v45 = vld [vmem:[%s11774_s23 + $0x50] sm:$0xf] }
 0x20c   : > { %v6926_v10 = vsel %vm11803_vm5, %v6921_v35, %v13694_v21  ;;  %v6950_v15 = vor.u32 %v6949_v18, %v6945_v8  ;;  %v6973_v63 = vshll.u32 %v9695_v7, 16  ;;  %v6936_v25 = vsel %vm11803_vm5, %v6931_v26, %v6935_v5  ;;  %v11486_v26 = vld [vmem:[%s11774_s23 + $0xa8] sm:$0xff]  }
 0x20d   : > { %10487 = vmatmul.mubr.msk.bf16.gmra.mrb[12].mxu1 %vm1047_vm4, %v11478_v9  ;;  %10783 = vmatmul.mubr.msk.bf16.gmra.mrb[44].mxu0 %vm1047_vm4, %v9722_v51  ;;  %v6955_v9 = vrot.slane %v6953_v24, 5  ;;  %v6977_v61 = vshrl.u32 %v9695_v7, 16  ;;  %v6983_v60 = vshll.u32 %v9696_v32, 16  ;;  %v6987_v27 = vshrl.u32 %v9696_v32, 16  ;;  %v11482_v51 = vld [vmem:[%s11774_s23 + $0x84] sm:$0xff]  }
 0x20e   : > { %10490 = vmatprep.mubr.msk.bf16.mxu1 %vm1047_vm4, %v11479_v3  ;;  %10786 = vmatprep.mubr.msk.bf16.mxu0 %vm1047_vm4, %v9723_v2  ;;  %v6970_v56 = vor.u32 %v6969_v54, %v6965_v37  ;;  %v9726_v3 = vcombine.low %v6902_v52, %v6912_v38  ;;  %v11483_v2 = vld [vmem:[%s11774_s23 + $0x90] sm:$0xff]   ;;  %v9727_v12 = vcombine.low %v6926_v10, %v6936_v25  ;;  %v6941_v53 = vrot.slane %v6940_v23, 4  ;;  %v11605_v24 = vld [vmem:[%s11774_s23 + $0x5c] sm:$0xf] }
 0x20f   : > { %v6960_v11 = vor.u32 %v6959_v19, %v6955_v9  ;;  %v6951_v57 = vrot.slane %v6950_v15, 4  ;;  %v6975_v13 = vrot.slane %v6973_v63, 5  ;;  %v6979_v40 = vrot.slane %v6977_v61, 4  ;;  %v11487_v19 = vld [vmem:[%s11774_s23 + $0xb4] sm:$0xff]   ;;  %v11607_v15 = vld [vmem:[%s11774_s23 + $0x60] sm:$0xf] }
 0x210   : > { %v6985_v21 = vrot.slane %v6983_v60, 5  ;;  %v6989_v1 = vrot.slane %v6987_v27, 4  ;;  %v6971_v6 = vrot.slane %v6970_v56, 4  ;;  %v6946_v28 = vsel %vm11803_vm5, %v6941_v53, %v6945_v8  ;;  %v11608_v61 = vld [vmem:[%s11774_s23 + $0x64] sm:$0xf] }
 0x211   : > { %v6961_v46 = vrot.slane %v6960_v11, 4  ;;  %v6956_v62 = vsel %vm11803_vm5, %v6951_v57, %v6955_v9  ;;  %v6980_v30 = vor.u32 %v6979_v40, %v6975_v13  ;;  %v6993_v29 = vshll.u32 %v9697_v0, 16  ;;  %v9764_v27 = vld [vmem:[%s11774_s23 + $0x6c] sm:$0xe]  ;;  %v11488_v57 = vld [vmem:[%s11774_s23 + $0xbc] sm:$0xff]   ;;  %v11489_v40 = vld [vmem:[%s11774_s23 + $0xc4] sm:$0xff]  }
 0x212   : > { %v6990_v20 = vor.u32 %v6989_v1, %v6985_v21  ;;  %v6976_v55 = vsel %vm11803_vm5, %v6971_v6, %v6975_v13  ;;  %v7629_v47 = vrot.slane %v11602_v58, 5  ;;  %v9728_v42 = vcombine.low %v6946_v28, %v6956_v62  ;;  %v11611_v1 = vld [vmem:[%s11774_s23 + $0x68] sm:$0x1]  ;;  %v11612_v62 = vld [vmem:[%s11774_s23 + $0x74] sm:$0xf] }
 0x213   : > { %v6966_v22 = vsel %vm11803_vm5, %v6961_v46, %v6965_v37  ;;  %v6981_v31 = vrot.slane %v6980_v30, 4  ;;  %v6995_v14 = vrot.slane %v6993_v29, 5  ;;  %v9771_v44 = vrot.slane %v9763_v49, 9  ;;  %v11606_v37 = vld [vmem:[%s11774_s23 + $0x58] sm:$0xf] }
 0x214   : > { %v9729_v34 = vcombine.low %v6966_v22, %v6976_v55  ;;  %v6991_v17 = vrot.slane %v6990_v20, 4  ;;  %v7632_v48 = vrot.slane %v11603_v45, 5  ;;  %v7638_v54 = vrot.slane %v11606_v37, 5  ;;  %v11613_v20 = vld [vmem:[%s11774_s23 + $0x78] sm:$0xf]  ;;  %v11490_v37 = vld [vmem:[%s11774_s23 + $0xcc] sm:$0xff]  }
 0x215   : > { %10491 = vmatmul.mubr.msk.bf16.gmra.mrb[16].mxu1 %vm1047_vm4, %v11480_v39  ;;  %10787 = vmatmul.mubr.msk.bf16.gmra.mrb[48].mxu0 %vm1047_vm4, %v9724_v41  ;;  %v11484_v41 = vld [vmem:[%s11774_s23 + $0x98] sm:$0xff]   ;;  %v7631_v39 = vrot.slane %v7629_v47, 4  ;;  %v6986_v5 = vsel %vm11803_vm5, %v6981_v31, %v6985_v21  ;;  %v7630_v8 = vsel %vm12072_vm8, %v9771_v44, %v7629_v47  ;;  %v7644_v9 = vrot.slane %v11607_v15, 5  ;;  %v11614_v47 = vld [vmem:[%s11774_s23 + $0x80] sm:$0xf] }
 0x216   : > { %10494 = vmatprep.mubr.msk.bf16.mxu1 %vm1047_vm4, %v11481_v43  ;;  %10790 = vmatprep.mubr.msk.bf16.mxu0 %vm1047_vm4, %v9725_v50  ;;  %v6996_v16 = vsel %vm11803_vm5, %v6991_v17, %v6995_v14  ;;  %v11604_v43 = vld [vmem:[%s11774_s23 + $0x54] sm:$0xf]  ;;  %v7641_v50 = vrot.slane %v11605_v24, 5  ;;  %v7634_v32 = vrot.slane %v7632_v48, 4  ;;  %v7640_v23 = vrot.slane %v7638_v54, 4 }
 0x217   : > { %v7635_v35 = vrot.slane %v11604_v43, 5  ;;  %v7633_v18 = vsel %vm12072_vm8, %v7631_v39, %v7632_v48  ;;  %v9730_v7 = vcombine.low %v6986_v5, %v6996_v16  ;;  %v7647_v60 = vrot.slane %v11608_v61, 5  ;;  %v11615_v49 = vld [vmem:[%s11774_s23 + $0x84] sm:$0xf]  ;;  %v11617_v17 = vld [vmem:[%s11774_s23 + $0x88] sm:$0xf] }
 0x218   : > { %v9780_v52 = vcombine.low %v7630_v8, %v7633_v18  ;;  %v7643_v10 = vrot.slane %v7641_v50, 4  ;;  %v7642_v11 = vsel %vm12072_vm8, %v7640_v23, %v7641_v50  ;;  %v7646_v21 = vrot.slane %v7644_v9, 4  ;;  %v9765_v44 = vld [vmem:[%s11774_s23 + $0x90] sm:$0xe]  ;;  %v11618_v39 = vld [vmem:[%s11774_s23 + $0x94] sm:$0xf] }
 0x219   : > { %v7637_v38 = vrot.slane %v7635_v35, 4  ;;  %v7636_v63 = vsel %vm12072_vm8, %v7634_v32, %v7635_v35  ;;  %v7650_v46 = vrot.slane %v11611_v1, 5  ;;  %v9772_v6 = vrot.slane %v9764_v27, 9  ;;  %v11619_v18 = vld [vmem:[%s11774_s23 + $0x98] sm:$0xf] }
 0x21a   : > { %v7645_v56 = vsel %vm12072_vm8, %v7643_v10, %v7644_v9  ;;  %v7649_v28 = vrot.slane %v7647_v60, 4  ;;  %v7657_v30 = vrot.slane %v11612_v62, 5  ;;  %v7660_v29 = vrot.slane %v11613_v20, 5  ;;  %v11620_v50 = vld [vmem:[%s11774_s23 + $0x9c] sm:$0xf] }
 0x21b   : > { %v7639_v25 = vsel %vm12072_vm8, %v7637_v38, %v7638_v54  ;;  %v9782_v0 = vcombine.low %v7642_v11, %v7645_v56  ;;  %v7672_v14 = vrot.slane %v11617_v17, 5  ;;  %v7679_v45 = vrot.slane %v11618_v39, 5  ;;  %v11491_v23 = vld [vmem:[%s11774_s23 + $0xd8] sm:$0xff]   ;;  %v11622_v15 = vld [vmem:[%s11774_s23 + $0x8c] sm:$0x1] }
 0x21c   : > { %v9781_v13 = vcombine.low %v7636_v63, %v7639_v25  ;;  %v7651_v48 = vsel %vm12072_vm8, %v7649_v28, %v7650_v46  ;;  %v7659_v16 = vrot.slane %v7657_v30, 4  ;;  %v7662_v43 = vrot.slane %v7660_v29, 4  ;;  %v11625_v46 = vld [vmem:[%s11774_s23 + $0xa8] sm:$0xf]  ;;  %v9766_v20 = vld [vmem:[%s11774_s23 + $0xb4] sm:$0xe] }
 0x21d   : > { %10495 = vmatmul.mubr.msk.bf16.gmra.mrb[20].mxu1 %vm1047_vm4, %v11482_v51  ;;  %10791 = vmatmul.mubr.msk.bf16.gmra.mrb[52].mxu0 %vm1047_vm4, %v9726_v3  ;;  %v11609_v51 = vld [vmem:[%s11774_s23 + $0x70] sm:$0xf]  ;;  %v7682_v24 = vrot.slane %v11619_v18, 5  ;;  %v7674_v10 = vrot.slane %v7672_v14, 4  ;;  %v7675_v9 = vrot.slane %v11622_v15, 5  ;;  %v7681_v63 = vrot.slane %v7679_v45, 4 }
 0x21e   : > { %10498 = vmatprep.mubr.msk.bf16.mxu1 %vm1047_vm4, %v11483_v2  ;;  %10794 = vmatprep.mubr.msk.bf16.mxu0 %vm1047_vm4, %v9727_v12  ;;  %v7654_v3 = vrot.slane %v11609_v51, 5  ;;  %v11610_v2 = vld [vmem:[%s11774_s23 + $0xc0] sm:$0xf]  ;;  %v11629_v18 = vld [vmem:[%s11774_s23 + $0xbc] sm:$0xf] }
 0x21f   : > { %v3885_v12 = vshll.u32 %v11610_v2, 16  ;;  %v3889_v53 = vshrl.u32 %v11610_v2, 16  ;;  %v7684_v56 = vrot.slane %v7682_v24, 4  ;;  %v13854_v1 = vsel %vm12072_vm8, %v7681_v63, %v7682_v24 }
 0x220   : > { %v7656_v22 = vrot.slane %v7654_v3, 4  ;;  %v7655_v5 = vsel %vm12072_vm8, %v9772_v6, %v7654_v3  ;;  %v11623_v3 = vld [vmem:[%s11774_s23 + $0xa0] sm:$0xf]  ;;  %v7694_v6 = vrot.slane %v11625_v46, 5  ;;  %v7707_v24 = vrot.slane %v11629_v18, 5 }
 0x221   : > { %v13792_v55 = vrot.slane %v3885_v12, 5  ;;  %v13794_v58 = vrot.slane %v3889_v53, 4  ;;  %v7688_v2 = vrot.slane %v11623_v3, 5 }
 0x222   : > { %v7658_v35 = vsel %vm12072_vm8, %v7656_v22, %v7657_v30  ;;  %v7696_v39 = vrot.slane %v7694_v6, 4 }
 0x223   : > { %v3892_v25 = vor.u32 %v13794_v58, %v13792_v55  ;;  %v9784_v61 = vcombine.low %v7655_v5, %v7658_v35  ;;  %v7690_v30 = vrot.slane %v7688_v2, 4 }
 0x225   : > { %10499 = vmatmul.mubr.msk.bf16.gmra.mrb[24].mxu1 %vm1047_vm4, %v11484_v41  ;;  %10795 = vmatmul.mubr.msk.bf16.gmra.mrb[56].mxu0 %vm1047_vm4, %v9728_v42  ;;  %v7666_v41 = vrot.slane %v11614_v47, 5  ;;  %v7669_v42 = vrot.slane %v11615_v49, 5  ;;  %v13863_v58 = vrot.slane %v3892_v25, 4 }
 0x226   : > { %10502 = vmatprep.mubr.msk.bf16.mxu1 %vm1047_vm4, %v11485_v59  ;;  %10798 = vmatprep.mubr.msk.bf16.mxu0 %vm1047_vm4, %v9729_v34  ;;  %v7648_v59 = vsel %vm12072_vm8, %v7646_v21, %v7647_v60  ;;  %v11616_v34 = vld [vmem:[%s11774_s23 + $0x7c] sm:$0xf]  ;;  %v7661_v60 = vsel %vm12072_vm8, %v7659_v16, %v7660_v29  ;;  %v13850_v21 = vsel %vm12072_vm8, %v7674_v10, %v7675_v9  ;;  %v11627_v29 = vld [vmem:[%s11774_s23 + $0xb8] sm:$0xf]  ;;  %v9774_v16 = vrot.slane %v9766_v20, 9 }
 0x227   : > { %v7663_v31 = vrot.slane %v11616_v34, 5  ;;  %v7668_v54 = vrot.slane %v7666_v41, 4  ;;  %v7671_v32 = vrot.slane %v7669_v42, 4  ;;  %v9783_v38 = vcombine.low %v7648_v59, %v7651_v48  ;;  %v11628_v48 = vld [vmem:[%s11774_s23 + $0xb0] sm:$0x1] }
 0x228   : > { %v7704_v22 = vrot.slane %v11627_v29, 5  ;;  %v7700_v5 = vrot.slane %v11628_v48, 5 }
 0x229   : > { %v7665_v8 = vrot.slane %v7663_v31, 4  ;;  %v7664_v27 = vsel %vm12072_vm8, %v7662_v43, %v7663_v31  ;;  %v7670_v12 = vsel %vm12072_vm8, %v7668_v54, %v7669_v42  ;;  %v13839_v53 = vsel %vm12072_vm8, %v7671_v32, %v7672_v14  ;;  %v11492_v42 = vld [vmem:[%s11774_s23 + $0xe0] sm:$0xff]   ;;  %v9313_v14 = vld [vmem:[%s11774_s23 + $0xb4] sm:$0xf] }
 0x22a   : > { %v9785_v47 = vcombine.low %v7661_v60, %v7664_v27  ;;  %v9787_v34 = vcombine.low %v13839_v53, %v13850_v21  ;;  %v13909_v25 = vsel %vm12072_vm8, %v9774_v16, %v7704_v22  ;;  %v9767_v16 = vld [vmem:[%s11774_s23 + $0xd8] sm:$0xe] }
 0x22b   : > { %v13831_v11 = vsel %vm12072_vm8, %v7665_v8, %v7666_v41  ;;  %v7706_v8 = vrot.slane %v7704_v22, 4  ;;  %v11495_v22 = vld [vmem:[%s11774_s23 + $0xfc] sm:$0xff]  }
 0x22c   : > { %v9786_v59 = vcombine.low %v13831_v11, %v7670_v12  ;;  %v11634_v11 = vld [vmem:[%s11774_s23 + $0xc8] sm:$0xf] }
 0x22d   : > { %10503 = vmatmul.mubr.msk.bf16.gmra.mrb[28].mxu1 %vm1047_vm4, %v11486_v26  ;;  %10799 = vmatmul.mubr.msk.bf16.gmra.mrb[60].mxu0 %vm1047_vm4, %v9730_v7  ;;  %v7685_v26 = vrot.slane %v11620_v50, 5  ;;  %v13817_v7 = vld [vmem:[%s11774_s23 + $0xc4] sm:$0xf]  ;;  %v3856_v50 = vshrl.u32 %v9313_v14, 16  ;;  %v13915_v27 = vsel %vm12072_vm8, %v7706_v8, %v7707_v24  ;;  %v11637_v8 = vld [vmem:[%s11774_s23 + $0xdc] sm:$0xf] }
 0x22e   : > { %10506 = vmatprep.mubr.msk.bf16.mxu1 %vm1047_vm4, %v11487_v19  ;;  %10804 = vmatprep.mubr.msk.bf16.mxu0 %vm1047_vm4, %v9780_v52  ;;  %v3895_v19 = vshll.u32 %v13817_v7, 16  ;;  %v9773_v52 = vrot.slane %v9765_v44, 9  ;;  %v11493_v44 = vld [vmem:[%s11774_s23 + $0xe8] sm:$0xff]   ;;  %v7729_v18 = vrot.slane %v11637_v8, 5 }
 0x22f   : > { %v7687_v51 = vrot.slane %v7685_v26, 4  ;;  %v13867_v41 = vsel %vm12072_vm8, %v7684_v56, %v7685_v26  ;;  %v3859_v26 = vshll.u32 %v9313_v14, 16  ;;  %v7716_v56 = vrot.slane %v11634_v11, 5 }
 0x230   : > { %v13858_v62 = vrot.slane %v3895_v19, 5  ;;  %v11630_v19 = vld [vmem:[%s11774_s23 + $0xb8] sm:$0xf]  ;;  %v7731_v11 = vrot.slane %v7729_v18, 4 }
 0x231   : > { %v13871_v49 = vsel %vm12072_vm8, %v7687_v51, %v7688_v2  ;;  %v3869_v54 = vshrl.u32 %v11630_v19, 16  ;;  %v11635_v51 = vld [vmem:[%s11774_s23 + $0xcc] sm:$0xf]  ;;  %v11636_v2 = vld [vmem:[%s11774_s23 + $0xd0] sm:$0xf]  ;;  %v7718_v14 = vrot.slane %v7716_v56, 4 }
 0x232   : > { %v9789_v43 = vcombine.low %v13867_v41, %v13871_v49  ;;  %v7719_v3 = vrot.slane %v11635_v51, 5  ;;  %v7722_v12 = vrot.slane %v11636_v2, 5  ;;  %v11641_v51 = vld [vmem:[%s11774_s23 + $0xe8] sm:$0xf]  ;;  %v11642_v2 = vld [vmem:[%s11774_s23 + $0xcc] sm:$0xf] }
 0x234   : > { %v13965_v53 = vsel %vm12072_vm8, %v7718_v14, %v7719_v3 }
 0x235   : > { %10507 = vmatmul.mubr.msk.bf16.gmra.mrb[32].mxu1 %vm1047_vm4, %v11488_v57  ;;  %10805 = vmatmul.mubr.msk.bf16.vlgmr.msra.gmra.mrb[0].mxu0 %vm1047_vm4, %v9781_v13  ;;  %v13843_v57 = vsel %vm12072_vm8, %v9773_v52, %v7679_v45  ;;  %v11624_v13 = vld [vmem:[%s11774_s23 + $0xa4] sm:$0xf]  ;;  %v11631_v52 = vld [vmem:[%s11774_s23 + $0xc0] sm:$0xf] }
 0x236   : > { %10510 = vmatprep.mubr.msk.bf16.mxu1 %vm1047_vm4, %v11489_v40  ;;  %10808 = vmatprep.mubr.msk.bf16.mxu0 %vm1047_vm4, %v9782_v0  ;;  %v7691_v40 = vrot.slane %v11624_v13, 5  ;;  %v11626_v0 = vld [vmem:[%s11774_s23 + $0xac] sm:$0xf]  ;;  %v9788_v31 = vcombine.low %v13843_v57, %v13854_v1  ;;  %v3858_v13 = vrot.slane %v3856_v50, 4  ;;  %v11496_v1 = vld [vmem:[%s11774_s23 + $0x104] sm:$0xff]  }
 0x237   : > { %v7697_v28 = vrot.slane %v11626_v0, 5  ;;  %v11494_v0 = vld [vmem:[%s11774_s23 + $0xf0] sm:$0xff]  }
 0x238   : > { %v7693_v17 = vrot.slane %v7691_v40, 4  ;;  %v13886_v35 = vsel %vm12072_vm8, %v7690_v30, %v7691_v40  ;;  %v3861_v40 = vrot.slane %v3859_v26, 5 }
 0x239   : > { %v7699_v45 = vrot.slane %v7697_v28, 4  ;;  %v13901_v9 = vsel %vm12072_vm8, %v7696_v39, %v7697_v28  ;;  %v7709_v28 = vrot.slane %v7707_v24, 4  ;;  %v7724_v39 = vrot.slane %v7722_v12, 4  ;;  %v11638_v24 = vld [vmem:[%s11774_s23 + $0xe0] sm:$0xf] }
 0x23a   : > { %v13893_v32 = vsel %vm12072_vm8, %v7693_v17, %v7694_v6  ;;  %v3871_v6 = vrot.slane %v3869_v54, 4  ;;  %v3862_v48 = vor.u32 %v3861_v40, %v3858_v13  ;;  %v7732_v50 = vrot.slane %v11638_v24, 5  ;;  %v11497_v40 = vld [vmem:[%s11774_s23 + $0x10c] sm:$0xff]  }
 0x23b   : > { %v13905_v63 = vsel %vm12072_vm8, %v7699_v45, %v7700_v5  ;;  %v7725_v45 = vrot.slane %v13490_v4, 5  ;;  %v3915_v13 = vshll.u32 %v11642_v2, 16 }
 0x23c   : > { %v7734_v57 = vrot.slane %v7732_v50, 4 }
 0x23d   : > { %10511 = vmatmul.mubr.msk.bf16.gmra.mrb[36].mxu1 %vm1047_vm4, %v11490_v37  ;;  %10809 = vmatmul.mubr.msk.bf16.gmra.mrb[4].mxu0 %vm1047_vm4, %v9783_v38  ;;  %v3865_v37 = vshll.u32 %v11630_v19, 16  ;;  %v7710_v38 = vrot.slane %v11631_v52, 5 }
 0x23e   : > { %10514 = vmatprep.mubr.msk.bf16.mxu1 %vm1047_vm4, %v11491_v23  ;;  %10812 = vmatprep.mubr.msk.bf16.mxu0 %vm1047_vm4, %v9784_v61  ;;  %v11632_v23 = vld [vmem:[%s11774_s23 + $0xbc] sm:$0xf]  ;;  %v11633_v61 = vld [vmem:[%s11774_s23 + $0xc4] sm:$0xf] }
 0x23f   : > { %v3875_v10 = vshll.u32 %v11632_v23, 16  ;;  %v3879_v15 = vshrl.u32 %v11632_v23, 16  ;;  %v7713_v60 = vrot.slane %v11633_v61, 5  ;;  %v13920_v46 = vrot.slane %v3865_v37, 5  ;;  %v11639_v37 = vld [vmem:[%s11774_s23 + $0xe4] sm:$0xf] }
 0x240   : > { %v7712_v30 = vrot.slane %v7710_v38, 4  ;;  %v13940_v26 = vsel %vm12072_vm8, %v7709_v28, %v7710_v38  ;;  %v7735_v54 = vrot.slane %v11639_v37, 5  ;;  %v3899_v38 = vshrl.u32 %v13817_v7, 16  ;;  %v11640_v23 = vld [vmem:[%s11774_s23 + $0xc8] sm:$0xf]  ;;  %v11498_v37 = vld [vmem:[%s11774_s23 + $0x114] sm:$0xff]  }
 0x241   : > { %v13923_v20 = vrot.slane %v3875_v10, 5  ;;  %v3881_v29 = vrot.slane %v3879_v15, 4  ;;  %v7715_v17 = vrot.slane %v7713_v60, 4  ;;  %v3872_v5 = vor.u32 %v3871_v6, %v13920_v46 }
 0x242   : > { %v13944_v19 = vsel %vm12072_vm8, %v7712_v30, %v7713_v60  ;;  %v3905_v10 = vshll.u32 %v11640_v23, 16  ;;  %v3909_v15 = vshrl.u32 %v11640_v23, 16  ;;  %v13973_v7 = vsel %vm12072_vm8, %v7724_v39, %v7725_v45 }
 0x243   : > { %v3882_v4 = vor.u32 %v3881_v29, %v13923_v20  ;;  %v13955_v52 = vsel %vm12072_vm8, %v7715_v17, %v7716_v56  ;;  %v3863_v61 = vrot.slane %v3862_v48, 4  ;;  %v3873_v60 = vrot.slane %v3872_v5, 4 }
 0x244   : > { %v7737_v56 = vrot.slane %v7735_v54, 4  ;;  %v13979_v6 = vrot.slane %v3905_v10, 5  ;;  %v3919_v28 = vshrl.u32 %v11642_v2, 16  ;;  %v3898_v29 = vsel %vm11803_vm5, %v13863_v58, %v13858_v62  ;;  %v11645_v10 = vld [vmem:[%s11774_s23 + $0xf0] sm:$0xf] }
 0x245   : > { %10515 = vmatmul.mubr.msk.bf16.gmra.mrb[40].mxu1 %vm1047_vm4, %v11492_v42  ;;  %10813 = vmatmul.mubr.msk.bf16.gmra.mrb[8].mxu0 %vm1047_vm4, %v9785_v47  ;;  %v9790_v47 = vcombine.low %v13886_v35, %v13893_v32  ;;  %v9791_v42 = vcombine.low %v13901_v9, %v13905_v63  ;;  %v3878_v39 = vsel %vm11803_vm5, %v3873_v60, %v13923_v20  ;;  %v11644_v20 = vld [vmem:[%s11774_s23 + $0xec] sm:$0xf] }
 0x246   : > { %10518 = vmatprep.mubr.msk.bf16.mxu1 %vm1047_vm4, %v11493_v44  ;;  %10816 = vmatprep.mubr.msk.bf16.mxu0 %vm1047_vm4, %v9786_v59  ;;  %v9792_v59 = vcombine.low %v13909_v25, %v13915_v27  ;;  %v7721_v44 = vrot.slane %v7719_v3, 4  ;;  %v7738_v3 = vrot.slane %v11641_v51, 5  ;;  %v13998_v45 = vsel %vm12072_vm8, %v7731_v11, %v7732_v50 }
 0x247   : > { %v14002_v48 = vsel %vm12072_vm8, %v7734_v57, %v7735_v54  ;;  %v3921_v24 = vrot.slane %v3919_v28, 4  ;;  %v9793_v41 = vcombine.low %v13940_v26, %v13944_v19  ;;  %v9794_v49 = vcombine.low %v13955_v52, %v13965_v53  ;;  %v11646_v57 = vld [vmem:[%s11774_s23 + $0xd4] sm:$0x1]  ;;  %v11658_v53 = vld [vmem:[%s11774_s23 + $0xf0] sm:$0xf] }
 0x248   : > { %v13969_v21 = vsel %vm12072_vm8, %v7721_v44, %v7722_v12  ;;  %v3901_v12 = vrot.slane %v3899_v38, 4  ;;  %v3868_v44 = vsel %vm11803_vm5, %v3863_v61, %v13920_v46  ;;  %v14010_v46 = vsel %vm12072_vm8, %v7737_v56, %v7738_v3  ;;  %v11647_v56 = vld [vmem:[%s11774_s23 + $0xf4] sm:$0xf] }
 0x249   : > { %v7740_v5 = vrot.slane %v7738_v3, 4  ;;  %v9795_v50 = vcombine.low %v13969_v21, %v13973_v7  ;;  %v9797_v32 = vcombine.low %v14002_v48, %v14010_v46  ;;  %v7747_v51 = vrot.slane %v11647_v56, 5  ;;  %v9768_v56 = vld [vmem:[%s11774_s23 + $0xfc] sm:$0xe]  ;;  %v11662_v7 = vld [vmem:[%s11774_s23 + $0xf8] sm:$0x1] }
 0x24a   : > { %v3902_v8 = vor.u32 %v3901_v12, %v13858_v62 }
 0x24b   : > { %v7749_v63 = vrot.slane %v7747_v51, 4 }
 0x24c   : > { %v14050_v61 = vrot.slane %v3902_v8, 4 }
 0x24d   : > { %10519 = vmatmul.mubr.msk.bf16.gmra.mrb[44].mxu1 %vm1047_vm4, %v11494_v0  ;;  %10817 = vmatmul.mubr.msk.bf16.gmra.mrb[12].mxu0 %vm1047_vm4, %v9787_v34  ;;  %v9775_v34 = vrot.slane %v9767_v16, 9  ;;  %v3911_v0 = vrot.slane %v3909_v15, 4  ;;  %v7741_v16 = vrot.slane %v11644_v20, 5  ;;  %v7744_v15 = vrot.slane %v11645_v10, 5  ;;  %v11501_v10 = vld [vmem:[%s11774_s23 + $0x130] sm:$0xff]  }
 0x24e   : > { %10522 = vmatprep.mubr.msk.bf16.mxu1 %vm1047_vm4, %v11495_v22  ;;  %10820 = vmatprep.mubr.msk.bf16.mxu0 %vm1047_vm4, %v9788_v31  ;;  %v3883_v31 = vrot.slane %v3882_v4, 4  ;;  %v11643_v22 = vld [vmem:[%s11774_s23 + $0xd0] sm:$0xf]  ;;  %v14034_v4 = vcombine.low %v3868_v44, %v3878_v39 }
 0x24f   : > { %v13983_v30 = vsel %vm12072_vm8, %v9775_v34, %v7729_v18  ;;  %v3925_v17 = vshll.u32 %v11643_v22, 16  ;;  %v3929_v14 = vshrl.u32 %v11643_v22, 16  ;;  %v14020_v18 = vrot.slane %v3915_v13, 5  ;;  %v11499_v34 = vld [vmem:[%s11774_s23 + $0x120] sm:$0xff]   ;;  %v11648_v13 = vld [vmem:[%s11774_s23 + $0xdc] sm:$0xf] }
 0x250   : > { %v3888_v58 = vsel %vm11803_vm5, %v3883_v31, %v13792_v55  ;;  %v3912_v55 = vor.u32 %v3911_v0, %v13979_v6  ;;  %v9796_v35 = vcombine.low %v13983_v30, %v13998_v45  ;;  %v14046_v38 = vsel %vm12072_vm8, %v7740_v5, %v7741_v16  ;;  %v11649_v0 = vld [vmem:[%s11774_s23 + $0xe0] sm:$0xf] }
 0x251   : > { %v3931_v62 = vrot.slane %v3929_v14, 4  ;;  %v14042_v54 = vcombine.low %v3888_v58, %v3898_v29  ;;  %v7743_v23 = vrot.slane %v7741_v16, 4  ;;  %v3922_v11 = vor.u32 %v3921_v24, %v14020_v18  ;;  %v11650_v14 = vld [vmem:[%s11774_s23 + $0xe4] sm:$0xf]  ;;  %v11651_v16 = vld [vmem:[%s11774_s23 + $0xf8] sm:$0x1] }
 0x252   : > { %v3913_v60 = vrot.slane %v3912_v55, 4  ;;  %v3953_v12 = vshrl.u32 %v11648_v13, 16  ;;  %v3959_v28 = vshll.u32 %v11649_v0, 16  ;;  %v3963_v29 = vshrl.u32 %v11649_v0, 16 }
 0x253   : > { %v14061_v22 = vsel %vm12072_vm8, %v7743_v23, %v7744_v15  ;;  %v3969_v44 = vshll.u32 %v11650_v14, 16  ;;  %v3973_v39 = vshrl.u32 %v11650_v14, 16  ;;  %v3908_v58 = vsel %vm11803_vm5, %v14050_v61, %v13979_v6 }
 0x254   : > { %v3923_v5 = vrot.slane %v3922_v11, 4  ;;  %v7750_v8 = vrot.slane %v11651_v16, 5  ;;  %v14080_v6 = vrot.slane %v3959_v28, 5  ;;  %v3918_v25 = vsel %vm11803_vm5, %v3913_v60, %v14020_v18  ;;  %v11653_v11 = vld [vmem:[%s11774_s23 + $0xec] sm:$0xf] }
 0x255   : > { %10523 = vmatmul.mubr.msk.bf16.gmra.mrb[48].mxu1 %vm1047_vm4, %v11496_v1  ;;  %10821 = vmatmul.mubr.msk.bf16.gmra.mrb[16].mxu0 %vm1047_vm4, %v9789_v43  ;;  %v14030_v43 = vrot.slane %v3925_v17, 5  ;;  %v3935_v1 = vshll.u32 %v11646_v57, 16  ;;  %v7746_v17 = vrot.slane %v7744_v15, 4  ;;  %v3975_v23 = vrot.slane %v3973_v39, 4 }
 0x256   : > { %10526 = vmatprep.mubr.msk.bf16.mxu1 %vm1047_vm4, %v11497_v40  ;;  %10824 = vmatprep.mubr.msk.bf16.mxu0 %vm1047_vm4, %v9790_v47  ;;  %v9322_v47 = vld [vmem:[%s11774_s23 + $0xd8] sm:$0xf]  ;;  %v3949_v40 = vshll.u32 %v11648_v13, 16  ;;  %v3989_v57 = vshll.u32 %v11653_v11, 16  ;;  %v14102_v60 = vsel %vm12072_vm8, %v7749_v63, %v7750_v8  ;;  %v14110_v0 = vcombine.low %v3908_v58, %v3918_v25 }
 0x257   : > { %v3932_v31 = vor.u32 %v3931_v62, %v14030_v43  ;;  %v3940_v3 = vshrl.u32 %v9322_v47, 16  ;;  %v3943_v2 = vshll.u32 %v9322_v47, 16  ;;  %v3937_v20 = vrot.slane %v3935_v1, 5 }
 0x258   : > { %v14078_v24 = vrot.slane %v3949_v40, 5  ;;  %v3955_v62 = vrot.slane %v3953_v12, 4  ;;  %v3965_v47 = vrot.slane %v3963_v29, 4  ;;  %v14088_v27 = vsel %vm12072_vm8, %v7746_v17, %v7747_v51  ;;  %v11654_v51 = vld [vmem:[%s11774_s23 + $0x100] sm:$0xf] }
 0x259   : > { %v3933_v9 = vrot.slane %v3932_v31, 4  ;;  %v3945_v55 = vrot.slane %v3943_v2, 5  ;;  %v3928_v15 = vsel %vm11803_vm5, %v3923_v5, %v14030_v43  ;;  %v3993_v1 = vshrl.u32 %v11653_v11, 16  ;;  %v11655_v43 = vld [vmem:[%s11774_s23 + $0x104] sm:$0xf] }
 0x25a   : > { %v3956_v2 = vor.u32 %v3955_v62, %v14078_v24  ;;  %v7757_v13 = vrot.slane %v11655_v43, 5  ;;  %v3966_v40 = vor.u32 %v3965_v47, %v14080_v6  ;;  %v9798_v28 = vcombine.low %v14046_v38, %v14061_v22  ;;  %v11656_v17 = vld [vmem:[%s11774_s23 + $0x108] sm:$0xf]  ;;  %v11657_v47 = vld [vmem:[%s11774_s23 + $0x10c] sm:$0xf] }
 0x25b   : > { %v3938_v18 = vsel %vm11803_vm5, %v3933_v9, %v3937_v20  ;;  %v7760_v14 = vrot.slane %v11656_v17, 5  ;;  %v14121_v58 = vrot.slane %v3989_v57, 5  ;;  %v3995_v5 = vrot.slane %v3993_v1, 4  ;;  %v11660_v11 = vld [vmem:[%s11774_s23 + $0xf4] sm:$0xf] }
 0x25c   : > { %v14127_v20 = vcombine.low %v3928_v15, %v3938_v18  ;;  %v9799_v26 = vcombine.low %v14088_v27, %v14102_v60  ;;  %v3957_v16 = vrot.slane %v3956_v2, 4  ;;  %v3967_v8 = vrot.slane %v3966_v40, 4  ;;  %v9331_v43 = vld [vmem:[%s11774_s23 + $0xfc] sm:$0xf]  ;;  %v11673_v27 = vld [vmem:[%s11774_s23 + $0x12c] sm:$0xf] }
 0x25d   : > { %10527 = vmatmul.mubr.msk.bf16.gmra.mrb[52].mxu1 %vm1047_vm4, %v11498_v37  ;;  %10825 = vmatmul.mubr.msk.bf16.gmra.mrb[20].mxu0 %vm1047_vm4, %v9791_v42  ;;  %v3942_v42 = vrot.slane %v3940_v3, 4  ;;  %v11500_v37 = vld [vmem:[%s11774_s23 + $0x128] sm:$0xff]   ;;  %v7754_v3 = vrot.slane %v11654_v51, 5  ;;  %v7759_v63 = vrot.slane %v7757_v13, 4  ;;  %v7762_v62 = vrot.slane %v7760_v14, 4 }
 0x25e   : > { %10530 = vmatprep.mubr.msk.bf16.mxu1 %vm1047_vm4, %v11499_v34  ;;  %10828 = vmatprep.mubr.msk.bf16.mxu0 %vm1047_vm4, %v9792_v59  ;;  %v14090_v59 = vrot.slane %v3969_v44, 5  ;;  %v11652_v34 = vld [vmem:[%s11774_s23 + $0xe8] sm:$0xf]  ;;  %v9776_v44 = vrot.slane %v9768_v56, 9  ;;  %v7763_v52 = vrot.slane %v11657_v47, 5  ;;  %v4009_v57 = vshll.u32 %v11660_v11, 16 }
 0x25f   : > { %v3983_v61 = vshrl.u32 %v11652_v34, 16  ;;  %v3946_v31 = vor.u32 %v3945_v55, %v3942_v42  ;;  %v3979_v12 = vshll.u32 %v11652_v34, 16  ;;  %v11502_v42 = vld [vmem:[%s11774_s23 + $0x138] sm:$0xff]   ;;  %v4013_v1 = vshrl.u32 %v11660_v11, 16 }
 0x260   : > { %v3976_v29 = vor.u32 %v3975_v23, %v14090_v59  ;;  %v3996_v23 = vor.u32 %v3995_v5, %v14121_v58  ;;  %v3962_v18 = vsel %vm11803_vm5, %v3957_v16, %v14080_v6  ;;  %v3972_v56 = vsel %vm11803_vm5, %v3967_v8, %v14090_v59 }
 0x261   : > { %v3985_v39 = vrot.slane %v3983_v61, 4  ;;  %v3947_v19 = vrot.slane %v3946_v31, 4  ;;  %v3981_v9 = vrot.slane %v3979_v12, 5  ;;  %v4003_v61 = vshrl.u32 %v11658_v53, 16  ;;  %v11661_v12 = vld [vmem:[%s11774_s23 + $0x114] sm:$0xf] }
 0x262   : > { %v3977_v55 = vrot.slane %v3976_v29, 4  ;;  %v14163_v6 = vsel %vm12072_vm8, %v7762_v62, %v7763_v52  ;;  %v7765_v2 = vrot.slane %v7763_v52, 4  ;;  %v7769_v29 = vrot.slane %v11661_v12, 5 }
 0x263   : > { %v3986_v25 = vor.u32 %v3985_v39, %v3981_v9  ;;  %v3952_v34 = vsel %vm11803_vm5, %v3947_v19, %v14078_v24  ;;  %v14156_v24 = vsel %vm12072_vm8, %v7759_v63, %v7760_v14  ;;  %v4005_v17 = vrot.slane %v4003_v61, 4  ;;  %v11665_v61 = vld [vmem:[%s11774_s23 + $0x124] sm:$0xf] }
 0x264   : > { %v3982_v51 = vsel %vm11803_vm5, %v3977_v55, %v3981_v9  ;;  %v14177_v14 = vrot.slane %v4009_v57, 5  ;;  %v4015_v21 = vrot.slane %v4013_v1, 4  ;;  %v4027_v39 = vshll.u32 %v9331_v43, 16 }
 0x265   : > { %10531 = vmatmul.mubr.msk.bf16.gmra.mrb[56].mxu1 %vm1047_vm4, %v11500_v37  ;;  %10829 = vmatmul.mubr.msk.bf16.gmra.mrb[24].mxu0 %vm1047_vm4, %v9793_v41  ;;  %v7756_v41 = vrot.slane %v7754_v3, 4  ;;  %v14136_v37 = vsel %vm12072_vm8, %v9776_v44, %v7754_v3  ;;  %v3987_v59 = vrot.slane %v3986_v25, 4  ;;  %v4019_v44 = vshll.u32 %v11662_v7, 16 }
 0x266   : > { %10534 = vmatprep.mubr.msk.bf16.mxu1 %vm1047_vm4, %v11501_v10  ;;  %10832 = vmatprep.mubr.msk.bf16.mxu0 %vm1047_vm4, %v9794_v49  ;;  %v3999_v49 = vshll.u32 %v11658_v53, 16  ;;  %v11659_v10 = vld [vmem:[%s11774_s23 + $0x110] sm:$0xf]  ;;  %v14185_v30 = vcombine.low %v3972_v56, %v3982_v51  ;;  %v9801_v45 = vcombine.low %v14156_v24, %v14163_v6  ;;  %v4016_v55 = vor.u32 %v4015_v21, %v14177_v14 }
 0x267   : > { %v7766_v15 = vrot.slane %v11659_v10, 5  ;;  %v14149_v31 = vsel %vm12072_vm8, %v7756_v41, %v7757_v13  ;;  %v3997_v13 = vrot.slane %v3996_v23, 4  ;;  %v14181_v41 = vcombine.low %v3952_v34, %v3962_v18  ;;  %v9769_v34 = vld [vmem:[%s11774_s23 + $0x120] sm:$0xe]  ;;  %v11667_v18 = vld [vmem:[%s11774_s23 + $0x108] sm:$0xf] }
 0x268   : > { %v4001_v3 = vrot.slane %v3999_v49, 5  ;;  %v9800_v16 = vcombine.low %v14136_v37, %v14149_v31  ;;  %v14203_v62 = vrot.slane %v4019_v44, 5  ;;  %v4029_v53 = vrot.slane %v4027_v39, 5  ;;  %v11671_v21 = vld [vmem:[%s11774_s23 + $0x110] sm:$0xf] }
 0x269   : > { %v7768_v40 = vrot.slane %v7766_v15, 4  ;;  %v14196_v9 = vsel %vm12072_vm8, %v7765_v2, %v7766_v15  ;;  %v7771_v15 = vrot.slane %v7769_v29, 4  ;;  %v7779_v11 = vrot.slane %v11665_v61, 5 }
 0x26a   : > { %v4002_v8 = vsel %vm11803_vm5, %v3997_v13, %v4001_v3  ;;  %v4053_v56 = vshll.u32 %v11667_v18, 16  ;;  %v4057_v51 = vshrl.u32 %v11667_v18, 16  ;;  %v4017_v46 = vrot.slane %v4016_v55, 4  ;;  %v11669_v13 = vld [vmem:[%s11774_s23 + $0x128] sm:$0xf] }
 0x26b   : > { %v14200_v63 = vsel %vm12072_vm8, %v7768_v40, %v7769_v29  ;;  %v7782_v40 = vrot.slane %v11669_v13, 5  ;;  %v7781_v12 = vrot.slane %v7779_v11, 4  ;;  %v11670_v29 = vld [vmem:[%s11774_s23 + $0x10c] sm:$0xf]  ;;  %v4073_v7 = vshll.u32 %v11671_v21, 16 }
 0x26c   : > { %v9802_v10 = vcombine.low %v14196_v9, %v14200_v63  ;;  %v4077_v44 = vshrl.u32 %v11671_v21, 16  ;;  %v7785_v60 = vrot.slane %v11673_v27, 5 }
 0x26d   : > { %10535 = vmatmul.mubr.msk.bf16.gmra.mrb[60].mxu1 %vm1047_vm4, %v11502_v42  ;;  %10833 = vmatmul.mubr.msk.bf16.gmra.mrb[28].mxu0 %vm1047_vm4, %v9795_v50  ;;  %v4024_v50 = vshrl.u32 %v9331_v43, 16  ;;  %v4006_v42 = vor.u32 %v4005_v17, %v4001_v3  ;;  %v11668_v3 = vld [vmem:[%s11774_s23 + $0x11c] sm:$0x1]  ;;  %v4067_v17 = vshrl.u32 %v11670_v29, 16  ;;  %v14263_v55 = vsel %vm12072_vm8, %v7781_v12, %v7782_v40 }
 0x26e   : > { %10572 = vmatprep.mubr.msk.bf16.mxu1 %vm1047_vm4, %v14034_v4  ;;  %10836 = vmatprep.mubr.msk.bf16.mxu0 %vm1047_vm4, %v9796_v35  ;;  %v11663_v4 = vld [vmem:[%s11774_s23 + $0x100] sm:$0xf]  ;;  %v3992_v35 = vsel %vm11803_vm5, %v3987_v59, %v14121_v58  ;;  %v11664_v58 = vld [vmem:[%s11774_s23 + $0x118] sm:$0xf]  ;;  %v7775_v2 = vrot.slane %v11668_v3, 5  ;;  %v9777_v59 = vrot.slane %v9769_v34, 9 }
 0x26f   : > { %v4033_v5 = vshll.u32 %v11663_v4, 16  ;;  %v4037_v19 = vshrl.u32 %v11663_v4, 16  ;;  %v7772_v47 = vrot.slane %v11664_v58, 5  ;;  %v4026_v52 = vrot.slane %v4024_v50, 4  ;;  %v11675_v3 = vld [vmem:[%s11774_s23 + $0x130] sm:$0xf] }
 0x270   : > { %v14210_v23 = vcombine.low %v3992_v35, %v4002_v8  ;;  %v4007_v48 = vrot.slane %v4006_v42, 4  ;;  %v4059_v50 = vrot.slane %v4057_v51, 4  ;;  %v4022_v4 = vsel %vm11803_vm5, %v4017_v46, %v14203_v62 }
 0x271   : > { %v14206_v49 = vrot.slane %v4033_v5, 5  ;;  %v4039_v25 = vrot.slane %v4037_v19, 4  ;;  %v14245_v5 = vsel %vm12072_vm8, %v7771_v15, %v7772_v47  ;;  %v4063_v19 = vshll.u32 %v11670_v29, 16 }
 0x272   : > { %v4012_v39 = vsel %vm11803_vm5, %v4007_v48, %v14177_v14  ;;  %v14257_v14 = vsel %vm12072_vm8, %v9777_v59, %v7779_v11  ;;  %v4069_v62 = vrot.slane %v4067_v17, 4  ;;  %v14265_v58 = vrot.slane %v4073_v7, 5 }
 0x273   : > { %v4040_v43 = vor.u32 %v4039_v25, %v14206_v49  ;;  %v4065_v34 = vrot.slane %v4063_v19, 5  ;;  %v14282_v11 = vcombine.low %v4012_v39, %v4022_v4  ;;  %v7784_v31 = vrot.slane %v7782_v40, 4  ;;  %v11676_v40 = vld [vmem:[%s11774_s23 + $0x124] sm:$0xf] }
 0x274   : > { %v4117_v12 = vshll.u32 %v11676_v40, 16  ;;  %v4121_v29 = vshrl.u32 %v11676_v40, 16  ;;  %v11686_v40 = vld [vmem:[%s11774_s23 + $0x148] sm:$0xf] }
 0x275   : > { %10573 = vmatmul.mubr.msk.bf16.vlgmr.msra.gmra.mrb[32].mxu1 %vm1047_vm4, %v14042_v54  ;;  %10837 = vmatmul.mubr.msk.bf16.gmra.mrb[32].mxu0 %vm1047_vm4, %v9797_v32  ;;  %v11666_v54 = vld [vmem:[%s11774_s23 + $0x104] sm:$0xf]  ;;  %v7774_v32 = vrot.slane %v7772_v47, 4  ;;  %v14253_v42 = vrot.slane %v4040_v43, 4  ;;  %v4079_v47 = vrot.slane %v4077_v44, 4  ;;  %v14306_v17 = vsel %vm12072_vm8, %v7784_v31, %v7785_v60 }
 0x276   : > { %10576 = vmatprep.mubr.msk.bf16.mxu1 %vm1047_vm4, %v14110_v0  ;;  %v4043_v57 = vshll.u32 %v11666_v54, 16  ;;  %v4047_v1 = vshrl.u32 %v11666_v54, 16  ;;  %10840 = vmatprep.mubr.msk.bf16.mxu0 %vm1047_vm4, %v9798_v28  ;;  %v4030_v0 = vor.u32 %v4029_v53, %v4026_v52  ;;  %v14235_v28 = vrot.slane %v4053_v56, 5  ;;  %v11672_v53 = vld [vmem:[%s11774_s23 + $0x114] sm:$0xf] }
 0x277   : > { %v14249_v35 = vsel %vm12072_vm8, %v7774_v32, %v7775_v2  ;;  %v4083_v25 = vshll.u32 %v11672_v53, 16  ;;  %v4087_v15 = vshrl.u32 %v11672_v53, 16  ;;  %v4080_v18 = vor.u32 %v4079_v47, %v14265_v58  ;;  %v9340_v56 = vld [vmem:[%s11774_s23 + $0x120] sm:$0xf]  ;;  %v11677_v44 = vld [vmem:[%s11774_s23 + $0x134] sm:$0xf] }
 0x278   : > { %v14233_v38 = vrot.slane %v4043_v57, 5  ;;  %v4049_v22 = vrot.slane %v4047_v1, 4  ;;  %v14251_v8 = vrot.slane %v4030_v0, 4  ;;  %v9803_v54 = vcombine.low %v14245_v5, %v14249_v35  ;;  %v11680_v53 = vld [vmem:[%s11774_s23 + $0x13c] sm:$0xf] }
 0x279   : > { %v9804_v57 = vcombine.low %v14257_v14, %v14263_v55  ;;  %v4070_v1 = vor.u32 %v4069_v62, %v4065_v34  ;;  %v4085_v46 = vrot.slane %v4083_v25, 5  ;;  %v4089_v32 = vrot.slane %v4087_v15, 4  ;;  %v11684_v35 = vld [vmem:[%s11774_s23 + $0x130] sm:$0xf] }
 0x27a   : > { %v4050_v52 = vor.u32 %v4049_v22, %v14233_v38  ;;  %v4036_v37 = vsel %vm11803_vm5, %v14251_v8, %v14206_v49  ;;  %v7787_v49 = vrot.slane %v7785_v60, 4  ;;  %v7788_v2 = vrot.slane %v11675_v3, 5 }
 0x27b   : > { %v4108_v59 = vshrl.u32 %v9340_v56, 16  ;;  %v4111_v13 = vshll.u32 %v9340_v56, 16  ;;  %v4071_v21 = vrot.slane %v4070_v1, 4  ;;  %v4081_v7 = vrot.slane %v4080_v18, 4  ;;  %v11682_v1 = vld [vmem:[%s11774_s23 + $0x12c] sm:$0xf] }
 0x27c   : > { %v4051_v51 = vrot.slane %v4050_v52, 4  ;;  %v14326_v24 = vsel %vm12072_vm8, %v7787_v49, %v7788_v2  ;;  %v7790_v6 = vrot.slane %v7788_v2, 4  ;;  %v14330_v19 = vrot.slane %v4117_v12, 5  ;;  %v11685_v49 = vld [vmem:[%s11774_s23 + $0x134] sm:$0xf] }
 0x27d   : > { %10577 = vmatmul.mubr.msk.bf16.gmra.mrb[36].mxu1 %vm1047_vm4, %v14127_v20  ;;  %10841 = vmatmul.mubr.msk.bf16.gmra.mrb[36].mxu0 %vm1047_vm4, %v9799_v26  ;;  %v4060_v20 = vor.u32 %v4059_v50, %v14235_v28  ;;  %v11674_v26 = vld [vmem:[%s11774_s23 + $0x118] sm:$0xf]  ;;  %v4090_v50 = vor.u32 %v4089_v32, %v4085_v46  ;;  %v4110_v39 = vrot.slane %v4108_v59, 4  ;;  %v4113_v4 = vrot.slane %v4111_v13, 5  ;;  %v9770_v13 = vld [vmem:[%s11774_s23 + $0x144] sm:$0xe] }
 0x27e   : > { %10580 = vmatprep.mubr.msk.bf16.mxu1 %vm1047_vm4, %v14181_v41  ;;  %10844 = vmatprep.mubr.msk.bf16.mxu0 %vm1047_vm4, %v9800_v16  ;;  %v4093_v61 = vshll.u32 %v11674_v26, 16  ;;  %v4097_v41 = vshrl.u32 %v11674_v26, 16  ;;  %v4046_v16 = vsel %vm11803_vm5, %v14253_v42, %v14233_v38  ;;  %v7791_v38 = vrot.slane %v11677_v44, 5  ;;  %v11679_v42 = vld [vmem:[%s11774_s23 + $0x138] sm:$0xf] }
 0x27f   : > { %v4061_v48 = vrot.slane %v4060_v20, 4  ;;  %v4123_v8 = vrot.slane %v4121_v29, 4  ;;  %v4076_v9 = vsel %vm11803_vm5, %v4071_v21, %v14265_v58  ;;  %v4086_v63 = vsel %vm11803_vm5, %v4081_v7, %v4085_v46  ;;  %v11683_v46 = vld [vmem:[%s11774_s23 + $0x140] sm:$0x1] }
 0x280   : > { %v14299_v0 = vrot.slane %v4093_v61, 5  ;;  %v4099_v43 = vrot.slane %v4097_v41, 4  ;;  %v7794_v62 = vrot.slane %v11679_v42, 5  ;;  %v9374_v47 = vcombine.low %v4036_v37, %v4046_v16  ;;  %v11681_v41 = vld [vmem:[%s11774_s23 + $0x128] sm:$0xf] }
 0x281   : > { %v4066_v22 = vsel %vm11803_vm5, %v4061_v48, %v4065_v34  ;;  %v4091_v20 = vrot.slane %v4090_v50, 4  ;;  %v7797_v25 = vrot.slane %v11680_v53, 5  ;;  %v9805_v15 = vcombine.low %v14306_v17, %v14326_v24 }
 0x282   : > { %v14343_v34 = vsel %vm12072_vm8, %v7790_v6, %v7791_v38  ;;  %v9376_v60 = vcombine.low %v4076_v9, %v4086_v63  ;;  %v4114_v26 = vor.u32 %v4113_v4, %v4110_v39  ;;  %v4124_v61 = vor.u32 %v4123_v8, %v14330_v19  ;;  %v11688_v9 = vld [vmem:[%s11774_s23 + $0x150] sm:$0xf] }
 0x283   : > { %v4127_v37 = vshll.u32 %v11681_v41, 16  ;;  %v4131_v16 = vshrl.u32 %v11681_v41, 16  ;;  %v4137_v18 = vshll.u32 %v11682_v1, 16  ;;  %v4141_v56 = vshrl.u32 %v11682_v1, 16 }
 0x284   : > { %v7799_v48 = vrot.slane %v7797_v25, 4  ;;  %v7800_v32 = vrot.slane %v11683_v46, 5  ;;  %v4157_v3 = vshll.u32 %v11685_v49, 16  ;;  %v4161_v2 = vshrl.u32 %v11685_v49, 16 }
 0x285   : > { %10581 = vmatmul.mubr.msk.bf16.gmra.mrb[40].mxu1 %vm1047_vm4, %v14185_v30  ;;  %10845 = vmatmul.mubr.msk.bf16.gmra.mrb[40].mxu0 %vm1047_vm4, %v9801_v45  ;;  %v4056_v30 = vsel %vm11803_vm5, %v4051_v51, %v14235_v28  ;;  %v4100_v45 = vor.u32 %v4099_v43, %v14299_v0  ;;  %v7796_v51 = vrot.slane %v7794_v62, 4  ;;  %v4115_v43 = vrot.slane %v4114_v26, 4 }
 0x286   : > { %10584 = vmatprep.mubr.msk.bf16.mxu1 %vm1047_vm4, %v14210_v23  ;;  %10848 = vmatprep.mubr.msk.bf16.mxu0 %vm1047_vm4, %v9802_v10  ;;  %v11678_v23 = vld [vmem:[%s11774_s23 + $0x11c] sm:$0x1]  ;;  %v7793_v10 = vrot.slane %v7791_v38, 4  ;;  %v9375_v52 = vcombine.low %v4056_v30, %v4066_v22  ;;  %v4129_v59 = vrot.slane %v4127_v37, 5  ;;  %v7804_v12 = vrot.slane %v11686_v40, 5 }
 0x287   : > { %v4103_v28 = vshll.u32 %v11678_v23, 16  ;;  %v4101_v58 = vrot.slane %v4100_v45, 4  ;;  %v4133_v29 = vrot.slane %v4131_v16, 4  ;;  %v14371_v17 = vrot.slane %v4137_v18, 5  ;;  %v11687_v23 = vld [vmem:[%s11774_s23 + $0x14c] sm:$0xf] }
 0x288   : > { %v7795_v31 = vsel %vm12072_vm8, %v7793_v10, %v7794_v62  ;;  %v4143_v14 = vrot.slane %v4141_v56, 4  ;;  %v4147_v55 = vshll.u32 %v11684_v35, 16  ;;  %v7798_v7 = vsel %vm12072_vm8, %v7796_v51, %v7797_v25  ;;  %v11690_v62 = vld [vmem:[%s11774_s23 + $0x13c] sm:$0xf] }
 0x289   : > { %v4105_v27 = vrot.slane %v4103_v28, 5  ;;  %v7801_v44 = vsel %vm12072_vm8, %v7799_v48, %v7800_v32  ;;  %v9778_v38 = vrot.slane %v9770_v13, 9  ;;  %v14378_v22 = vrot.slane %v4157_v3, 5  ;;  %v11694_v13 = vld [vmem:[%s11774_s23 + $0x140] sm:$0x1] }
 0x28a   : > { %v4163_v50 = vrot.slane %v4161_v2, 4  ;;  %v4120_v24 = vsel %vm11803_vm5, %v4115_v43, %v14330_v19  ;;  %v7806_v45 = vrot.slane %v7804_v12, 4  ;;  %v7807_v28 = vrot.slane %v11687_v23, 5  ;;  %v11689_v19 = vld [vmem:[%s11774_s23 + $0x138] sm:$0xf] }
 0x28b   : > { %v4106_v5 = vsel %vm11803_vm5, %v4101_v58, %v4105_v27  ;;  %v4134_v39 = vor.u32 %v4133_v29, %v4129_v59  ;;  %v4144_v4 = vor.u32 %v4143_v14, %v14371_v17  ;;  %v4149_v8 = vrot.slane %v4147_v55, 5 }
 0x28c   : > { %v7810_v63 = vrot.slane %v11688_v9, 5  ;;  %v4167_v10 = vshll.u32 %v11689_v19, 16  ;;  %v4171_v42 = vshrl.u32 %v11689_v19, 16  ;;  %v7805_v53 = vsel %vm12072_vm8, %v9778_v38, %v7804_v12 }
 0x28d   : > { %10585 = vmatmul.mubr.msk.bf16.gmra.mrb[44].mxu1 %vm1047_vm4, %v14282_v11  ;;  %10849 = vmatmul.mubr.msk.bf16.gmra.mrb[44].mxu0 %vm1047_vm4, %v9803_v54  ;;  %v4096_v11 = vsel %vm11803_vm5, %v4091_v20, %v14299_v0  ;;  %v4151_v54 = vshrl.u32 %v11684_v35, 16  ;;  %v4125_v0 = vrot.slane %v4124_v61, 4  ;;  %v4181_v20 = vshrl.u32 %v11690_v62, 16  ;;  %v11693_v35 = vld [vmem:[%s11774_s23 + $0x15c] sm:$0xf] }
 0x28e   : > { %10588 = vmatprep.mubr.msk.bf16.mxu1 %vm1047_vm4, %v9374_v47  ;;  %10852 = vmatprep.mubr.msk.bf16.mxu0 %vm1047_vm4, %v9804_v57  ;;  %v9806_v57 = vcombine.low %v14343_v34, %v7795_v31  ;;  %v9377_v21 = vcombine.low %v4096_v11, %v4106_v5  ;;  %v4177_v47 = vshll.u32 %v11690_v62, 16  ;;  %v4164_v34 = vor.u32 %v4163_v50, %v14378_v22  ;;  %v11692_v31 = vld [vmem:[%s11774_s23 + $0x154] sm:$0xf] }
 0x28f   : > { %v4153_v30 = vrot.slane %v4151_v54, 4  ;;  %v4130_v6 = vsel %vm11803_vm5, %v4125_v0, %v4129_v59  ;;  %v7808_v58 = vsel %vm12072_vm8, %v7806_v45, %v7807_v28  ;;  %v7809_v27 = vrot.slane %v7807_v28, 4  ;;  %v11696_v45 = vld [vmem:[%s11774_s23 + $0x164] sm:$0x1] }
 0x290   : > { %v4135_v61 = vrot.slane %v4134_v39, 4  ;;  %v4145_v41 = vrot.slane %v4144_v4, 4  ;;  %v7812_v37 = vrot.slane %v7810_v63, 4  ;;  %v7813_v16 = vrot.slane %v11692_v31, 5 }
 0x291   : > { %v4154_v25 = vor.u32 %v4153_v30, %v4149_v8  ;;  %v4169_v1 = vrot.slane %v4167_v10, 5  ;;  %v4173_v18 = vrot.slane %v4171_v42, 4  ;;  %v4179_v56 = vrot.slane %v4177_v47, 5 }
 0x292   : > { %v4183_v11 = vrot.slane %v4181_v20, 4  ;;  %v9808_v51 = vcombine.low %v7805_v53, %v7808_v58  ;;  %v4165_v46 = vrot.slane %v4164_v34, 4  ;;  %v7815_v32 = vrot.slane %v7813_v16, 4 }
 0x293   : > { %v4155_v48 = vrot.slane %v4154_v25, 4  ;;  %v7819_v54 = vrot.slane %v11693_v35, 5  ;;  %v4140_v49 = vsel %vm11803_vm5, %v4135_v61, %v14371_v17  ;;  %v4150_v3 = vsel %vm11803_vm5, %v4145_v41, %v4149_v8  ;;  %v11695_v17 = vld [vmem:[%s11774_s23 + $0x160] sm:$0xf] }
 0x294   : > { %v7811_v2 = vsel %vm12072_vm8, %v7809_v27, %v7810_v63  ;;  %v7814_v43 = vsel %vm12072_vm8, %v7812_v37, %v7813_v16  ;;  %v4174_v0 = vor.u32 %v4173_v18, %v4169_v1  ;;  %v4184_v59 = vor.u32 %v4183_v11, %v4179_v56 }
 0x295   : > { %10589 = vmatmul.mubr.msk.bf16.gmra.mrb[48].mxu1 %vm1047_vm4, %v9375_v52  ;;  %10853 = vmatmul.mubr.msk.bf16.gmra.mrb[48].mxu0 %vm1047_vm4, %v9805_v15  ;;  %v9807_v52 = vcombine.low %v7798_v7, %v7801_v44  ;;  %v9378_v15 = vcombine.low %v4120_v24, %v4130_v6  ;;  %v4187_v40 = vshll.u32 %v11694_v13, 16  ;;  %v4160_v12 = vsel %vm11803_vm5, %v4155_v48, %v14378_v22 }
 0x296   : > { %10592 = vmatprep.mubr.msk.bf16.mxu1 %vm1047_vm4, %v9376_v60  ;;  %10856 = vmatprep.mubr.msk.bf16.mxu0 %vm1047_vm4, %v9806_v57  ;;  %v11691_v60 = vld [vmem:[%s11774_s23 + $0x158] sm:$0xf]  ;;  %v4170_v29 = vsel %vm11803_vm5, %v4165_v46, %v4169_v1  ;;  %v7822_v14 = vrot.slane %v11695_v17, 5  ;;  %v9809_v7 = vcombine.low %v7811_v2, %v7814_v43  ;;  %v4175_v38 = vrot.slane %v4174_v0, 4 }
 0x297   : > { %v7816_v26 = vrot.slane %v11691_v60, 5  ;;  %v9380_v44 = vcombine.low %v4160_v12, %v4170_v29  ;;  %v4185_v30 = vrot.slane %v4184_v59, 4  ;;  %v4189_v50 = vrot.slane %v4187_v40, 5 }
 0x298   : > { %v7821_v6 = vrot.slane %v7819_v54, 4  ;;  %v7824_v22 = vrot.slane %v7822_v14, 4  ;;  %v7825_v23 = vrot.slane %v11696_v45, 5  ;;  %v4180_v28 = vsel %vm11803_vm5, %v4175_v38, %v4179_v56 }
 0x299   : > { %v7818_v5 = vrot.slane %v7816_v26, 4  ;;  %v7817_v55 = vsel %vm12072_vm8, %v7815_v32, %v7816_v26  ;;  %v4190_v39 = vsel %vm11803_vm5, %v4185_v30, %v4189_v50 }
 0x29a   : > { %v7823_v4 = vsel %vm12072_vm8, %v7821_v6, %v7822_v14  ;;  %v7826_v8 = vsel %vm12072_vm8, %v7824_v22, %v7825_v23  ;;  %v9381_v9 = vcombine.low %v4180_v28, %v4190_v39 }
 0x29b   : > { %v7820_v57 = vsel %vm12072_vm8, %v7818_v5, %v7819_v54  ;;  %v9811_v63 = vcombine.low %v7823_v4, %v7826_v8 }
 0x29c   : > { %v9810_v24 = vcombine.low %v7817_v55, %v7820_v57 }
 0x29d   : > { %10593 = vmatmul.mubr.msk.bf16.gmra.mrb[52].mxu1 %vm1047_vm4, %v9377_v21  ;;  %10857 = vmatmul.mubr.msk.bf16.gmra.mrb[52].mxu0 %vm1047_vm4, %v9807_v52  ;;  %v9379_v21 = vcombine.low %v4140_v49, %v4150_v3  ;;  %v14495_v49 = vld [vmem:[%s14730_s2] ss:$0 sm:$0xff] }
 0x29e   : > { %10596 = vmatprep.mubr.msk.bf16.mxu1 %vm1047_vm4, %v9378_v15  ;;  %10860 = vmatprep.mubr.msk.bf16.mxu0 %vm1047_vm4, %v9808_v51 }
 0x2a5   : > { %10597 = vmatmul.mubr.msk.bf16.gmra.mrb[56].mxu1 %vm1047_vm4, %v9379_v21  ;;  %10861 = vmatmul.mubr.msk.bf16.gmra.mrb[56].mxu0 %vm1047_vm4, %v9809_v7 }
 0x2a6   : > { %10600 = vmatprep.mubr.msk.bf16.mxu1 %vm1047_vm4, %v9380_v44  ;;  %10864 = vmatprep.mubr.msk.bf16.mxu0 %vm1047_vm4, %v9810_v24 }
 0x2ad   : > { %10601 = vmatmul.mubr.msk.bf16.gmra.mrb[60].mxu1 %vm1047_vm4, %v9381_v9  ;;  %10865 = vmatmul.mubr.msk.bf16.gmra.mrb[60].mxu0 %vm1047_vm4, %v9811_v63 }
 0x2c8   : > { %v10476_v19 = vpop.f32.mrb[0].mxu1 }
 0x2c9   : > { %v3128_v10 = vpop.f32.mrb[1].mxu1 }
 0x2ca   : > { %v10477_v42 = vpop.f32.mrb[2].mxu1 }
 0x2cb   : > { %v3131_v62 = vpop.f32.mrb[3].mxu1 }
 0x2d0   : > { %v10480_v33 = vpop.f32.mrb[4].mxu1 }
 0x2d1   : > { %v3144_v47 = vpop.f32.mrb[5].mxu1 }
 0x2d2   : > { %v10481_v20 = vpop.f32.mrb[6].mxu1 }
 0x2d3   : > { %v14441_v52 = vpop.f32.mrb[7].mxu1 }
 0x2d8   : > { %v14443_v53 = vpop.f32.mrb[8].mxu1 }
 0x2d9   : > { %v14445_v25 = vpop.f32.mrb[9].mxu1 }
 0x2da   : > { %v14447_v36 = vpop.f32.mrb[10].mxu1 }
 0x2db   : > { %v14449_v34 = vpop.f32.mrb[11].mxu1 }
 0x2e0   : > { %v14451_v15 = vpop.f32.mrb[12].mxu1 }
 0x2e1   : > { %v14453_v58 = vpop.f32.mrb[13].mxu1 }
 0x2e2   : > { %v14455_v27 = vpop.f32.mrb[14].mxu1 }
 0x2e3   : > { %v14457_v60 = vpop.f32.mrb[15].mxu1 }
 0x2e8   : > { %v14459_v26 = vpop.f32.mrb[16].mxu1 }
 0x2e9   : > { %v14461_v61 = vpop.f32.mrb[17].mxu1 }
 0x2ea   : > { %v14463_v41 = vpop.f32.mrb[18].mxu1 }
 0x2eb   : > { %v14465_v37 = vpop.f32.mrb[19].mxu1 }
 0x2f0   : > { %v14467_v31 = vpop.f32.mrb[20].mxu1 }
 0x2f1   : > { %v14469_v16 = vpop.f32.mrb[21].mxu1 }
 0x2f2   : > { %v14471_v1 = vpop.f32.mrb[22].mxu1 }
 0x2f3   : > { %v14473_v18 = vpop.f32.mrb[23].mxu1 }
 0x2f8   : > { %v14475_v56 = vpop.f32.mrb[24].mxu1 }
 0x2f9   : > { %v14477_v11 = vpop.f32.mrb[25].mxu1 }
 0x2fa   : > { %v14479_v51 = vpop.f32.mrb[26].mxu1 }
 0x2fb   : > { %v14481_v48 = vpop.f32.mrb[27].mxu1 }
 0x300   : > { %v14483_v46 = vpop.f32.mrb[28].mxu1 }
 0x301   : > { %v14485_v32 = vpop.f32.mrb[29].mxu1 }
 0x302   : > { %v14488_v5 = vpop.f32.mrb[30].mxu1 }
 0x303   : > { %v14490_v35 = vpop.f32.mrb[31].mxu1 }
 0x308   : > { %v10806_v54 = vpop.f32.mrb[0].mxu0 }
 0x309   : > { %v10870_v3 = vadd.f32 %v10806_v54, %v10476_v19  ;;  %v8058_v2 = vpop.f32.mrb[1].mxu0 }
 0x30a   : > { %v10871_v43 = vadd.f32 %v8058_v2, %v3128_v10  ;;  %v10807_v0 = vpop.f32.mrb[2].mxu0 }
 0x30b   : > { %v8386_v59 = vadd.f32 %v10870_v3, %v14495_v49  ;;  %v10872_v13 = vadd.f32 %v10807_v0, %v10477_v42  ;;  %v8061_v40 = vpop.f32.mrb[3].mxu0 }
 0x30c   : > { %v8384_v12 = vadd.f32 %v10871_v43, %v14495_v49  ;;  %v10873_v29 = vadd.f32 %v8061_v40, %v3131_v62 }
 0x30d   : > { %v8450_v17 = vmax.f32 %v8386_v59, 0.0  ;;  %v8387_v14 = vadd.f32 %v10872_v13, %v14495_v49 }
 0x30e   : > { %v8448_v55 = vmax.f32 %v8384_v12, 0.0  ;;  %v8385_v57 = vadd.f32 %v10873_v29, %v14495_v49 }
 0x30f   : > { %v9915_v21 = vpack.c.bf16 %v8450_v17, %v8450_v17  ;;  %v8451_v7 = vmax.f32 %v8387_v14, 0.0 }
 0x310   : > { %v9913_v44 = vpack.c.bf16 %v8448_v55, %v8448_v55  ;;  %v8449_v38 = vmax.f32 %v8385_v57, 0.0  ;;  %v10810_v30 = vpop.f32.mrb[4].mxu0 }
 0x311   : > { %8771 = vst.msk [vmem:[%s14503_s20 + $0x8] sm:$0xf] %vm8768_vm9, %v9915_v21  ;;  %v9916_v50 = vpack.c.bf16 %v8451_v7, %v8451_v7  ;;  %v10874_v24 = vadd.f32 %v10810_v30, %v10480_v33  ;;  %v8074_v6 = vpop.f32.mrb[5].mxu0 }
 0x312   : > { %8769 = vst.msk [vmem:[%s14503_s20] sm:$0xf] %vm8768_vm9, %v9913_v44  ;;  %v9914_v22 = vpack.c.bf16 %v8449_v38, %v8449_v38  ;;  %v10875_v45 = vadd.f32 %v8074_v6, %v3144_v47  ;;  %v10811_v23 = vpop.f32.mrb[6].mxu0 }
 0x313   : > { %8772 = vst.msk [vmem:[%s14503_s20 + $0xc] sm:$0xf] %vm8768_vm9, %v9916_v50  ;;  %v8390_v28 = vadd.f32 %v10874_v24, %v14495_v49  ;;  %v10876_v39 = vadd.f32 %v10811_v23, %v10481_v20  ;;  %v8077_v4 = vpop.f32.mrb[7].mxu0 }
 0x314   : > { %8770 = vst.msk [vmem:[%s14503_s20 + $0x4] sm:$0xf] %vm8768_vm9, %v9914_v22  ;;  %v8388_v8 = vadd.f32 %v10875_v45, %v14495_v49  ;;  %v10877_v9 = vadd.f32 %v8077_v4, %v14441_v52 }
 0x315   : > { %v8454_v63 = vmax.f32 %v8390_v28, 0.0  ;;  %v8391_v19 = vadd.f32 %v10876_v39, %v14495_v49 }
 0x316   : > { %v8452_v10 = vmax.f32 %v8388_v8, 0.0  ;;  %v8389_v42 = vadd.f32 %v10877_v9, %v14495_v49 }
 0x317   : > { %v9919_v62 = vpack.c.bf16 %v8454_v63, %v8454_v63  ;;  %v8455_v33 = vmax.f32 %v8391_v19, 0.0 }
 0x318   : > { %v9917_v47 = vpack.c.bf16 %v8452_v10, %v8452_v10  ;;  %v8453_v20 = vmax.f32 %v8389_v42, 0.0  ;;  %v10814_v54 = vpop.f32.mrb[8].mxu0 }
 0x319   : > { %8775 = vst.msk [vmem:[%s14503_s20 + $0x18] sm:$0xf] %vm8768_vm9, %v9919_v62  ;;  %v9920_v3 = vpack.c.bf16 %v8455_v33, %v8455_v33  ;;  %v10878_v2 = vadd.f32 %v10814_v54, %v14443_v53  ;;  %v8090_v43 = vpop.f32.mrb[9].mxu0 }
 0x31a   : > { %8773 = vst.msk [vmem:[%s14503_s20 + $0x10] sm:$0xf] %vm8768_vm9, %v9917_v47  ;;  %v9918_v52 = vpack.c.bf16 %v8453_v20, %v8453_v20  ;;  %v10879_v0 = vadd.f32 %v8090_v43, %v14445_v25  ;;  %v10815_v59 = vpop.f32.mrb[10].mxu0 }
 0x31b   : > { %8776 = vst.msk [vmem:[%s14503_s20 + $0x1c] sm:$0xf] %vm8768_vm9, %v9920_v3  ;;  %v8394_v13 = vadd.f32 %v10878_v2, %v14495_v49  ;;  %v10880_v40 = vadd.f32 %v10815_v59, %v14447_v36  ;;  %v8093_v12 = vpop.f32.mrb[11].mxu0 }
 0x31c   : > { %8774 = vst.msk [vmem:[%s14503_s20 + $0x14] sm:$0xf] %vm8768_vm9, %v9918_v52  ;;  %v8392_v53 = vadd.f32 %v10879_v0, %v14495_v49  ;;  %v10881_v29 = vadd.f32 %v8093_v12, %v14449_v34 }
 0x31d   : > { %v8458_v17 = vmax.f32 %v8394_v13, 0.0  ;;  %v8395_v14 = vadd.f32 %v10880_v40, %v14495_v49 }
 0x31e   : > { %v8456_v25 = vmax.f32 %v8392_v53, 0.0  ;;  %v8393_v55 = vadd.f32 %v10881_v29, %v14495_v49 }
 0x31f   : > { %v9923_v57 = vpack.c.bf16 %v8458_v17, %v8458_v17  ;;  %v8459_v21 = vmax.f32 %v8395_v14, 0.0 }
 0x320   : > { %v9921_v7 = vpack.c.bf16 %v8456_v25, %v8456_v25  ;;  %v8457_v36 = vmax.f32 %v8393_v55, 0.0  ;;  %v10818_v44 = vpop.f32.mrb[12].mxu0 }
 0x321   : > { %8779 = vst.msk [vmem:[%s14503_s20 + $0x28] sm:$0xf] %vm8768_vm9, %v9923_v57  ;;  %v9924_v38 = vpack.c.bf16 %v8459_v21, %v8459_v21  ;;  %v10882_v30 = vadd.f32 %v10818_v44, %v14451_v15  ;;  %v8106_v50 = vpop.f32.mrb[13].mxu0 }
 0x322   : > { %8777 = vst.msk [vmem:[%s14503_s20 + $0x20] sm:$0xf] %vm8768_vm9, %v9921_v7  ;;  %v9922_v34 = vpack.c.bf16 %v8457_v36, %v8457_v36  ;;  %v10883_v24 = vadd.f32 %v8106_v50, %v14453_v58  ;;  %v10819_v6 = vpop.f32.mrb[14].mxu0 }
 0x323   : > { %8780 = vst.msk [vmem:[%s14503_s20 + $0x2c] sm:$0xf] %vm8768_vm9, %v9924_v38  ;;  %v8398_v22 = vadd.f32 %v10882_v30, %v14495_v49  ;;  %v10884_v45 = vadd.f32 %v10819_v6, %v14455_v27  ;;  %v8109_v23 = vpop.f32.mrb[15].mxu0 }
 0x324   : > { %8778 = vst.msk [vmem:[%s14503_s20 + $0x24] sm:$0xf] %vm8768_vm9, %v9922_v34  ;;  %v8396_v15 = vadd.f32 %v10883_v24, %v14495_v49  ;;  %v10885_v28 = vadd.f32 %v8109_v23, %v14457_v60 }
 0x325   : > { %v8462_v39 = vmax.f32 %v8398_v22, 0.0  ;;  %v8399_v4 = vadd.f32 %v10884_v45, %v14495_v49 }
 0x326   : > { %v8460_v58 = vmax.f32 %v8396_v15, 0.0  ;;  %v8397_v8 = vadd.f32 %v10885_v28, %v14495_v49 }
 0x327   : > { %v9927_v9 = vpack.c.bf16 %v8462_v39, %v8462_v39  ;;  %v8463_v63 = vmax.f32 %v8399_v4, 0.0 }
 0x328   : > { %v9925_v19 = vpack.c.bf16 %v8460_v58, %v8460_v58  ;;  %v8461_v27 = vmax.f32 %v8397_v8, 0.0  ;;  %v10822_v10 = vpop.f32.mrb[16].mxu0 }
 0x329   : > { %8783 = vst.msk [vmem:[%s14503_s20 + $0x38] sm:$0xf] %vm8768_vm9, %v9927_v9  ;;  %v9928_v42 = vpack.c.bf16 %v8463_v63, %v8463_v63  ;;  %v10886_v62 = vadd.f32 %v10822_v10, %v14459_v26  ;;  %v8122_v33 = vpop.f32.mrb[17].mxu0 }
 0x32a   : > { %8781 = vst.msk [vmem:[%s14503_s20 + $0x30] sm:$0xf] %vm8768_vm9, %v9925_v19  ;;  %v9926_v60 = vpack.c.bf16 %v8461_v27, %v8461_v27  ;;  %v10887_v47 = vadd.f32 %v8122_v33, %v14461_v61  ;;  %v10823_v20 = vpop.f32.mrb[18].mxu0 }
 0x32b   : > { %8784 = vst.msk [vmem:[%s14503_s20 + $0x3c] sm:$0xf] %vm8768_vm9, %v9928_v42  ;;  %v8402_v54 = vadd.f32 %v10886_v62, %v14495_v49  ;;  %v10888_v3 = vadd.f32 %v10823_v20, %v14463_v41  ;;  %v8125_v2 = vpop.f32.mrb[19].mxu0 }
 0x32c   : > { %8782 = vst.msk [vmem:[%s14503_s20 + $0x34] sm:$0xf] %vm8768_vm9, %v9926_v60  ;;  %v8400_v26 = vadd.f32 %v10887_v47, %v14495_v49  ;;  %v10889_v43 = vadd.f32 %v8125_v2, %v14465_v37 }
 0x32d   : > { %v8466_v52 = vmax.f32 %v8402_v54, 0.0  ;;  %v8403_v0 = vadd.f32 %v10888_v3, %v14495_v49 }
 0x32e   : > { %v8464_v61 = vmax.f32 %v8400_v26, 0.0  ;;  %v8401_v59 = vadd.f32 %v10889_v43, %v14495_v49 }
 0x32f   : > { %v9931_v13 = vpack.c.bf16 %v8466_v52, %v8466_v52  ;;  %v8467_v40 = vmax.f32 %v8403_v0, 0.0 }
 0x330   : > { %v9929_v12 = vpack.c.bf16 %v8464_v61, %v8464_v61  ;;  %v8465_v41 = vmax.f32 %v8401_v59, 0.0  ;;  %v10826_v53 = vpop.f32.mrb[20].mxu0 }
 0x331   : > { %8787 = vst.msk [vmem:[%s14503_s20 + $0x48] sm:$0xf] %vm8768_vm9, %v9931_v13  ;;  %v9932_v29 = vpack.c.bf16 %v8467_v40, %v8467_v40  ;;  %v10890_v17 = vadd.f32 %v10826_v53, %v14467_v31  ;;  %v8138_v14 = vpop.f32.mrb[21].mxu0 }
 0x332   : > { %8785 = vst.msk [vmem:[%s14503_s20 + $0x40] sm:$0xf] %vm8768_vm9, %v9929_v12  ;;  %v9930_v37 = vpack.c.bf16 %v8465_v41, %v8465_v41  ;;  %v10891_v25 = vadd.f32 %v8138_v14, %v14469_v16  ;;  %v10827_v55 = vpop.f32.mrb[22].mxu0 }
 0x333   : > { %8788 = vst.msk [vmem:[%s14503_s20 + $0x4c] sm:$0xf] %vm8768_vm9, %v9932_v29  ;;  %v8406_v57 = vadd.f32 %v10890_v17, %v14495_v49  ;;  %v10892_v21 = vadd.f32 %v10827_v55, %v14471_v1  ;;  %v8141_v7 = vpop.f32.mrb[23].mxu0 }
 0x334   : > { %8786 = vst.msk [vmem:[%s14503_s20 + $0x44] sm:$0xf] %vm8768_vm9, %v9930_v37  ;;  %v8404_v31 = vadd.f32 %v10891_v25, %v14495_v49  ;;  %v10893_v36 = vadd.f32 %v8141_v7, %v14473_v18 }
 0x335   : > { %v8470_v44 = vmax.f32 %v8406_v57, 0.0  ;;  %v8407_v38 = vadd.f32 %v10892_v21, %v14495_v49 }
 0x336   : > { %v8468_v16 = vmax.f32 %v8404_v31, 0.0  ;;  %v8405_v30 = vadd.f32 %v10893_v36, %v14495_v49 }
 0x337   : > { %v9935_v50 = vpack.c.bf16 %v8470_v44, %v8470_v44  ;;  %v8471_v34 = vmax.f32 %v8407_v38, 0.0 }
 0x338   : > { %v9933_v24 = vpack.c.bf16 %v8468_v16, %v8468_v16  ;;  %v8469_v1 = vmax.f32 %v8405_v30, 0.0  ;;  %v10830_v6 = vpop.f32.mrb[24].mxu0 }
 0x339   : > { %8791 = vst.msk [vmem:[%s14503_s20 + $0x58] sm:$0xf] %vm8768_vm9, %v9935_v50  ;;  %v9936_v22 = vpack.c.bf16 %v8471_v34, %v8471_v34  ;;  %v10894_v45 = vadd.f32 %v10830_v6, %v14475_v56  ;;  %v8154_v23 = vpop.f32.mrb[25].mxu0 }
 0x33a   : > { %8789 = vst.msk [vmem:[%s14503_s20 + $0x50] sm:$0xf] %vm8768_vm9, %v9933_v24  ;;  %v9934_v18 = vpack.c.bf16 %v8469_v1, %v8469_v1  ;;  %v10895_v15 = vadd.f32 %v8154_v23, %v14477_v11  ;;  %v10831_v28 = vpop.f32.mrb[26].mxu0 }
 0x33b   : > { %8792 = vst.msk [vmem:[%s14503_s20 + $0x5c] sm:$0xf] %vm8768_vm9, %v9936_v22  ;;  %v8410_v39 = vadd.f32 %v10894_v45, %v14495_v49  ;;  %v10896_v4 = vadd.f32 %v10831_v28, %v14479_v51  ;;  %v8157_v58 = vpop.f32.mrb[27].mxu0 }
 0x33c   : > { %8790 = vst.msk [vmem:[%s14503_s20 + $0x54] sm:$0xf] %vm8768_vm9, %v9934_v18  ;;  %v8408_v56 = vadd.f32 %v10895_v15, %v14495_v49  ;;  %v10897_v8 = vadd.f32 %v8157_v58, %v14481_v48 }
 0x33d   : > { %v8474_v9 = vmax.f32 %v8410_v39, 0.0  ;;  %v8411_v63 = vadd.f32 %v10896_v4, %v14495_v49 }
 0x33e   : > { %v8472_v11 = vmax.f32 %v8408_v56, 0.0  ;;  %v8409_v19 = vadd.f32 %v10897_v8, %v14495_v49 }
 0x33f   : > { %v9939_v27 = vpack.c.bf16 %v8474_v9, %v8474_v9  ;;  %v8475_v10 = vmax.f32 %v8411_v63, 0.0 }
 0x340   : > { %v9937_v42 = vpack.c.bf16 %v8472_v11, %v8472_v11  ;;  %v8473_v51 = vmax.f32 %v8409_v19, 0.0  ;;  %v10834_v62 = vpop.f32.mrb[28].mxu0 }
 0x341   : > { %8795 = vst.msk [vmem:[%s14503_s20 + $0x68] sm:$0xf] %vm8768_vm9, %v9939_v27  ;;  %v9940_v33 = vpack.c.bf16 %v8475_v10, %v8475_v10  ;;  %v10898_v60 = vadd.f32 %v10834_v62, %v14483_v46  ;;  %v8170_v47 = vpop.f32.mrb[29].mxu0 }
 0x342   : > { %8793 = vst.msk [vmem:[%s14503_s20 + $0x60] sm:$0xf] %vm8768_vm9, %v9937_v42  ;;  %v9938_v48 = vpack.c.bf16 %v8473_v51, %v8473_v51  ;;  %v10899_v20 = vadd.f32 %v8170_v47, %v14485_v32  ;;  %v10835_v54 = vpop.f32.mrb[30].mxu0 }
 0x343   : > { %8796 = vst.msk [vmem:[%s14503_s20 + $0x6c] sm:$0xf] %vm8768_vm9, %v9940_v33  ;;  %v8414_v3 = vadd.f32 %v10898_v60, %v14495_v49  ;;  %v10900_v2 = vadd.f32 %v10835_v54, %v14488_v5  ;;  %v8173_v26 = vpop.f32.mrb[31].mxu0 }
 0x344   : > { %8794 = vst.msk [vmem:[%s14503_s20 + $0x64] sm:$0xf] %vm8768_vm9, %v9938_v48  ;;  %v8412_v43 = vadd.f32 %v10899_v20, %v14495_v49  ;;  %v10901_v46 = vadd.f32 %v8173_v26, %v14490_v35 }
 0x345   : > { %v8478_v52 = vmax.f32 %v8414_v3, 0.0  ;;  %v8415_v0 = vadd.f32 %v10900_v2, %v14495_v49 }
 0x346   : > { %v8476_v32 = vmax.f32 %v8412_v43, 0.0  ;;  %v8413_v61 = vadd.f32 %v10901_v46, %v14495_v49 }
 0x347   : > { %v9943_v59 = vpack.c.bf16 %v8478_v52, %v8478_v52  ;;  %v8479_v13 = vmax.f32 %v8415_v0, 0.0 }
 0x348   : > { %v10574_v40 = vpop.f32.mrb[32].mxu1  ;;  %v9941_v5 = vpack.c.bf16 %v8476_v32, %v8476_v32  ;;  %v8477_v12 = vmax.f32 %v8413_v61, 0.0  ;;  %v10838_v41 = vpop.f32.mrb[32].mxu0 }
 0x349   : > { %v4550_v53 = vpop.f32.mrb[33].mxu1  ;;  %8799 = vst.msk [vmem:[%s14503_s20 + $0x78] sm:$0xf] %vm8768_vm9, %v9943_v59  ;;  %v9944_v29 = vpack.c.bf16 %v8479_v13, %v8479_v13  ;;  %v10902_v35 = vadd.f32 %v10838_v41, %v10574_v40  ;;  %v8186_v17 = vpop.f32.mrb[33].mxu0 }
 0x34a   : > { %v10575_v14 = vpop.f32.mrb[34].mxu1  ;;  %8797 = vst.msk [vmem:[%s14503_s20 + $0x70] sm:$0xf] %vm8768_vm9, %v9941_v5  ;;  %v9942_v37 = vpack.c.bf16 %v8477_v12, %v8477_v12  ;;  %v10903_v25 = vadd.f32 %v8186_v17, %v4550_v53  ;;  %v10839_v55 = vpop.f32.mrb[34].mxu0 }
 0x34b   : > { %v4553_v57 = vpop.f32.mrb[35].mxu1  ;;  %8800 = vst.msk [vmem:[%s14503_s20 + $0x7c] sm:$0xf] %vm8768_vm9, %v9944_v29  ;;  %v8418_v21 = vadd.f32 %v10902_v35, %v14495_v49  ;;  %v10904_v7 = vadd.f32 %v10839_v55, %v10575_v14  ;;  %v8189_v31 = vpop.f32.mrb[35].mxu0 }
 0x34c   : > { %8798 = vst.msk [vmem:[%s14503_s20 + $0x74] sm:$0xf] %vm8768_vm9, %v9942_v37  ;;  %v8416_v36 = vadd.f32 %v10903_v25, %v14495_v49  ;;  %v10905_v44 = vadd.f32 %v8189_v31, %v4553_v57 }
 0x34d   : > { %v8482_v38 = vmax.f32 %v8418_v21, 0.0  ;;  %v8419_v16 = vadd.f32 %v10904_v7, %v14495_v49 }
 0x34e   : > { %v8480_v30 = vmax.f32 %v8416_v36, 0.0  ;;  %v8417_v50 = vadd.f32 %v10905_v44, %v14495_v49 }
 0x34f   : > { %v9947_v34 = vpack.c.bf16 %v8482_v38, %v8482_v38  ;;  %v8483_v24 = vmax.f32 %v8419_v16, 0.0 }
 0x350   : > { %v10578_v1 = vpop.f32.mrb[36].mxu1  ;;  %v9945_v6 = vpack.c.bf16 %v8480_v30, %v8480_v30  ;;  %v8481_v22 = vmax.f32 %v8417_v50, 0.0  ;;  %v10842_v45 = vpop.f32.mrb[36].mxu0 }
 0x351   : > { %v4566_v23 = vpop.f32.mrb[37].mxu1  ;;  %8803 = vst.msk [vmem:[%s14503_s20 + $0x88] sm:$0xf] %vm8768_vm9, %v9947_v34  ;;  %v9948_v18 = vpack.c.bf16 %v8483_v24, %v8483_v24  ;;  %v10906_v15 = vadd.f32 %v10842_v45, %v10578_v1  ;;  %v8202_v28 = vpop.f32.mrb[37].mxu0 }
 0x352   : > { %v10579_v39 = vpop.f32.mrb[38].mxu1  ;;  %8801 = vst.msk [vmem:[%s14503_s20 + $0x80] sm:$0xf] %vm8768_vm9, %v9945_v6  ;;  %v9946_v4 = vpack.c.bf16 %v8481_v22, %v8481_v22  ;;  %v10907_v58 = vadd.f32 %v8202_v28, %v4566_v23  ;;  %v10843_v56 = vpop.f32.mrb[38].mxu0 }
 0x353   : > { %v4569_v8 = vpop.f32.mrb[39].mxu1  ;;  %8804 = vst.msk [vmem:[%s14503_s20 + $0x8c] sm:$0xf] %vm8768_vm9, %v9948_v18  ;;  %v8422_v9 = vadd.f32 %v10906_v15, %v14495_v49  ;;  %v10908_v63 = vadd.f32 %v10843_v56, %v10579_v39  ;;  %v8205_v11 = vpop.f32.mrb[39].mxu0 }
 0x354   : > { %8802 = vst.msk [vmem:[%s14503_s20 + $0x84] sm:$0xf] %vm8768_vm9, %v9946_v4  ;;  %v8420_v19 = vadd.f32 %v10907_v58, %v14495_v49  ;;  %v10909_v27 = vadd.f32 %v8205_v11, %v4569_v8 }
 0x355   : > { %v8486_v10 = vmax.f32 %v8422_v9, 0.0  ;;  %v8423_v42 = vadd.f32 %v10908_v63, %v14495_v49 }
 0x356   : > { %v8484_v51 = vmax.f32 %v8420_v19, 0.0  ;;  %v8421_v62 = vadd.f32 %v10909_v27, %v14495_v49 }
 0x357   : > { %v9951_v33 = vpack.c.bf16 %v8486_v10, %v8486_v10  ;;  %v8487_v60 = vmax.f32 %v8423_v42, 0.0 }
 0x358   : > { %v10582_v47 = vpop.f32.mrb[40].mxu1  ;;  %v9949_v48 = vpack.c.bf16 %v8484_v51, %v8484_v51  ;;  %v8485_v20 = vmax.f32 %v8421_v62, 0.0  ;;  %v10846_v54 = vpop.f32.mrb[40].mxu0 }
 0x359   : > { %v4582_v3 = vpop.f32.mrb[41].mxu1  ;;  %8807 = vst.msk [vmem:[%s14503_s20 + $0x98] sm:$0xf] %vm8768_vm9, %v9951_v33  ;;  %v9952_v2 = vpack.c.bf16 %v8487_v60, %v8487_v60  ;;  %v10910_v26 = vadd.f32 %v10846_v54, %v10582_v47  ;;  %v8218_v43 = vpop.f32.mrb[41].mxu0 }
 0x35a   : > { %v10583_v46 = vpop.f32.mrb[42].mxu1  ;;  %8805 = vst.msk [vmem:[%s14503_s20 + $0x90] sm:$0xf] %vm8768_vm9, %v9949_v48  ;;  %v9950_v52 = vpack.c.bf16 %v8485_v20, %v8485_v20  ;;  %v10911_v0 = vadd.f32 %v8218_v43, %v4582_v3  ;;  %v10847_v32 = vpop.f32.mrb[42].mxu0 }
 0x35b   : > { %v4585_v61 = vpop.f32.mrb[43].mxu1  ;;  %8808 = vst.msk [vmem:[%s14503_s20 + $0x9c] sm:$0xf] %vm8768_vm9, %v9952_v2  ;;  %v8426_v59 = vadd.f32 %v10910_v26, %v14495_v49  ;;  %v10912_v13 = vadd.f32 %v10847_v32, %v10583_v46  ;;  %v8221_v40 = vpop.f32.mrb[43].mxu0 }
 0x35c   : > { %8806 = vst.msk [vmem:[%s14503_s20 + $0x94] sm:$0xf] %vm8768_vm9, %v9950_v52  ;;  %v8424_v5 = vadd.f32 %v10911_v0, %v14495_v49  ;;  %v10913_v12 = vadd.f32 %v8221_v40, %v4585_v61 }
 0x35d   : > { %v8490_v41 = vmax.f32 %v8426_v59, 0.0  ;;  %v8427_v53 = vadd.f32 %v10912_v13, %v14495_v49 }
 0x35e   : > { %v8488_v29 = vmax.f32 %v8424_v5, 0.0  ;;  %v8425_v35 = vadd.f32 %v10913_v12, %v14495_v49 }
 0x35f   : > { %v9955_v17 = vpack.c.bf16 %v8490_v41, %v8490_v41  ;;  %v8491_v14 = vmax.f32 %v8427_v53, 0.0 }
 0x360   : > { %v10586_v37 = vpop.f32.mrb[44].mxu1  ;;  %v9953_v25 = vpack.c.bf16 %v8488_v29, %v8488_v29  ;;  %v8489_v55 = vmax.f32 %v8425_v35, 0.0  ;;  %v10850_v57 = vpop.f32.mrb[44].mxu0 }
 0x361   : > { %v4598_v21 = vpop.f32.mrb[45].mxu1  ;;  %8811 = vst.msk [vmem:[%s14503_s20 + $0xa8] sm:$0xf] %vm8768_vm9, %v9955_v17  ;;  %v9956_v7 = vpack.c.bf16 %v8491_v14, %v8491_v14  ;;  %v10914_v31 = vadd.f32 %v10850_v57, %v10586_v37  ;;  %v8234_v36 = vpop.f32.mrb[45].mxu0 }
 0x362   : > { %v10587_v44 = vpop.f32.mrb[46].mxu1  ;;  %8809 = vst.msk [vmem:[%s14503_s20 + $0xa0] sm:$0xf] %vm8768_vm9, %v9953_v25  ;;  %v9954_v38 = vpack.c.bf16 %v8489_v55, %v8489_v55  ;;  %v10915_v16 = vadd.f32 %v8234_v36, %v4598_v21  ;;  %v10851_v30 = vpop.f32.mrb[46].mxu0 }
 0x363   : > { %v4601_v50 = vpop.f32.mrb[47].mxu1  ;;  %8812 = vst.msk [vmem:[%s14503_s20 + $0xac] sm:$0xf] %vm8768_vm9, %v9956_v7  ;;  %v8430_v34 = vadd.f32 %v10914_v31, %v14495_v49  ;;  %v10916_v24 = vadd.f32 %v10851_v30, %v10587_v44  ;;  %v8237_v1 = vpop.f32.mrb[47].mxu0 }
 0x364   : > { %8810 = vst.msk [vmem:[%s14503_s20 + $0xa4] sm:$0xf] %vm8768_vm9, %v9954_v38  ;;  %v8428_v6 = vadd.f32 %v10915_v16, %v14495_v49  ;;  %v10917_v22 = vadd.f32 %v8237_v1, %v4601_v50 }
 0x365   : > { %v8494_v45 = vmax.f32 %v8430_v34, 0.0  ;;  %v8431_v23 = vadd.f32 %v10916_v24, %v14495_v49 }
 0x366   : > { %v8492_v18 = vmax.f32 %v8428_v6, 0.0  ;;  %v8429_v15 = vadd.f32 %v10917_v22, %v14495_v49 }
 0x367   : > { %v9959_v28 = vpack.c.bf16 %v8494_v45, %v8494_v45  ;;  %v8495_v39 = vmax.f32 %v8431_v23, 0.0 }
 0x368   : > { %v10590_v4 = vpop.f32.mrb[48].mxu1  ;;  %v9957_v58 = vpack.c.bf16 %v8492_v18, %v8492_v18  ;;  %v8493_v56 = vmax.f32 %v8429_v15, 0.0  ;;  %v10854_v8 = vpop.f32.mrb[48].mxu0 }
 0x369   : > { %v4614_v9 = vpop.f32.mrb[49].mxu1  ;;  %8815 = vst.msk [vmem:[%s14503_s20 + $0xb8] sm:$0xf] %vm8768_vm9, %v9959_v28  ;;  %v9960_v63 = vpack.c.bf16 %v8495_v39, %v8495_v39  ;;  %v10918_v11 = vadd.f32 %v10854_v8, %v10590_v4  ;;  %v8250_v19 = vpop.f32.mrb[49].mxu0 }
 0x36a   : > { %v10591_v27 = vpop.f32.mrb[50].mxu1  ;;  %8813 = vst.msk [vmem:[%s14503_s20 + $0xb0] sm:$0xf] %vm8768_vm9, %v9957_v58  ;;  %v9958_v10 = vpack.c.bf16 %v8493_v56, %v8493_v56  ;;  %v10919_v42 = vadd.f32 %v8250_v19, %v4614_v9  ;;  %v10855_v51 = vpop.f32.mrb[50].mxu0 }
 0x36b   : > { %v4617_v62 = vpop.f32.mrb[51].mxu1  ;;  %8816 = vst.msk [vmem:[%s14503_s20 + $0xbc] sm:$0xf] %vm8768_vm9, %v9960_v63  ;;  %v8434_v33 = vadd.f32 %v10918_v11, %v14495_v49  ;;  %v10920_v60 = vadd.f32 %v10855_v51, %v10591_v27  ;;  %v8253_v47 = vpop.f32.mrb[51].mxu0 }
 0x36c   : > { %8814 = vst.msk [vmem:[%s14503_s20 + $0xb4] sm:$0xf] %vm8768_vm9, %v9958_v10  ;;  %v8432_v48 = vadd.f32 %v10919_v42, %v14495_v49  ;;  %v10921_v20 = vadd.f32 %v8253_v47, %v4617_v62 }
 0x36d   : > { %v8498_v54 = vmax.f32 %v8434_v33, 0.0  ;;  %v8435_v3 = vadd.f32 %v10920_v60, %v14495_v49 }
 0x36e   : > { %v8496_v2 = vmax.f32 %v8432_v48, 0.0  ;;  %v8433_v26 = vadd.f32 %v10921_v20, %v14495_v49 }
 0x36f   : > { %v9963_v43 = vpack.c.bf16 %v8498_v54, %v8498_v54  ;;  %v8499_v46 = vmax.f32 %v8435_v3, 0.0 }
 0x370   : > { %v10594_v52 = vpop.f32.mrb[52].mxu1  ;;  %v9961_v0 = vpack.c.bf16 %v8496_v2, %v8496_v2  ;;  %v8497_v32 = vmax.f32 %v8433_v26, 0.0  ;;  %v10858_v61 = vpop.f32.mrb[52].mxu0 }
 0x371   : > { %v4630_v59 = vpop.f32.mrb[53].mxu1  ;;  %8819 = vst.msk [vmem:[%s14503_s20 + $0xc8] sm:$0xf] %vm8768_vm9, %v9963_v43  ;;  %v9964_v13 = vpack.c.bf16 %v8499_v46, %v8499_v46  ;;  %v10922_v40 = vadd.f32 %v10858_v61, %v10594_v52  ;;  %v8266_v5 = vpop.f32.mrb[53].mxu0 }
 0x372   : > { %v10595_v12 = vpop.f32.mrb[54].mxu1  ;;  %8817 = vst.msk [vmem:[%s14503_s20 + $0xc0] sm:$0xf] %vm8768_vm9, %v9961_v0  ;;  %v9962_v41 = vpack.c.bf16 %v8497_v32, %v8497_v32  ;;  %v10923_v53 = vadd.f32 %v8266_v5, %v4630_v59  ;;  %v10859_v29 = vpop.f32.mrb[54].mxu0 }
 0x373   : > { %v4633_v35 = vpop.f32.mrb[55].mxu1  ;;  %8820 = vst.msk [vmem:[%s14503_s20 + $0xcc] sm:$0xf] %vm8768_vm9, %v9964_v13  ;;  %v8438_v17 = vadd.f32 %v10922_v40, %v14495_v49  ;;  %v10924_v14 = vadd.f32 %v10859_v29, %v10595_v12  ;;  %v8269_v37 = vpop.f32.mrb[55].mxu0 }
 0x374   : > { %8818 = vst.msk [vmem:[%s14503_s20 + $0xc4] sm:$0xf] %vm8768_vm9, %v9962_v41  ;;  %v8436_v25 = vadd.f32 %v10923_v53, %v14495_v49  ;;  %v10925_v55 = vadd.f32 %v8269_v37, %v4633_v35 }
 0x375   : > { %v8502_v57 = vmax.f32 %v8438_v17, 0.0  ;;  %v8439_v21 = vadd.f32 %v10924_v14, %v14495_v49 }
 0x376   : > { %v8500_v7 = vmax.f32 %v8436_v25, 0.0  ;;  %v8437_v31 = vadd.f32 %v10925_v55, %v14495_v49 }
 0x377   : > { %v9967_v36 = vpack.c.bf16 %v8502_v57, %v8502_v57  ;;  %v8503_v44 = vmax.f32 %v8439_v21, 0.0 }
 0x378   : > { %v10598_v38 = vpop.f32.mrb[56].mxu1  ;;  %v9965_v16 = vpack.c.bf16 %v8500_v7, %v8500_v7  ;;  %v8501_v30 = vmax.f32 %v8437_v31, 0.0  ;;  %v10862_v50 = vpop.f32.mrb[56].mxu0 }
 0x379   : > { %v4646_v34 = vpop.f32.mrb[57].mxu1  ;;  %8823 = vst.msk [vmem:[%s14503_s20 + $0xd8] sm:$0xf] %vm8768_vm9, %v9967_v36  ;;  %v9968_v24 = vpack.c.bf16 %v8503_v44, %v8503_v44  ;;  %v10926_v1 = vadd.f32 %v10862_v50, %v10598_v38  ;;  %v8282_v6 = vpop.f32.mrb[57].mxu0 }
 0x37a   : > { %v10599_v22 = vpop.f32.mrb[58].mxu1  ;;  %8821 = vst.msk [vmem:[%s14503_s20 + $0xd0] sm:$0xf] %vm8768_vm9, %v9965_v16  ;;  %v9966_v45 = vpack.c.bf16 %v8501_v30, %v8501_v30  ;;  %v10927_v23 = vadd.f32 %v8282_v6, %v4646_v34  ;;  %v10863_v18 = vpop.f32.mrb[58].mxu0 }
 0x37b   : > { %v4649_v15 = vpop.f32.mrb[59].mxu1  ;;  %8824 = vst.msk [vmem:[%s14503_s20 + $0xdc] sm:$0xf] %vm8768_vm9, %v9968_v24  ;;  %v8442_v28 = vadd.f32 %v10926_v1, %v14495_v49  ;;  %v10928_v39 = vadd.f32 %v10863_v18, %v10599_v22  ;;  %v8285_v4 = vpop.f32.mrb[59].mxu0 }
 0x37c   : > { %8822 = vst.msk [vmem:[%s14503_s20 + $0xd4] sm:$0xf] %vm8768_vm9, %v9966_v45  ;;  %v8440_v58 = vadd.f32 %v10927_v23, %v14495_v49  ;;  %v10929_v56 = vadd.f32 %v8285_v4, %v4649_v15 }
 0x37d   : > { %v8506_v8 = vmax.f32 %v8442_v28, 0.0  ;;  %v8443_v9 = vadd.f32 %v10928_v39, %v14495_v49 }
 0x37e   : > { %v8504_v63 = vmax.f32 %v8440_v58, 0.0  ;;  %v8441_v11 = vadd.f32 %v10929_v56, %v14495_v49 }
 0x37f   : > { %v9971_v19 = vpack.c.bf16 %v8506_v8, %v8506_v8  ;;  %v8507_v27 = vmax.f32 %v8443_v9, 0.0 }
 0x380   : > { %v10602_v10 = vpop.f32.mrb[60].mxu1  ;;  %v9969_v42 = vpack.c.bf16 %v8504_v63, %v8504_v63  ;;  %v8505_v51 = vmax.f32 %v8441_v11, 0.0  ;;  %v10866_v62 = vpop.f32.mrb[60].mxu0 }
 0x381   : > { %v4662_v33 = vpop.f32.mrb[61].mxu1  ;;  %8827 = vst.msk [vmem:[%s14503_s20 + $0xe8] sm:$0xf] %vm8768_vm9, %v9971_v19  ;;  %v9972_v60 = vpack.c.bf16 %v8507_v27, %v8507_v27  ;;  %v10930_v47 = vadd.f32 %v10866_v62, %v10602_v10  ;;  %v8298_v48 = vpop.f32.mrb[61].mxu0 }
 0x382   : > { %v10603_v20 = vpop.f32.mrb[62].mxu1  ;;  %8825 = vst.msk [vmem:[%s14503_s20 + $0xe0] sm:$0xf] %vm8768_vm9, %v9969_v42  ;;  %v9970_v54 = vpack.c.bf16 %v8505_v51, %v8505_v51  ;;  %v10931_v3 = vadd.f32 %v8298_v48, %v4662_v33  ;;  %v10867_v2 = vpop.f32.mrb[62].mxu0 }
 0x383   : > { %v4665_v26 = vpop.f32.mrb[63].mxu1  ;;  %8828 = vst.msk [vmem:[%s14503_s20 + $0xec] sm:$0xf] %vm8768_vm9, %v9972_v60  ;;  %v8446_v43 = vadd.f32 %v10930_v47, %v14495_v49  ;;  %v10932_v46 = vadd.f32 %v10867_v2, %v10603_v20  ;;  %v8301_v52 = vpop.f32.mrb[63].mxu0 }
 0x384   : > { %8826 = vst.msk [vmem:[%s14503_s20 + $0xe4] sm:$0xf] %vm8768_vm9, %v9970_v54  ;;  %v8444_v0 = vadd.f32 %v10931_v3, %v14495_v49  ;;  %v10933_v32 = vadd.f32 %v8301_v52, %v4665_v26 }
 0x385   : > { %v8510_v61 = vmax.f32 %v8446_v43, 0.0  ;;  %v8447_v59 = vadd.f32 %v10932_v46, %v14495_v49 }
 0x386   : > { %v8508_v13 = vmax.f32 %v8444_v0, 0.0  ;;  %v8445_v40 = vadd.f32 %v10933_v32, %v14495_v49 }
 0x387   : > { %v9975_v5 = vpack.c.bf16 %v8510_v61, %v8510_v61  ;;  %v8511_v12 = vmax.f32 %v8447_v59, 0.0 }
 0x388   : > { %v9973_v41 = vpack.c.bf16 %v8508_v13, %v8508_v13  ;;  %v8509_v53 = vmax.f32 %v8445_v40, 0.0 }
 0x389   : > { %8831 = vst.msk [vmem:[%s14503_s20 + $0xf8] sm:$0xf] %vm8768_vm9, %v9975_v5  ;;  %v9976_v29 = vpack.c.bf16 %v8511_v12, %v8511_v12 }
 0x38a   : > { %8829 = vst.msk [vmem:[%s14503_s20 + $0xf0] sm:$0xf] %vm8768_vm9, %v9973_v41  ;;  %v9974_v35 = vpack.c.bf16 %v8509_v53, %v8509_v53 }
 0x38b   : > { %8832 = vst.msk [vmem:[%s14503_s20 + $0xfc] sm:$0xf] %vm8768_vm9, %v9976_v29 }
 0x38c   : > { %8830 = vst.msk [vmem:[%s14503_s20 + $0xf4] sm:$0xf] %vm8768_vm9, %v9974_v35 }
 0x38d PF: > { %s13_s14 = sadd.s32 1, %s11719_s14   ;;  %s14757_s12 = smov %s11715_s13 }
 0x38e   : > { %p10_p5 = scmp.ge.s32.totalorder %s13_s14, 10   ;;  %s14758_s13 = smov %s14760_s15 }
 0x390   :  { %12 = sbr.rel (!%p10_p5) target bundleno = 2 (0x2), region = 73 }

</bundles_post_ra>
